<compile_context>
chip_gen: v7x
topology: tpu7x:2x2x1
jax: 0.10.0
libtpu: 0.0.40
codegen_flags: <defaults>
</compile_context>

<pallas_src>
import functools

import jax
import jax.numpy as jnp
from jax import lax
from jax.experimental import pallas as pl
from jax.experimental.pallas import tpu as pltpu


def _sam_kernel(Nb, H, W, C,
                x_ref, ximg_ref,
                w12_ref, b12_ref, w3_ref, b3_ref,
                x1_out_ref, img_out_ref):
    """SAM forward for a block of Nb images.

    x_ref    : (Nb, H, W, C)      input features (unpadded)
    ximg_ref : (Nb, H, W, 3)      degraded image
    w12_ref  : (3, 3*C, C+3)      fused conv1||conv2 weights, row dy major,
                                  inner ordering (dx, cin)
    b12_ref  : (1, C+3)           fused conv1||conv2 bias
    w3_ref   : (3, 9, C)          conv3 weights in the same layout (Cin=3)
    b3_ref   : (1, C)             conv3 bias
    outputs  : x1 (Nb, H, W, C), img (Nb, H, W, 3)
    """
    M = Nb * H * W

    def pad_hw(t):
        # (Nb, h, w, c) -> (Nb, h+2, w+2, c) with a zero halo ("padding=1"),
        # built purely on values in VMEM (no HBM traffic, no scratch refs).
        n, h, w, c = t.shape
        zr = jnp.zeros((n, 1, w, c), t.dtype)
        t = jnp.concatenate([zr, t, zr], axis=1)          # pad H
        zc = jnp.zeros((n, h + 2, 1, c), t.dtype)
        return jnp.concatenate([zc, t, zc], axis=2)       # pad W

    def conv3x3(t, w2d, bias):
        # t: (Nb, H, W, Cin); w2d: (3, 3*Cin, Cout); bias: (1, Cout)
        cin = t.shape[-1]
        cout = w2d.shape[-1]
        tpad = pad_hw(t)                                   # (Nb, H+2, W+2, Cin)
        acc = jnp.zeros((M, cout), jnp.float32)
        for dy in range(3):                                # unrolled: 3 matmuls
            rows = tpad[:, dy:dy + H, :, :]                # (Nb, H, W+2, Cin)
            taps = jnp.concatenate(
                [rows[:, :, dx:dx + W, :] for dx in range(3)],
                axis=-1)                                   # (Nb, H, W, 3*Cin)
            acc = acc + jnp.dot(taps.reshape(M, 3 * cin), w2d[dy],
                                preferred_element_type=jnp.float32)
        return acc + bias                                  # (M, Cout)

    x = x_ref[...]                                         # (Nb, H, W, C)

    # Fused conv1 + conv2 over x: one conv with Cout = C + 3.
    y12 = conv3x3(x, w12_ref[...], b12_ref[...])           # (M, C+3)
    x1c = y12[:, :C]                                       # conv1(x)
    imgc = y12[:, C:] + ximg_ref[...].reshape(M, 3)        # conv2(x) + x_img
    img_out_ref[...] = imgc.reshape(Nb, H, W, 3)

    # x2 = sigmoid(conv3(img)); img kept as a value, padded in-kernel.
    x2c = jax.nn.sigmoid(
        conv3x3(imgc.reshape(Nb, H, W, 3), w3_ref[...], b3_ref[...]))  # (M, C)

    # x1 = conv1(x) * x2 + x
    x1_out_ref[...] = (x1c * x2c + x.reshape(M, C)).reshape(Nb, H, W, C)


def sam_forward(x_nchw, ximg_nchw, params, *, block_n=8):
    """SAM forward. x: (N, C, H, W), x_img: (N, 3, H, W) -> (x1, img) in NCHW."""
    w1, b1, w2, b2, w3, b3 = params                        # weights in HWIO
    N, C, H, W = x_nchw.shape

    # Largest batch block <= block_n that divides N (whole batch for the test).
    nb = 1
    for cand in range(min(block_n, N), 0, -1):
        if N % cand == 0:
            nb = cand
            break

    # NCHW -> NHWC for the kernel (interface-compat only; a NHWC model skips this).
    x_nhwc = jnp.transpose(x_nchw, (0, 2, 3, 1)).astype(jnp.float32)
    ximg_nhwc = jnp.transpose(ximg_nchw, (0, 2, 3, 1)).astype(jnp.float32)

    # Fuse conv1 || conv2 along Cout and fold the 3 dx taps into the K dim:
    #   (3, 3, Cin, Cout) -> (3, 3*Cin, Cout), row index = dy, K index = dx*Cin+cin
    w12 = jnp.concatenate([w1, w2], axis=3).reshape(3, 3 * C, C + 3)
    b12 = jnp.concatenate([b1, b2]).reshape(1, C + 3)
    w3r = w3.reshape(3, 3 * 3, C)
    b3r = b3.reshape(1, C)

    kernel = functools.partial(_sam_kernel, nb, H, W, C)

    x1_nhwc, img_nhwc = pl.pallas_call(
        kernel,
        out_shape=(
            jax.ShapeDtypeStruct((N, H, W, C), jnp.float32),
            jax.ShapeDtypeStruct((N, H, W, 3), jnp.float32),
        ),
        grid_spec=pltpu.PrefetchScalarGridSpec(
            num_scalar_prefetch=0,
            grid=(N // nb,),
            in_specs=[
                pl.BlockSpec((nb, H, W, C), lambda n: (n, 0, 0, 0)),
                pl.BlockSpec((nb, H, W, 3), lambda n: (n, 0, 0, 0)),
                pl.BlockSpec(w12.shape, lambda n: (0, 0, 0)),
                pl.BlockSpec(b12.shape, lambda n: (0, 0)),
                pl.BlockSpec(w3r.shape, lambda n: (0, 0, 0)),
                pl.BlockSpec(b3r.shape, lambda n: (0, 0)),
            ],
            out_specs=[
                pl.BlockSpec((nb, H, W, C), lambda n: (n, 0, 0, 0)),
                pl.BlockSpec((nb, H, W, 3), lambda n: (n, 0, 0, 0)),
            ],
        ),
        compiler_params=pltpu.CompilerParams(
            dimension_semantics=("parallel",)),
    )(x_nhwc, ximg_nhwc, w12, b12, w3r, b3r)

    # NHWC -> NCHW to match PyTorch convention.
    x1 = jnp.transpose(x1_nhwc, (0, 3, 1, 2))
    img = jnp.transpose(img_nhwc, (0, 3, 1, 2))
    return x1, img


# ----------------------------- pure-JAX reference -----------------------------

def _ref_conv(x_nchw, w_hwio, b):
    w_oihw = jnp.transpose(w_hwio, (3, 2, 0, 1))
    y = lax.conv_general_dilated(
        x_nchw, w_oihw, window_strides=(1, 1), padding=((1, 1), (1, 1)),
        dimension_numbers=('NCHW', 'OIHW', 'NCHW'))
    return y + b.reshape(1, -1, 1, 1)


def sam_reference(x, x_img, params):
    w1, b1, w2, b2, w3, b3 = params
    x1 = _ref_conv(x, w1, b1)
    img = _ref_conv(x, w2, b2) + x_img
    x2 = jax.nn.sigmoid(_ref_conv(img, w3, b3))
    return x1 * x2 + x, img


if __name__ == "__main__":
    N, n_feat, H, W = 2, 4, 16, 16

    key = jax.random.PRNGKey(0)
    ks = jax.random.split(key, 8)

    # Deterministic synthetic parameters (HWIO weight layout).
    w1 = 0.1 * jax.random.normal(ks[0], (3, 3, n_feat, n_feat), jnp.float32)
    b1 = 0.1 * jax.random.normal(ks[1], (n_feat,), jnp.float32)
    w2 = 0.1 * jax.random.normal(ks[2], (3, 3, n_feat, 3), jnp.float32)
    b2 = 0.1 * jax.random.normal(ks[3], (3,), jnp.float32)
    w3 = 0.1 * jax.random.normal(ks[4], (3, 3, 3, n_feat), jnp.float32)
    b3 = 0.1 * jax.random.normal(ks[5], (n_feat,), jnp.float32)
    params = (w1, b1, w2, b2, w3, b3)

    x = jax.random.normal(ks[6], (N, n_feat, H, W), jnp.float32)
    x_img = jax.random.normal(ks[7], (N, 3, H, W), jnp.float32)

    x1_out, img_out = jax.block_until_ready(sam_forward(x, x_img, params))

    x1_ref, img_ref = sam_reference(x, x_img, params)
    assert jnp.allclose(x1_out, x1_ref, atol=2e-4, rtol=2e-4)
    assert jnp.allclose(img_out, img_ref, atol=2e-4, rtol=2e-4)

    print("KERNEL_OK")
</pallas_src>

<mosaic_0001>
module attributes {stable_mosaic.version = 11 : i64} {
  func.func @_sam_kernel(%arg0: i32, %arg1: memref<2x16x16x4xf32, #tpu.memory_space<vmem>>, %arg2: memref<2x16x16x3xf32, #tpu.memory_space<vmem>>, %arg3: memref<3x12x7xf32, #tpu.memory_space<vmem>>, %arg4: memref<1x7xf32, #tpu.memory_space<vmem>>, %arg5: memref<3x9x4xf32, #tpu.memory_space<vmem>>, %arg6: memref<1x4xf32, #tpu.memory_space<vmem>>, %arg7: memref<2x16x16x4xf32, #tpu.memory_space<vmem>>, %arg8: memref<2x16x16x3xf32, #tpu.memory_space<vmem>>) attributes {dimension_semantics = [#tpu.dimension_semantics<parallel>], iteration_bounds = array<i64: 1>, scalar_prefetch = 0 : i64, scratch_operands = 0 : i64, tpu.core_type = #tpu.core_type<tc>, window_params = [{transform_indices = @transform_0, window_bounds = array<i64: 2, 16, 16, 4>}, {transform_indices = @transform_1, window_bounds = array<i64: 2, 16, 16, 3>}, {pipeline_mode = #tpu.pipeline_mode<synchronous>, transform_indices = @transform_2, window_bounds = array<i64: 3, 12, 7>}, {pipeline_mode = #tpu.pipeline_mode<synchronous>, transform_indices = @transform_3, window_bounds = array<i64: 1, 7>}, {pipeline_mode = #tpu.pipeline_mode<synchronous>, transform_indices = @transform_4, window_bounds = array<i64: 3, 9, 4>}, {pipeline_mode = #tpu.pipeline_mode<synchronous>, transform_indices = @transform_5, window_bounds = array<i64: 1, 4>}, {transform_indices = @transform_6, window_bounds = array<i64: 2, 16, 16, 4>}, {transform_indices = @transform_7, window_bounds = array<i64: 2, 16, 16, 3>}]} {
    %c0 = arith.constant 0 : index
    %c0_0 = arith.constant 0 : index
    %c0_1 = arith.constant 0 : index
    %c0_2 = arith.constant 0 : index
    %0 = vector.load %arg1[%c0, %c0_0, %c0_1, %c0_2] : memref<2x16x16x4xf32, #tpu.memory_space<vmem>>, vector<2x16x16x4xf32>
    %c0_3 = arith.constant 0 : index
    %c0_4 = arith.constant 0 : index
    %c0_5 = arith.constant 0 : index
    %1 = vector.load %arg3[%c0_3, %c0_4, %c0_5] : memref<3x12x7xf32, #tpu.memory_space<vmem>>, vector<3x12x7xf32>
    %c0_6 = arith.constant 0 : index
    %c0_7 = arith.constant 0 : index
    %2 = vector.load %arg4[%c0_6, %c0_7] : memref<1x7xf32, #tpu.memory_space<vmem>>, vector<1x7xf32>
    %cst = arith.constant 0.000000e+00 : f32
    %3 = vector.broadcast %cst : f32 to vector<2x1x16x4xf32>
    %4 = tpu.concatenate %3, %0, %3 in 1 : vector<2x1x16x4xf32>, vector<2x16x16x4xf32>, vector<2x1x16x4xf32> -> vector<2x18x16x4xf32>
    %cst_8 = arith.constant 0.000000e+00 : f32
    %5 = vector.broadcast %cst_8 : f32 to vector<2x18x1x4xf32>
    %6 = tpu.concatenate %5, %4, %5 in 2 : vector<2x18x1x4xf32>, vector<2x18x16x4xf32>, vector<2x18x1x4xf32> -> vector<2x18x18x4xf32>
    %cst_9 = arith.constant 0.000000e+00 : f32
    %7 = vector.broadcast %cst_9 : f32 to vector<512x7xf32>
    %8 = vector.extract_strided_slice %6 {offsets = [0, 0, 0, 0], sizes = [2, 16, 18, 4], strides = [1, 1, 1, 1]} : vector<2x18x18x4xf32> to vector<2x16x18x4xf32>
    %9 = vector.extract_strided_slice %8 {offsets = [0, 0, 0, 0], sizes = [2, 16, 16, 4], strides = [1, 1, 1, 1]} : vector<2x16x18x4xf32> to vector<2x16x16x4xf32>
    %10 = vector.extract_strided_slice %8 {offsets = [0, 0, 1, 0], sizes = [2, 16, 16, 4], strides = [1, 1, 1, 1]} : vector<2x16x18x4xf32> to vector<2x16x16x4xf32>
    %11 = vector.extract_strided_slice %8 {offsets = [0, 0, 2, 0], sizes = [2, 16, 16, 4], strides = [1, 1, 1, 1]} : vector<2x16x18x4xf32> to vector<2x16x16x4xf32>
    %12 = tpu.concatenate %9, %10, %11 in 3 : vector<2x16x16x4xf32>, vector<2x16x16x4xf32>, vector<2x16x16x4xf32> -> vector<2x16x16x12xf32>
    %13 = vector.shape_cast %12 : vector<2x16x16x12xf32> to vector<512x12xf32>
    %14 = vector.extract_strided_slice %1 {offsets = [0, 0, 0], sizes = [1, 12, 7], strides = [1, 1, 1]} : vector<3x12x7xf32> to vector<1x12x7xf32>
    %15 = vector.shape_cast %14 : vector<1x12x7xf32> to vector<12x7xf32>
    %cst_10 = arith.constant dense<0.000000e+00> : vector<512x7xf32>
    %16 = tpu.matmul %13, %15, %cst_10 {dimension_numbers = #tpu.dot_dimension_numbers<[1], [0], [0], [1], [0, 0, 1, 1], [], []>} : vector<512x12xf32>, vector<12x7xf32>, vector<512x7xf32> -> vector<512x7xf32>
    %17 = arith.addf %7, %16 : vector<512x7xf32>
    %18 = vector.extract_strided_slice %6 {offsets = [0, 1, 0, 0], sizes = [2, 16, 18, 4], strides = [1, 1, 1, 1]} : vector<2x18x18x4xf32> to vector<2x16x18x4xf32>
    %19 = vector.extract_strided_slice %18 {offsets = [0, 0, 0, 0], sizes = [2, 16, 16, 4], strides = [1, 1, 1, 1]} : vector<2x16x18x4xf32> to vector<2x16x16x4xf32>
    %20 = vector.extract_strided_slice %18 {offsets = [0, 0, 1, 0], sizes = [2, 16, 16, 4], strides = [1, 1, 1, 1]} : vector<2x16x18x4xf32> to vector<2x16x16x4xf32>
    %21 = vector.extract_strided_slice %18 {offsets = [0, 0, 2, 0], sizes = [2, 16, 16, 4], strides = [1, 1, 1, 1]} : vector<2x16x18x4xf32> to vector<2x16x16x4xf32>
    %22 = tpu.concatenate %19, %20, %21 in 3 : vector<2x16x16x4xf32>, vector<2x16x16x4xf32>, vector<2x16x16x4xf32> -> vector<2x16x16x12xf32>
    %23 = vector.shape_cast %22 : vector<2x16x16x12xf32> to vector<512x12xf32>
    %24 = vector.extract_strided_slice %1 {offsets = [1, 0, 0], sizes = [1, 12, 7], strides = [1, 1, 1]} : vector<3x12x7xf32> to vector<1x12x7xf32>
    %25 = vector.shape_cast %24 : vector<1x12x7xf32> to vector<12x7xf32>
    %cst_11 = arith.constant dense<0.000000e+00> : vector<512x7xf32>
    %26 = tpu.matmul %23, %25, %cst_11 {dimension_numbers = #tpu.dot_dimension_numbers<[1], [0], [0], [1], [0, 0, 1, 1], [], []>} : vector<512x12xf32>, vector<12x7xf32>, vector<512x7xf32> -> vector<512x7xf32>
    %27 = arith.addf %17, %26 : vector<512x7xf32>
    %28 = vector.extract_strided_slice %6 {offsets = [0, 2, 0, 0], sizes = [2, 16, 18, 4], strides = [1, 1, 1, 1]} : vector<2x18x18x4xf32> to vector<2x16x18x4xf32>
    %29 = vector.extract_strided_slice %28 {offsets = [0, 0, 0, 0], sizes = [2, 16, 16, 4], strides = [1, 1, 1, 1]} : vector<2x16x18x4xf32> to vector<2x16x16x4xf32>
    %30 = vector.extract_strided_slice %28 {offsets = [0, 0, 1, 0], sizes = [2, 16, 16, 4], strides = [1, 1, 1, 1]} : vector<2x16x18x4xf32> to vector<2x16x16x4xf32>
    %31 = vector.extract_strided_slice %28 {offsets = [0, 0, 2, 0], sizes = [2, 16, 16, 4], strides = [1, 1, 1, 1]} : vector<2x16x18x4xf32> to vector<2x16x16x4xf32>
    %32 = tpu.concatenate %29, %30, %31 in 3 : vector<2x16x16x4xf32>, vector<2x16x16x4xf32>, vector<2x16x16x4xf32> -> vector<2x16x16x12xf32>
    %33 = vector.shape_cast %32 : vector<2x16x16x12xf32> to vector<512x12xf32>
    %34 = vector.extract_strided_slice %1 {offsets = [2, 0, 0], sizes = [1, 12, 7], strides = [1, 1, 1]} : vector<3x12x7xf32> to vector<1x12x7xf32>
    %35 = vector.shape_cast %34 : vector<1x12x7xf32> to vector<12x7xf32>
    %cst_12 = arith.constant dense<0.000000e+00> : vector<512x7xf32>
    %36 = tpu.matmul %33, %35, %cst_12 {dimension_numbers = #tpu.dot_dimension_numbers<[1], [0], [0], [1], [0, 0, 1, 1], [], []>} : vector<512x12xf32>, vector<12x7xf32>, vector<512x7xf32> -> vector<512x7xf32>
    %37 = arith.addf %27, %36 : vector<512x7xf32>
    %38 = vector.broadcast %2 : vector<1x7xf32> to vector<512x7xf32>
    %39 = arith.addf %37, %38 : vector<512x7xf32>
    %40 = vector.extract_strided_slice %39 {offsets = [0, 0], sizes = [512, 4], strides = [1, 1]} : vector<512x7xf32> to vector<512x4xf32>
    %41 = vector.extract_strided_slice %39 {offsets = [0, 4], sizes = [512, 3], strides = [1, 1]} : vector<512x7xf32> to vector<512x3xf32>
    %c0_13 = arith.constant 0 : index
    %c0_14 = arith.constant 0 : index
    %c0_15 = arith.constant 0 : index
    %c0_16 = arith.constant 0 : index
    %42 = vector.load %arg2[%c0_13, %c0_14, %c0_15, %c0_16] : memref<2x16x16x3xf32, #tpu.memory_space<vmem>>, vector<2x16x16x3xf32>
    %43 = vector.shape_cast %42 : vector<2x16x16x3xf32> to vector<512x3xf32>
    %44 = arith.addf %41, %43 : vector<512x3xf32>
    %45 = vector.shape_cast %44 : vector<512x3xf32> to vector<2x16x16x3xf32>
    %c0_17 = arith.constant 0 : index
    %c0_18 = arith.constant 0 : index
    %c0_19 = arith.constant 0 : index
    %c0_20 = arith.constant 0 : index
    %46 = vector.load %arg8[%c0_17, %c0_18, %c0_19, %c0_20] : memref<2x16x16x3xf32, #tpu.memory_space<vmem>>, vector<2x16x16x3xf32>
    tpu.vector_store %arg8[%c0_17, %c0_18, %c0_19, %c0_20], %45 {strides = array<i32>} : memref<2x16x16x3xf32, #tpu.memory_space<vmem>>, vector<2x16x16x3xf32>,
    %47 = vector.shape_cast %44 : vector<512x3xf32> to vector<2x16x16x3xf32>
    %c0_21 = arith.constant 0 : index
    %c0_22 = arith.constant 0 : index
    %c0_23 = arith.constant 0 : index
    %48 = vector.load %arg5[%c0_21, %c0_22, %c0_23] : memref<3x9x4xf32, #tpu.memory_space<vmem>>, vector<3x9x4xf32>
    %c0_24 = arith.constant 0 : index
    %c0_25 = arith.constant 0 : index
    %49 = vector.load %arg6[%c0_24, %c0_25] : memref<1x4xf32, #tpu.memory_space<vmem>>, vector<1x4xf32>
    %cst_26 = arith.constant 0.000000e+00 : f32
    %50 = vector.broadcast %cst_26 : f32 to vector<2x1x16x3xf32>
    %51 = tpu.concatenate %50, %47, %50 in 1 : vector<2x1x16x3xf32>, vector<2x16x16x3xf32>, vector<2x1x16x3xf32> -> vector<2x18x16x3xf32>
    %cst_27 = arith.constant 0.000000e+00 : f32
    %52 = vector.broadcast %cst_27 : f32 to vector<2x18x1x3xf32>
    %53 = tpu.concatenate %52, %51, %52 in 2 : vector<2x18x1x3xf32>, vector<2x18x16x3xf32>, vector<2x18x1x3xf32> -> vector<2x18x18x3xf32>
    %cst_28 = arith.constant 0.000000e+00 : f32
    %54 = vector.broadcast %cst_28 : f32 to vector<512x4xf32>
    %55 = vector.extract_strided_slice %53 {offsets = [0, 0, 0, 0], sizes = [2, 16, 18, 3], strides = [1, 1, 1, 1]} : vector<2x18x18x3xf32> to vector<2x16x18x3xf32>
    %56 = vector.extract_strided_slice %55 {offsets = [0, 0, 0, 0], sizes = [2, 16, 16, 3], strides = [1, 1, 1, 1]} : vector<2x16x18x3xf32> to vector<2x16x16x3xf32>
    %57 = vector.extract_strided_slice %55 {offsets = [0, 0, 1, 0], sizes = [2, 16, 16, 3], strides = [1, 1, 1, 1]} : vector<2x16x18x3xf32> to vector<2x16x16x3xf32>
    %58 = vector.extract_strided_slice %55 {offsets = [0, 0, 2, 0], sizes = [2, 16, 16, 3], strides = [1, 1, 1, 1]} : vector<2x16x18x3xf32> to vector<2x16x16x3xf32>
    %59 = tpu.concatenate %56, %57, %58 in 3 : vector<2x16x16x3xf32>, vector<2x16x16x3xf32>, vector<2x16x16x3xf32> -> vector<2x16x16x9xf32>
    %60 = vector.shape_cast %59 : vector<2x16x16x9xf32> to vector<512x9xf32>
    %61 = vector.extract_strided_slice %48 {offsets = [0, 0, 0], sizes = [1, 9, 4], strides = [1, 1, 1]} : vector<3x9x4xf32> to vector<1x9x4xf32>
    %62 = vector.shape_cast %61 : vector<1x9x4xf32> to vector<9x4xf32>
    %cst_29 = arith.constant dense<0.000000e+00> : vector<512x4xf32>
    %63 = tpu.matmul %60, %62, %cst_29 {dimension_numbers = #tpu.dot_dimension_numbers<[1], [0], [0], [1], [0, 0, 1, 1], [], []>} : vector<512x9xf32>, vector<9x4xf32>, vector<512x4xf32> -> vector<512x4xf32>
    %64 = arith.addf %54, %63 : vector<512x4xf32>
    %65 = vector.extract_strided_slice %53 {offsets = [0, 1, 0, 0], sizes = [2, 16, 18, 3], strides = [1, 1, 1, 1]} : vector<2x18x18x3xf32> to vector<2x16x18x3xf32>
    %66 = vector.extract_strided_slice %65 {offsets = [0, 0, 0, 0], sizes = [2, 16, 16, 3], strides = [1, 1, 1, 1]} : vector<2x16x18x3xf32> to vector<2x16x16x3xf32>
    %67 = vector.extract_strided_slice %65 {offsets = [0, 0, 1, 0], sizes = [2, 16, 16, 3], strides = [1, 1, 1, 1]} : vector<2x16x18x3xf32> to vector<2x16x16x3xf32>
    %68 = vector.extract_strided_slice %65 {offsets = [0, 0, 2, 0], sizes = [2, 16, 16, 3], strides = [1, 1, 1, 1]} : vector<2x16x18x3xf32> to vector<2x16x16x3xf32>
    %69 = tpu.concatenate %66, %67, %68 in 3 : vector<2x16x16x3xf32>, vector<2x16x16x3xf32>, vector<2x16x16x3xf32> -> vector<2x16x16x9xf32>
    %70 = vector.shape_cast %69 : vector<2x16x16x9xf32> to vector<512x9xf32>
    %71 = vector.extract_strided_slice %48 {offsets = [1, 0, 0], sizes = [1, 9, 4], strides = [1, 1, 1]} : vector<3x9x4xf32> to vector<1x9x4xf32>
    %72 = vector.shape_cast %71 : vector<1x9x4xf32> to vector<9x4xf32>
    %cst_30 = arith.constant dense<0.000000e+00> : vector<512x4xf32>
    %73 = tpu.matmul %70, %72, %cst_30 {dimension_numbers = #tpu.dot_dimension_numbers<[1], [0], [0], [1], [0, 0, 1, 1], [], []>} : vector<512x9xf32>, vector<9x4xf32>, vector<512x4xf32> -> vector<512x4xf32>
    %74 = arith.addf %64, %73 : vector<512x4xf32>
    %75 = vector.extract_strided_slice %53 {offsets = [0, 2, 0, 0], sizes = [2, 16, 18, 3], strides = [1, 1, 1, 1]} : vector<2x18x18x3xf32> to vector<2x16x18x3xf32>
    %76 = vector.extract_strided_slice %75 {offsets = [0, 0, 0, 0], sizes = [2, 16, 16, 3], strides = [1, 1, 1, 1]} : vector<2x16x18x3xf32> to vector<2x16x16x3xf32>
    %77 = vector.extract_strided_slice %75 {offsets = [0, 0, 1, 0], sizes = [2, 16, 16, 3], strides = [1, 1, 1, 1]} : vector<2x16x18x3xf32> to vector<2x16x16x3xf32>
    %78 = vector.extract_strided_slice %75 {offsets = [0, 0, 2, 0], sizes = [2, 16, 16, 3], strides = [1, 1, 1, 1]} : vector<2x16x18x3xf32> to vector<2x16x16x3xf32>
    %79 = tpu.concatenate %76, %77, %78 in 3 : vector<2x16x16x3xf32>, vector<2x16x16x3xf32>, vector<2x16x16x3xf32> -> vector<2x16x16x9xf32>
    %80 = vector.shape_cast %79 : vector<2x16x16x9xf32> to vector<512x9xf32>
    %81 = vector.extract_strided_slice %48 {offsets = [2, 0, 0], sizes = [1, 9, 4], strides = [1, 1, 1]} : vector<3x9x4xf32> to vector<1x9x4xf32>
    %82 = vector.shape_cast %81 : vector<1x9x4xf32> to vector<9x4xf32>
    %cst_31 = arith.constant dense<0.000000e+00> : vector<512x4xf32>
    %83 = tpu.matmul %80, %82, %cst_31 {dimension_numbers = #tpu.dot_dimension_numbers<[1], [0], [0], [1], [0, 0, 1, 1], [], []>} : vector<512x9xf32>, vector<9x4xf32>, vector<512x4xf32> -> vector<512x4xf32>
    %84 = arith.addf %74, %83 : vector<512x4xf32>
    %85 = vector.broadcast %49 : vector<1x4xf32> to vector<512x4xf32>
    %86 = arith.addf %84, %85 : vector<512x4xf32>
    %87 = arith.negf %86 : vector<512x4xf32>
    %88 = math.exp %87 : vector<512x4xf32>
    %cst_32 = arith.constant 1.000000e+00 : f32
    %89 = vector.broadcast %cst_32 : f32 to vector<512x4xf32>
    %90 = arith.addf %89, %88 : vector<512x4xf32>
    %91 = arith.divf %89, %90 : vector<512x4xf32>
    %92 = arith.mulf %40, %91 : vector<512x4xf32>
    %93 = vector.shape_cast %0 : vector<2x16x16x4xf32> to vector<512x4xf32>
    %94 = arith.addf %92, %93 : vector<512x4xf32>
    %95 = vector.shape_cast %94 : vector<512x4xf32> to vector<2x16x16x4xf32>
    %c0_33 = arith.constant 0 : index
    %c0_34 = arith.constant 0 : index
    %c0_35 = arith.constant 0 : index
    %c0_36 = arith.constant 0 : index
    %96 = vector.load %arg7[%c0_33, %c0_34, %c0_35, %c0_36] : memref<2x16x16x4xf32, #tpu.memory_space<vmem>>, vector<2x16x16x4xf32>
    tpu.vector_store %arg7[%c0_33, %c0_34, %c0_35, %c0_36], %95 {strides = array<i32>} : memref<2x16x16x4xf32, #tpu.memory_space<vmem>>, vector<2x16x16x4xf32>,
    return
  }
  func.func @transform_0(%arg0: i32) -> (i32, i32, i32, i32) {
    %c0_i32 = arith.constant 0 : i32
    %c0_i32_0 = arith.constant 0 : i32
    %c0_i32_1 = arith.constant 0 : i32
    %c0_i32_2 = arith.constant 0 : i32
    return %arg0, %c0_i32, %c0_i32_0, %c0_i32_1 : i32, i32, i32, i32
  }
  func.func @transform_1(%arg0: i32) -> (i32, i32, i32, i32) {
    %c0_i32 = arith.constant 0 : i32
    %c0_i32_0 = arith.constant 0 : i32
    %c0_i32_1 = arith.constant 0 : i32
    %c0_i32_2 = arith.constant 0 : i32
    return %arg0, %c0_i32, %c0_i32_0, %c0_i32_1 : i32, i32, i32, i32
  }
  func.func @transform_2(%arg0: i32) -> (i32, i32, i32) {
    %c0_i32 = arith.constant 0 : i32
    %c0_i32_0 = arith.constant 0 : i32
    %c0_i32_1 = arith.constant 0 : i32
    %c0_i32_2 = arith.constant 0 : i32
    return %c0_i32, %c0_i32_0, %c0_i32_1 : i32, i32, i32
  }
  func.func @transform_3(%arg0: i32) -> (i32, i32) {
    %c0_i32 = arith.constant 0 : i32
    %c0_i32_0 = arith.constant 0 : i32
    %c0_i32_1 = arith.constant 0 : i32
    return %c0_i32, %c0_i32_0 : i32, i32
  }
  func.func @transform_4(%arg0: i32) -> (i32, i32, i32) {
    %c0_i32 = arith.constant 0 : i32
    %c0_i32_0 = arith.constant 0 : i32
    %c0_i32_1 = arith.constant 0 : i32
    %c0_i32_2 = arith.constant 0 : i32
    return %c0_i32, %c0_i32_0, %c0_i32_1 : i32, i32, i32
  }
  func.func @transform_5(%arg0: i32) -> (i32, i32) {
    %c0_i32 = arith.constant 0 : i32
    %c0_i32_0 = arith.constant 0 : i32
    %c0_i32_1 = arith.constant 0 : i32
    return %c0_i32, %c0_i32_0 : i32, i32
  }
  func.func @transform_6(%arg0: i32) -> (i32, i32, i32, i32) {
    %c0_i32 = arith.constant 0 : i32
    %c0_i32_0 = arith.constant 0 : i32
    %c0_i32_1 = arith.constant 0 : i32
    %c0_i32_2 = arith.constant 0 : i32
    return %arg0, %c0_i32, %c0_i32_0, %c0_i32_1 : i32, i32, i32, i32
  }
  func.func @transform_7(%arg0: i32) -> (i32, i32, i32, i32) {
    %c0_i32 = arith.constant 0 : i32
    %c0_i32_0 = arith.constant 0 : i32
    %c0_i32_1 = arith.constant 0 : i32
    %c0_i32_2 = arith.constant 0 : i32
    return %arg0, %c0_i32, %c0_i32_0, %c0_i32_1 : i32, i32, i32, i32
  }
}

</mosaic_0001>

<bundles_post_ra>
// kernel: tpu_custom_call.1
= control target key start
LH: loop header
LB: loop body
LE: loop exit
PB: predicated region body
PF: predicated region fallthrough
CT: control target
= control target key end

     0   :  { %vm161_vm0 = vcmask 1040384   ;;  %vm828_vm1 = vcmask 1045504   ;;  %vm486_vm2 = vcmask 1046528   ;;  %s8904_s13 = smov 8   ;;  %s8905_s14 = smov 4   ;;  %vm1545_vm3 = vcmask 1043456   ;;  %s13681_s0 = inlined_call_operand.vmem [shape: f32[2,16,16,4], index: 0, kind: input, shape index: {}]   ;;  %s13682_s2 = inlined_call_operand.vmem [shape: f32[3,12,7], index: 2, kind: input, shape index: {}]   ;;  %s13683_s1 = inlined_call_operand.vmem [shape: f32[2,16,16,3], index: 1, kind: input, shape index: {}]   ;;  %s13684_s3 = inlined_call_operand.vmem [shape: f32[1,7], index: 3, kind: input, shape index: {}]   ;;  %s13685_s7 = inlined_call_operand.vmem [shape: f32[2,16,16,3], index: 7, kind: output, shape index: {1}]   ;;  %s13686_s4 = inlined_call_operand.vmem [shape: f32[3,9,4], index: 4, kind: input, shape index: {}]   ;;  %s13687_s5 = inlined_call_operand.vmem [shape: f32[1,4], index: 5, kind: input, shape index: {}]   ;;  %s13688_s6 = inlined_call_operand.vmem [shape: f32[2,16,16,4], index: 6, kind: output, shape index: {0}]  }
   0x1   :  { %v25_v0 = vld [vmem:[%s13681_s0] sm:$0xff]  ;;  %v26_v1 = vld [vmem:[%s13681_s0 + $0x8] sm:$0xff]  ;;  %v27_v2 = vld [vmem:[%s13681_s0 + $0x10] sm:$0xff]  ;;  %vm8906_vm4 = vmmov 1   ;;  %vm1170_vm6 = vcmask 31744   ;;  %vm1233_vm7 = vcmask 64512  }
   0x2   :  { %v164_v3 = vrot.slane %v25_v0, 7  ;;  %v165_v4 = vrot.slane %v26_v1, 7  ;;  %v28_v5 = vld [vmem:[%s13681_s0 + $0x18] sm:$0xff]  ;;  %v167_v6 = vrot.slane %v27_v2, 7  ;;  %v29_v16 = vld [vmem:[%s13681_s0 + $0x20] sm:$0xff]  ;;  %v30_v21 = vld [vmem:[%s13681_s0 + $0x28] sm:$0xff] }
   0x3   :  { %v168_v7 = vrot.slane %v28_v5, 7  ;;  %v170_v26 = vrot.slane %v29_v16, 7  ;;  %v171_v30 = vrot.slane %v30_v21, 7  ;;  %v31_v39 = vld [vmem:[%s13681_s0 + $0x30] sm:$0xff]  ;;  %v32_v40 = vld [vmem:[%s13681_s0 + $0x38] sm:$0xff]  ;;  %v33_v56 = vld [vmem:[%s13681_s0 + $0x40] sm:$0xff] }
   0x4   :  { %v8964_v8 = vsel %vm161_vm0, %v164_v3, %v165_v4  ;;  %v8967_v9 = vsel %vm161_vm0, 0.0, %v164_v3  ;;  %v392_v10 = vsel %vm161_vm0, %v165_v4, 0.0  ;;  %v8971_v11 = vsel %vm161_vm0, 0.0, %v167_v6  ;;  %v34_v57 = vld [vmem:[%s13681_s0 + $0x48] sm:$0xff]  ;;  %vm9152_vm5 = vmpackc.low %vm1545_vm3, %vm8906_vm4  ;;  %s8909_s21 = smov 3   ;;  %s8910_s26 = smov 6  }
   0x5   :  { %v834_v12 = vrot.slane %v8967_v9, 2  ;;  %v835_v13 = vrot.slane %v8964_v8, 2  ;;  %v492_v14 = vrot.slane %v8967_v9, 1  ;;  %v493_v15 = vrot.slane %v8964_v8, 1  ;;  %vm11229_vm10 = vmpackc.low %vm161_vm0, %vm8906_vm4 }
   0x6   :  { %v837_v17 = vrot.slane %v392_v10, 2  ;;  %v495_v18 = vrot.slane %v392_v10, 1  ;;  %v8981_v19 = vsel %vm161_vm0, %v167_v6, %v168_v7  ;;  %v393_v20 = vsel %vm161_vm0, %v168_v7, 0.0  ;;  %v35_v6 = vld [vmem:[%s13681_s0 + $0x50] sm:$0xff] }
   0x7   :  { %v836_v22 = vsel %vm828_vm1, %v834_v12, %v835_v13  ;;  %v494_v23 = vsel %vm486_vm2, %v492_v14, %v493_v15  ;;  %v498_v24 = vrot.slane %v8981_v19, 1  ;;  %v500_v25 = vrot.slane %v393_v20, 1 }
   0x8   :  { %988 = vrot.lane.b32.xlu1 %v836_v22, %s8904_s13  ;;  %646 = vrot.lane.b32.xlu0 %v494_v23, %s8905_s14  ;;  %v838_v27 = vsel %vm828_vm1, %v835_v13, %v837_v17  ;;  %v496_v28 = vsel %vm486_vm2, %v493_v15, %v495_v18  ;;  %v497_v29 = vrot.slane %v8971_v11, 1  ;;  %v840_v32 = vrot.slane %v8981_v19, 2  ;;  %v36_v13 = vld [vmem:[%s13681_s0 + $0x58] sm:$0xff] }
   0x9   :  { %v501_v31 = vsel %vm486_vm2, %v498_v24, %v500_v25  ;;  %v842_v34 = vrot.slane %v393_v20, 2  ;;  %v839_v35 = vrot.slane %v8971_v11, 2  ;;  %v9002_v36 = vsel %vm161_vm0, %v170_v26, %v171_v30 }
   0xa   :  { %v499_v33 = vsel %vm486_vm2, %v497_v29, %v498_v24  ;;  %v394_v37 = vsel %vm161_vm0, %v171_v30, 0.0  ;;  %v9006_v38 = vsel %vm161_vm0, 0.0, %v170_v26  ;;  %v503_v41 = vrot.slane %v9002_v36, 1  ;;  %v37_v30 = vld [vmem:[%s13681_s0 + $0x60] sm:$0xff] }
   0xb   :  { %v843_v42 = vsel %vm828_vm1, %v840_v32, %v842_v34  ;;  %v841_v43 = vsel %vm828_vm1, %v839_v35, %v840_v32  ;;  %v505_v44 = vrot.slane %v394_v37, 1  ;;  %v502_v45 = vrot.slane %v9006_v38, 1 }
   0xc   :  { %990 = vrot.lane.b32.xlu1 %v838_v27, %s8904_s13  ;;  %648 = vrot.lane.b32.xlu0 %v496_v28, %s8905_s14  ;;  %v173_v46 = vrot.slane %v31_v39, 7  ;;  %v174_v47 = vrot.slane %v32_v40, 7  ;;  %v845_v48 = vrot.slane %v9002_v36, 2  ;;  %v847_v49 = vrot.slane %v394_v37, 2 }
   0xd   :  { %v506_v50 = vsel %vm486_vm2, %v503_v41, %v505_v44  ;;  %v504_v51 = vsel %vm486_vm2, %v502_v45, %v503_v41  ;;  %v844_v52 = vrot.slane %v9006_v38, 2  ;;  %v176_v63 = vrot.slane %v33_v56, 7 }
   0xe   :  { %v9027_v53 = vsel %vm161_vm0, %v173_v46, %v174_v47  ;;  %v395_v54 = vsel %vm161_vm0, %v174_v47, 0.0  ;;  %v9031_v55 = vsel %vm161_vm0, 0.0, %v173_v46  ;;  %v848_v58 = vsel %vm828_vm1, %v845_v48, %v847_v49  ;;  %v39_v46 = vld [vmem:[%s13681_s0 + $0x70] sm:$0xff]  ;;  %v40_v47 = vld [vmem:[%s13681_s0 + $0x78] sm:$0xff] }
   0xf   :  { %v846_v59 = vsel %vm828_vm1, %v844_v52, %v845_v48  ;;  %v508_v60 = vrot.slane %v9027_v53, 1  ;;  %v510_v61 = vrot.slane %v395_v54, 1  ;;  %v507_v62 = vrot.slane %v9031_v55, 1 }
  0x10   :  { %652 = vrot.lane.b32.xlu1 %v501_v31, %s8905_s14  ;;  %650 = vrot.lane.b32.xlu0 %v499_v33, %s8905_s14  ;;  %v177_v0 = vrot.slane %v34_v57, 7  ;;  %v850_v1 = vrot.slane %v9027_v53, 2  ;;  %v852_v2 = vrot.slane %v395_v54, 2  ;;  %v849_v5 = vrot.slane %v9031_v55, 2  ;;  %v38_v31 = vld [vmem:[%s13681_s0 + $0x68] sm:$0xff] }
  0x11   :  { %v511_v3 = vsel %vm486_vm2, %v508_v60, %v510_v61  ;;  %v509_v4 = vsel %vm486_vm2, %v507_v62, %v508_v60  ;;  %v9059_v12 = vsel %vm161_vm0, 0.0, %v176_v63  ;;  %v179_v15 = vrot.slane %v35_v6, 7  ;;  %v91_v6 = vld [vmem:[%s13682_s2 + $0x10] sm:$0xff] }
  0x12   :  { %v9055_v7 = vsel %vm161_vm0, %v176_v63, %v177_v0  ;;  %v396_v10 = vsel %vm161_vm0, %v177_v0, 0.0  ;;  %v853_v14 = vsel %vm828_vm1, %v850_v1, %v852_v2  ;;  %v851_v16 = vsel %vm828_vm1, %v849_v5, %v850_v1  ;;  %v42_v5 = vld [vmem:[%s13681_s0 + $0x88] sm:$0xff] }
  0x13   :  { %v513_v17 = vrot.slane %v9055_v7, 1  ;;  %v515_v18 = vrot.slane %v396_v10, 1  ;;  %v512_v20 = vrot.slane %v9059_v12, 1  ;;  %v180_v21 = vrot.slane %v36_v13, 7 }
  0x14   :  { %994 = vrot.lane.b32.xlu1 %v843_v42, %s8904_s13  ;;  %992 = vrot.lane.b32.xlu0 %v841_v43, %s8904_s13  ;;  %v855_v22 = vrot.slane %v9055_v7, 2  ;;  %v857_v23 = vrot.slane %v396_v10, 2  ;;  %v854_v26 = vrot.slane %v9059_v12, 2  ;;  %v9077_v27 = vsel %vm161_vm0, 0.0, %v179_v15  ;;  %v92_v10 = vld [vmem:[%s13682_s2 + $0x18] sm:$0xf] }
  0x15   :  { %v516_v24 = vsel %vm486_vm2, %v513_v17, %v515_v18  ;;  %v514_v25 = vsel %vm486_vm2, %v512_v20, %v513_v17  ;;  %v9080_v28 = vsel %vm161_vm0, %v179_v15, %v180_v21  ;;  %v397_v29 = vsel %vm161_vm0, %v180_v21, 0.0 }
  0x16   :  { %v517_v32 = vrot.slane %v9077_v27, 1  ;;  %v858_v33 = vsel %vm828_vm1, %v855_v22, %v857_v23  ;;  %v856_v34 = vsel %vm828_vm1, %v854_v26, %v855_v22  ;;  %v518_v35 = vrot.slane %v9080_v28, 1 }
  0x17   :  { %v520_v37 = vrot.slane %v397_v29, 1  ;;  %v182_v39 = vrot.slane %v37_v30, 7  ;;  %v183_v40 = vrot.slane %v38_v31, 7  ;;  %v860_v41 = vrot.slane %v9080_v28, 2 }
  0x18   :  { %656 = vrot.lane.b32.xlu1 %v506_v50, %s8905_s14  ;;  %654 = vrot.lane.b32.xlu0 %v504_v51, %s8905_s14  ;;  %v862_v42 = vrot.slane %v397_v29, 2  ;;  %v519_v44 = vsel %vm486_vm2, %v517_v32, %v518_v35  ;;  %v859_v45 = vrot.slane %v9077_v27, 2  ;;  %v185_v52 = vrot.slane %v39_v46, 7 }
  0x19   :  { %v521_v43 = vsel %vm486_vm2, %v518_v35, %v520_v37  ;;  %v9108_v48 = vsel %vm161_vm0, %v182_v39, %v183_v40  ;;  %v398_v49 = vsel %vm161_vm0, %v183_v40, 0.0  ;;  %v9112_v50 = vsel %vm161_vm0, 0.0, %v182_v39 }
  0x1a   :  { %v863_v51 = vsel %vm828_vm1, %v860_v41, %v862_v42  ;;  %v186_v54 = vrot.slane %v40_v47, 7  ;;  %v861_v56 = vsel %vm828_vm1, %v859_v45, %v860_v41  ;;  %v523_v57 = vrot.slane %v9108_v48, 1 }
  0x1b   :  { %v865_v60 = vrot.slane %v9108_v48, 2  ;;  %v867_v0 = vrot.slane %v398_v49, 2  ;;  %v864_v1 = vrot.slane %v9112_v50, 2  ;;  %v189_v20 = vrot.slane %v42_v5, 7 }
  0x1c   :  { %998 = vrot.lane.b32.xlu1 %v848_v58, %s8904_s13  ;;  %996 = vrot.lane.b32.xlu0 %v846_v59, %s8904_s13  ;;  %v525_v58 = vrot.slane %v398_v49, 1  ;;  %v522_v59 = vrot.slane %v9112_v50, 1  ;;  %v9124_v61 = vsel %vm161_vm0, %v185_v52, %v186_v54  ;;  %v399_v2 = vsel %vm161_vm0, %v186_v54, 0.0 }
  0x1d   :  { %v528_v13 = vrot.slane %v9124_v61, 1  ;;  %v866_v15 = vsel %vm828_vm1, %v864_v1, %v865_v60  ;;  %v8264_v21 = vpack.c.bf16 %v92_v10, %v91_v6  ;;  %v870_v23 = vrot.slane %v9124_v61, 2 }
  0x1e   :  { %v526_v62 = vsel %vm486_vm2, %v523_v57, %v525_v58  ;;  %v524_v63 = vsel %vm486_vm2, %v522_v59, %v523_v57  ;;  %v400_v31 = vsel %vm161_vm0, %v189_v20, 0.0  ;;  %vm1352_vm8 = vcmask 97280  }
  0x1f   :  { %8266 = vmatprep.subr.msk.bf16.mxu0 %vm9152_vm5, %v8264_v21  ;;  %v535_v40 = vrot.slane %v400_v31, 1  ;;  %v877_v45 = vrot.slane %v400_v31, 2  ;;  %vm3490_vm9 = vcmask 23552   ;;  %vm4612_vm11 = vcmask 48128  }
  0x20   :  { %660 = vrot.lane.b32.xlu1 %v511_v3, %s8905_s14  ;;  %658 = vrot.lane.b32.xlu0 %v509_v4, %s8905_s14  ;;  %v9131_v3 = vsel %vm161_vm0, 0.0, %v185_v52  ;;  %v41_v4 = vld [vmem:[%s13681_s0 + $0x80] sm:$0xff]  ;;  %v46_v52 = vld [vmem:[%s13681_s0 + $0xa8] sm:$0xff]  ;;  %vm4731_vm12 = vcmask 72704  }
  0x21   :  { %v527_v17 = vrot.slane %v9131_v3, 1  ;;  %v188_v18 = vrot.slane %v41_v4, 7  ;;  %v869_v29 = vrot.slane %v9131_v3, 2  ;;  %8269 = vmatpush3.bf16.msk.msra.mxu0 %vm9152_vm5, %v8264_v21 }
  0x23   :  { %v529_v26 = vsel %vm486_vm2, %v527_v17, %v528_v13  ;;  %v9165_v30 = vsel %vm161_vm0, %v188_v18, %v189_v20  ;;  %v9169_v32 = vsel %vm161_vm0, 0.0, %v188_v18  ;;  %v871_v37 = vsel %vm828_vm1, %v869_v29, %v870_v23  ;;  %v48_v17 = vld [vmem:[%s13681_s0 + $0xb8] sm:$0xff] }
  0x24   :  { %1002 = vrot.lane.b32.xlu1 %v853_v14, %s8904_s13  ;;  %1000 = vrot.lane.b32.xlu0 %v851_v16, %s8904_s13  ;;  %v868_v14 = vsel %vm828_vm1, %v865_v60, %v867_v0  ;;  %v530_v16 = vrot.slane %v399_v2, 1  ;;  %v533_v39 = vrot.slane %v9165_v30, 1  ;;  %v532_v41 = vrot.slane %v9169_v32, 1 }
  0x25   :  { %v874_v49 = vrot.slane %v9169_v32, 2  ;;  %v195_v60 = vrot.slane %v46_v52, 7 }
  0x26   :  { %v536_v46 = vsel %vm486_vm2, %v533_v39, %v535_v40  ;;  %v534_v47 = vsel %vm486_vm2, %v532_v41, %v533_v39  ;;  %v50_v39 = vld [vmem:[%s13681_s0 + $0xc8] sm:$0xff] }
  0x28   :  { %664 = vrot.lane.b32.xlu1 %v516_v24, %s8905_s14  ;;  %662 = vrot.lane.b32.xlu0 %v514_v25, %s8905_s14  ;;  %v872_v24 = vrot.slane %v399_v2, 2  ;;  %v531_v25 = vsel %vm486_vm2, %v528_v13, %v530_v16  ;;  %v47_v16 = vld [vmem:[%s13681_s0 + $0xb0] sm:$0xff] }
  0x2a   :  { %v873_v35 = vsel %vm828_vm1, %v870_v23, %v872_v24 }
  0x2c   :  { %1006 = vrot.lane.b32.xlu1 %v858_v33, %s8904_s13  ;;  %1004 = vrot.lane.b32.xlu0 %v856_v34, %s8904_s13  ;;  %v43_v33 = vld [vmem:[%s13681_s0 + $0x90] sm:$0xff]  ;;  %v44_v34 = vld [vmem:[%s13681_s0 + $0x98] sm:$0xff] }
  0x2d   :  { %v191_v42 = vrot.slane %v43_v33, 7 }
  0x2f   :  { %v9202_v57 = vsel %vm161_vm0, 0.0, %v191_v42 }
  0x30   :  { %668 = vrot.lane.b32.xlu1 %v521_v43, %s8905_s14  ;;  %666 = vrot.lane.b32.xlu0 %v519_v44, %s8905_s14  ;;  %v192_v43 = vrot.slane %v44_v34, 7  ;;  %v875_v44 = vrot.slane %v9165_v30, 2  ;;  %v537_v1 = vrot.slane %v9202_v57, 1  ;;  %v879_v10 = vrot.slane %v9202_v57, 2 }
  0x32   :  { %v9198_v54 = vsel %vm161_vm0, %v191_v42, %v192_v43  ;;  %v878_v58 = vsel %vm828_vm1, %v875_v44, %v877_v45  ;;  %v201_v45 = vrot.slane %v50_v39, 7 }
  0x33   :  { %v880_v2 = vrot.slane %v9198_v54, 2 }
  0x34   :  { %1010 = vrot.lane.b32.xlu1 %v863_v51, %s8904_s13  ;;  %1008 = vrot.lane.b32.xlu0 %v861_v56, %s8904_s13  ;;  %v45_v51 = vld [vmem:[%s13681_s0 + $0xa0] sm:$0xff]  ;;  %v401_v56 = vsel %vm161_vm0, %v192_v43, 0.0 }
  0x35   :  { %v194_v59 = vrot.slane %v45_v51, 7  ;;  %v540_v0 = vrot.slane %v401_v56, 1  ;;  %v882_v4 = vrot.slane %v401_v56, 2  ;;  %v881_v21 = vsel %vm828_vm1, %v879_v10, %v880_v2 }
  0x37   :  { %v9217_v13 = vsel %vm161_vm0, %v194_v59, %v195_v60  ;;  %v883_v20 = vsel %vm828_vm1, %v880_v2, %v882_v4  ;;  %v52_v2 = vld [vmem:[%s13681_s0 + $0xd8] sm:$0xff] }
  0x38   :  { %672 = vrot.lane.b32.xlu1 %v526_v62, %s8905_s14  ;;  %670 = vrot.lane.b32.xlu0 %v524_v63, %s8905_s14  ;;  %v876_v62 = vsel %vm828_vm1, %v874_v49, %v875_v44  ;;  %v538_v63 = vrot.slane %v9198_v54, 1  ;;  %v543_v18 = vrot.slane %v9217_v13, 1  ;;  %v885_v29 = vrot.slane %v9217_v13, 2 }
  0x3a   :  { %v541_v5 = vsel %vm486_vm2, %v538_v63, %v540_v0  ;;  %v539_v6 = vsel %vm486_vm2, %v537_v1, %v538_v63  ;;  %v404_v63 = vsel %vm161_vm0, %v201_v45, 0.0  ;;  %v51_v1 = vld [vmem:[%s13681_s0 + $0xd0] sm:$0xff] }
  0x3b   :  { %v555_v10 = vrot.slane %v404_v63, 1 }
  0x3c   :  { %1014 = vrot.lane.b32.xlu1 %v868_v14, %s8904_s13  ;;  %1012 = vrot.lane.b32.xlu0 %v866_v15, %s8904_s13  ;;  %v402_v14 = vsel %vm161_vm0, %v195_v60, 0.0  ;;  %v9221_v15 = vsel %vm161_vm0, 0.0, %v194_v59 }
  0x3d   :  { %v545_v23 = vrot.slane %v402_v14, 1  ;;  %v542_v24 = vrot.slane %v9221_v15, 1  ;;  %v887_v31 = vrot.slane %v402_v14, 2 }
  0x3f   :  { %v546_v33 = vsel %vm486_vm2, %v543_v18, %v545_v23  ;;  %v544_v34 = vsel %vm486_vm2, %v542_v24, %v543_v18  ;;  %v888_v43 = vsel %vm828_vm1, %v885_v29, %v887_v31 }
  0x40   :  { %676 = vrot.lane.b32.xlu1 %v531_v25, %s8905_s14  ;;  %674 = vrot.lane.b32.xlu0 %v529_v26, %s8905_s14  ;;  %v197_v25 = vrot.slane %v47_v16, 7  ;;  %v198_v26 = vrot.slane %v48_v17, 7  ;;  %v203_v16 = vrot.slane %v51_v1, 7  ;;  %v204_v17 = vrot.slane %v52_v2, 7 }
  0x42   :  { %v9248_v40 = vsel %vm161_vm0, %v197_v25, %v198_v26  ;;  %v403_v41 = vsel %vm161_vm0, %v198_v26, 0.0  ;;  %v9252_v42 = vsel %vm161_vm0, 0.0, %v197_v25  ;;  %v53_v25 = vld [vmem:[%s13681_s0 + $0xe0] sm:$0xff]  ;;  %v54_v26 = vld [vmem:[%s13681_s0 + $0xe8] sm:$0xff]  ;;  %v405_v31 = vsel %vm161_vm0, %v204_v17, 0.0 }
  0x43   :  { %v550_v49 = vrot.slane %v403_v41, 1  ;;  %v547_v51 = vrot.slane %v9252_v42, 1  ;;  %v890_v52 = vrot.slane %v9248_v40, 2  ;;  %v892_v60 = vrot.slane %v403_v41, 2 }
  0x44   :  { %1018 = vrot.lane.b32.xlu1 %v873_v35, %s8904_s13  ;;  %1016 = vrot.lane.b32.xlu0 %v871_v37, %s8904_s13  ;;  %v884_v35 = vrot.slane %v9221_v15, 2  ;;  %v49_v37 = vld [vmem:[%s13681_s0 + $0xc0] sm:$0xff] }
  0x45   :  { %v200_v44 = vrot.slane %v49_v37, 7  ;;  %v207_v37 = vrot.slane %v54_v26, 7 }
  0x47   :  { %v9264_v56 = vsel %vm161_vm0, %v200_v44, %v201_v45  ;;  %v9271_v0 = vsel %vm161_vm0, 0.0, %v200_v44 }
  0x48   :  { %680 = vrot.lane.b32.xlu1 %v536_v46, %s8905_s14  ;;  %678 = vrot.lane.b32.xlu0 %v534_v47, %s8905_s14  ;;  %v886_v46 = vsel %vm828_vm1, %v884_v35, %v885_v29  ;;  %v548_v47 = vrot.slane %v9248_v40, 1  ;;  %v553_v4 = vrot.slane %v9264_v56, 1  ;;  %v552_v14 = vrot.slane %v9271_v0, 1 }
  0x49   :  { %v895_v18 = vrot.slane %v9264_v56, 2  ;;  %v894_v24 = vrot.slane %v9271_v0, 2  ;;  %v9298_v29 = vsel %vm161_vm0, %v203_v16, %v204_v17  ;;  %v206_v35 = vrot.slane %v53_v25, 7 }
  0x4a   :  { %v549_v59 = vsel %vm486_vm2, %v547_v51, %v548_v47  ;;  %v554_v23 = vsel %vm486_vm2, %v552_v14, %v553_v4  ;;  %v558_v41 = vrot.slane %v9298_v29, 1  ;;  %v900_v45 = vrot.slane %v9298_v29, 2 }
  0x4b   :  { %v896_v39 = vsel %vm828_vm1, %v894_v24, %v895_v18 }
  0x4c   :  { %1022 = vrot.lane.b32.xlu1 %v878_v58, %s8904_s13  ;;  %1020 = vrot.lane.b32.xlu0 %v876_v62, %s8904_s13  ;;  %v551_v58 = vsel %vm486_vm2, %v548_v47, %v550_v49  ;;  %v889_v62 = vrot.slane %v9252_v42, 2 }
  0x50   :  { %684 = vrot.lane.b32.xlu1 %v541_v5, %s8905_s14  ;;  %682 = vrot.lane.b32.xlu0 %v539_v6, %s8905_s14  ;;  %v893_v5 = vsel %vm828_vm1, %v890_v52, %v892_v60  ;;  %v891_v6 = vsel %vm828_vm1, %v889_v62, %v890_v52  ;;  %v9317_v52 = vsel %vm161_vm0, %v206_v35, %v207_v37  ;;  %v55_v60 = vld [vmem:[%s13681_s0 + $0xf0] sm:$0xff]  ;;  %v56_v62 = vld [vmem:[%s13681_s0 + $0xf8] sm:$0xff] }
  0x51   :  { %v905_v14 = vrot.slane %v9317_v52, 2 }
  0x54   :  { %1026 = vrot.lane.b32.xlu1 %v883_v20, %s8904_s13  ;;  %1024 = vrot.lane.b32.xlu0 %v881_v21, %s8904_s13  ;;  %v897_v20 = vrot.slane %v404_v63, 2  ;;  %v556_v21 = vsel %vm486_vm2, %v553_v4, %v555_v10  ;;  %v563_v63 = vrot.slane %v9317_v52, 1  ;;  %v210_v10 = vrot.slane %v56_v62, 7 }
  0x56   :  { %v407_v25 = vsel %vm161_vm0, %v210_v10, 0.0 }
  0x58   :  { %688 = vrot.lane.b32.xlu1 %v546_v33, %s8905_s14  ;;  %686 = vrot.lane.b32.xlu0 %v544_v34, %s8905_s14  ;;  %v9302_v33 = vsel %vm161_vm0, 0.0, %v203_v16  ;;  %v898_v34 = vsel %vm828_vm1, %v895_v18, %v897_v20 }
  0x59   :  { %v557_v44 = vrot.slane %v9302_v33, 1  ;;  %v899_v51 = vrot.slane %v9302_v33, 2 }
  0x5b   :  { %v559_v49 = vsel %vm486_vm2, %v557_v44, %v558_v41  ;;  %v901_v2 = vsel %vm828_vm1, %v899_v51, %v900_v45  ;;  %v1325_v51 = vrot.slane %v407_v25, 2 }
  0x5c   :  { %1030 = vrot.lane.b32.xlu1 %v888_v43, %s8904_s13  ;;  %1028 = vrot.lane.b32.xlu0 %v886_v46, %s8904_s13  ;;  %v560_v43 = vrot.slane %v405_v31, 1  ;;  %v902_v46 = vrot.slane %v405_v31, 2 }
  0x5e   :  { %v561_v47 = vsel %vm486_vm2, %v558_v41, %v560_v43  ;;  %v903_v1 = vsel %vm828_vm1, %v900_v45, %v902_v46  ;;  %v1303_v41 = vrot.slane %v407_v25, 1 }
  0x60   :  { %692 = vrot.lane.b32.xlu1 %v551_v58, %s8905_s14  ;;  %690 = vrot.lane.b32.xlu0 %v549_v59, %s8905_s14  ;;  %v406_v58 = vsel %vm161_vm0, %v207_v37, 0.0  ;;  %v9321_v59 = vsel %vm161_vm0, 0.0, %v206_v35 }
  0x61   :  { %v565_v4 = vrot.slane %v406_v58, 1  ;;  %v907_v16 = vrot.slane %v406_v58, 2  ;;  %v904_v20 = vrot.slane %v9321_v59, 2 }
  0x63   :  { %v566_v17 = vsel %vm486_vm2, %v563_v63, %v565_v4  ;;  %v908_v31 = vsel %vm828_vm1, %v905_v14, %v907_v16  ;;  %v906_v37 = vsel %vm828_vm1, %v904_v20, %v905_v14  ;;  %v89_v16 = vld [vmem:[%s13682_s2] sm:$0xff] }
  0x64   :  { %1034 = vrot.lane.b32.xlu1 %v893_v5, %s8904_s13  ;;  %1032 = vrot.lane.b32.xlu0 %v891_v6, %s8904_s13  ;;  %v562_v5 = vrot.slane %v9321_v59, 1  ;;  %v209_v6 = vrot.slane %v55_v60, 7 }
  0x66   :  { %v564_v18 = vsel %vm486_vm2, %v562_v5, %v563_v63  ;;  %v9348_v24 = vsel %vm161_vm0, %v209_v6, %v210_v10  ;;  %v9352_v26 = vsel %vm161_vm0, 0.0, %v209_v6  ;;  %v59_v5 = vld [vmem:[%s13681_s0 + $0x110] sm:$0xff]  ;;  %v60_v6 = vld [vmem:[%s13681_s0 + $0x118] sm:$0xff] }
  0x67   :  { %v1300_v43 = vrot.slane %v9352_v26, 1  ;;  %v1322_v62 = vrot.slane %v9352_v26, 2 }
  0x68   :  { %696 = vrot.lane.b32.xlu1 %v556_v21, %s8905_s14  ;;  %694 = vrot.lane.b32.xlu0 %v554_v23, %s8905_s14  ;;  %v57_v21 = vld [vmem:[%s13681_s0 + $0x100] sm:$0xff]  ;;  %v58_v23 = vld [vmem:[%s13681_s0 + $0x108] sm:$0xff] }
  0x69   :  { %v213_v35 = vrot.slane %v58_v23, 7 }
  0x6b   :  { %v408_v63 = vsel %vm161_vm0, %v213_v35, 0.0 }
  0x6c   :  { %1038 = vrot.lane.b32.xlu1 %v898_v34, %s8904_s13  ;;  %1036 = vrot.lane.b32.xlu0 %v896_v39, %s8904_s13  ;;  %v212_v34 = vrot.slane %v57_v21, 7  ;;  %v1301_v39 = vrot.slane %v9348_v24, 1 }
  0x6e   :  { %v9369_v58 = vsel %vm161_vm0, %v212_v34, %v213_v35  ;;  %v1304_v60 = vsel %vm486_vm2, %v1301_v39, %v1303_v41  ;;  %v9378_v4 = vsel %vm161_vm0, 0.0, %v212_v34  ;;  %v216_v34 = vrot.slane %v60_v6, 7 }
  0x6f   :  { %v568_v14 = vrot.slane %v9369_v58, 1  ;;  %v567_v25 = vrot.slane %v9378_v4, 1  ;;  %v912_v41 = vrot.slane %v408_v63, 2 }
  0x70   :  { %700 = vrot.lane.b32.xlu1 %v561_v47, %s8905_s14  ;;  %698 = vrot.lane.b32.xlu0 %v559_v49, %s8905_s14  ;;  %v1323_v49 = vrot.slane %v9348_v24, 2 }
  0x72   :  { %v1326_v20 = vsel %vm828_vm1, %v1323_v49, %v1325_v51  ;;  %v1324_v23 = vsel %vm828_vm1, %v1322_v62, %v1323_v49  ;;  %v61_v49 = vld [vmem:[%s13681_s0 + $0x120] sm:$0xff]  ;;  %v62_v51 = vld [vmem:[%s13681_s0 + $0x128] sm:$0xff] }
  0x74   :  { %1042 = vrot.lane.b32.xlu1 %v903_v1, %s8904_s13  ;;  %1040 = vrot.lane.b32.xlu0 %v901_v2, %s8904_s13 }
  0x78   :  { %704 = vrot.lane.b32.xlu1 %v566_v17, %s8905_s14  ;;  %702 = vrot.lane.b32.xlu0 %v564_v18, %s8905_s14  ;;  %v90_v17 = vld [vmem:[%s13682_s2 + $0x8] sm:$0xf] }
  0x79   :  { %v8270_v21 = vpack.c.bf16 %v90_v17, %v89_v16 }
  0x7a   :  { %v989_v44 = vpop.permute.xlu1 %988  ;;  %v647_v45 = vpop.permute.xlu0 %646 }
  0x7b   :  { %v1173_v46 = vsel %vm1170_vm6, %v8967_v9, %v647_v45  ;;  %v1302_v9 = vsel %vm486_vm2, %v1300_v43, %v1301_v39  ;;  %8272 = vmatprep.subr.msk.bf16.mxu0 %vm9152_vm5, %v8270_v21  ;;  %v910_v39 = vrot.slane %v9369_v58, 2  ;;  %v909_v45 = vrot.slane %v9378_v4, 2 }
  0x7c   :  { %1046 = vrot.lane.b32.xlu1 %v908_v31, %s8904_s13  ;;  %1044 = vrot.lane.b32.xlu0 %v906_v37, %s8904_s13  ;;  %v9365_v47 = vsel %vm1233_vm7, %v1173_v46, %v989_v44  ;;  %v215_v31 = vrot.slane %v59_v5, 7  ;;  %v569_v44 = vsel %vm486_vm2, %v567_v25, %v568_v14 }
  0x7d   :  { %7668 = vmatprep.mubr.msk.f32.mxu0 %vm1352_vm8, %v9365_v47 }
  0x7e   :  { %v991_v1 = vpop.permute.xlu1 %990  ;;  %v649_v2 = vpop.permute.xlu0 %648  ;;  %v9416_v46 = vsel %vm161_vm0, %v215_v31, %v216_v34 }
  0x7f   :  { %v1174_v10 = vsel %vm1170_vm6, %v8964_v8, %v649_v2  ;;  %v570_v8 = vrot.slane %v408_v63, 1  ;;  %v9430_v2 = vsel %vm161_vm0, 0.0, %v215_v31  ;;  %v573_v16 = vrot.slane %v9416_v46, 1 }
  0x80   :  { %1312 = vrot.lane.b32.xlu1 %v1304_v60, %s8905_s14  ;;  %1310 = vrot.lane.b32.xlu0 %v1302_v9, %s8905_s14  ;;  %v9398_v18 = vsel %vm1233_vm7, %v1174_v10, %v991_v1  ;;  %v409_v1 = vsel %vm161_vm0, %v216_v34, 0.0  ;;  %v219_v10 = vrot.slane %v62_v51, 7 }
  0x81   :  { %7669 = vmatmul.mubr.msk.f32.vlgmr.msra.gmra.mrb[0].mxu0 %vm1352_vm8, %v9398_v18  ;;  %v571_v43 = vsel %vm486_vm2, %v568_v14, %v570_v8  ;;  %v911_v14 = vsel %vm828_vm1, %v909_v45, %v910_v39  ;;  %v575_v17 = vrot.slane %v409_v1, 1 }
  0x82   :  { %v653_v35 = vpop.permute.xlu1 %652  ;;  %v651_v37 = vpop.permute.xlu0 %650  ;;  %8275 = vmatpush3.bf16.msk.msra.mxu0 %vm9152_vm5, %v8270_v21 }
  0x83   :  { %v1176_v60 = vsel %vm1170_vm6, %v8981_v19, %v653_v35  ;;  %v1175_v9 = vsel %vm1170_vm6, %v8971_v11, %v651_v37  ;;  %v913_v19 = vsel %vm828_vm1, %v910_v39, %v912_v41  ;;  %v218_v11 = vrot.slane %v61_v49, 7  ;;  %v63_v39 = vld [vmem:[%s13681_s0 + $0x130] sm:$0xff] }
  0x84   :  { %1334 = vrot.lane.b32.xlu1 %v1326_v20, %s8904_s13  ;;  %1332 = vrot.lane.b32.xlu0 %v1324_v23, %s8904_s13  ;;  %v572_v20 = vrot.slane %v9430_v2, 1  ;;  %v915_v23 = vrot.slane %v9416_v46, 2  ;;  %v576_v31 = vsel %vm486_vm2, %v573_v16, %v575_v17  ;;  %v917_v35 = vrot.slane %v409_v1, 2 }
  0x85   :  { %v9452_v25 = vsel %vm161_vm0, %v218_v11, %v219_v10  ;;  %v914_v37 = vrot.slane %v9430_v2, 2  ;;  %v410_v49 = vsel %vm161_vm0, %v219_v10, 0.0  ;;  %v9466_v51 = vsel %vm161_vm0, 0.0, %v218_v11 }
  0x86   :  { %v995_v62 = vpop.permute.xlu1 %994  ;;  %v993_v63 = vpop.permute.xlu0 %992  ;;  %v574_v34 = vsel %vm486_vm2, %v572_v20, %v573_v16  ;;  %v577_v11 = vrot.slane %v9466_v51, 1  ;;  %v920_v17 = vrot.slane %v9452_v25, 2  ;;  %v922_v20 = vrot.slane %v410_v49, 2 }
  0x87   :  { %v9433_v5 = vsel %vm1233_vm7, %v1176_v60, %v995_v62  ;;  %v9436_v6 = vsel %vm1233_vm7, %v1175_v9, %v993_v63  ;;  %v221_v62 = vrot.slane %v63_v39, 7  ;;  %v918_v63 = vsel %vm828_vm1, %v915_v23, %v917_v35  ;;  %v66_v35 = vld [vmem:[%s13681_s0 + $0x148] sm:$0xff] }
  0x88   :  { %708 = vrot.lane.b32.xlu1 %v571_v43, %s8905_s14  ;;  %706 = vrot.lane.b32.xlu0 %v569_v44, %s8905_s14  ;;  %v916_v1 = vsel %vm828_vm1, %v914_v37, %v915_v23  ;;  %v919_v23 = vrot.slane %v9466_v51, 2 }
  0x89   :  { %7671 = vmatprep.mubr.msk.f32.mxu0 %vm1352_vm8, %v9436_v6 }
  0x8a   :  { %7672 = vmatmul.mubr.msk.f32.gmra.mrb[2].mxu0 %vm1352_vm8, %v9433_v5  ;;  %v657_v8 = vpop.permute.xlu1 %656  ;;  %v655_v21 = vpop.permute.xlu0 %654 }
  0x8b   :  { %v1178_v41 = vsel %vm1170_vm6, %v9002_v36, %v657_v8  ;;  %v1177_v43 = vsel %vm1170_vm6, %v9006_v38, %v655_v21  ;;  %v64_v36 = vld [vmem:[%s13681_s0 + $0x138] sm:$0xff]  ;;  %v578_v38 = vrot.slane %v9452_v25, 1 }
  0x8c   :  { %1050 = vrot.lane.b32.xlu1 %v913_v19, %s8904_s13  ;;  %1048 = vrot.lane.b32.xlu0 %v911_v14, %s8904_s13  ;;  %v580_v19 = vrot.slane %v410_v49, 1  ;;  %v222_v16 = vrot.slane %v64_v36, 7 }
  0x8d   :  { %v579_v21 = vsel %vm486_vm2, %v577_v11, %v578_v38 }
  0x8e   :  { %v999_v44 = vpop.permute.xlu1 %998  ;;  %v997_v45 = vpop.permute.xlu0 %996  ;;  %v581_v8 = vsel %vm486_vm2, %v578_v38, %v580_v19  ;;  %v225_v38 = vrot.slane %v66_v35, 7 }
  0x8f   :  { %v9469_v60 = vsel %vm1233_vm7, %v1178_v41, %v999_v44  ;;  %v9472_v9 = vsel %vm1233_vm7, %v1177_v43, %v997_v45  ;;  %v9507_v44 = vsel %vm161_vm0, %v221_v62, %v222_v16  ;;  %v411_v45 = vsel %vm161_vm0, %v222_v16, 0.0 }
  0x90   :  { %712 = vrot.lane.b32.xlu1 %v576_v31, %s8905_s14  ;;  %710 = vrot.lane.b32.xlu0 %v574_v34, %s8905_s14  ;;  %v9494_v31 = vsel %vm161_vm0, 0.0, %v221_v62  ;;  %v65_v34 = vld [vmem:[%s13681_s0 + $0x140] sm:$0xff]  ;;  %v921_v62 = vsel %vm828_vm1, %v919_v23, %v920_v17  ;;  %v927_v16 = vrot.slane %v411_v45, 2  ;;  %v412_v23 = vsel %vm161_vm0, %v225_v38, 0.0 }
  0x91   :  { %7674 = vmatprep.mubr.msk.f32.mxu0 %vm1352_vm8, %v9472_v9  ;;  %v582_v19 = vrot.slane %v9494_v31, 1 }
  0x92   :  { %7675 = vmatmul.mubr.msk.f32.gmra.mrb[4].mxu0 %vm1352_vm8, %v9469_v60  ;;  %v661_v10 = vpop.permute.xlu1 %660  ;;  %v659_v14 = vpop.permute.xlu0 %658 }
  0x93   :  { %v1180_v37 = vsel %vm1170_vm6, %v9027_v53, %v661_v10  ;;  %v1179_v39 = vsel %vm1170_vm6, %v9031_v55, %v659_v14  ;;  %v923_v53 = vsel %vm828_vm1, %v920_v17, %v922_v20  ;;  %v224_v55 = vrot.slane %v65_v34, 7 }
  0x94   :  { %1054 = vrot.lane.b32.xlu1 %v918_v63, %s8904_s13  ;;  %1052 = vrot.lane.b32.xlu0 %v916_v1, %s8904_s13  ;;  %v583_v63 = vrot.slane %v9507_v44, 1  ;;  %v585_v1 = vrot.slane %v411_v45, 1  ;;  %v925_v14 = vrot.slane %v9507_v44, 2  ;;  %v924_v20 = vrot.slane %v9494_v31, 2  ;;  %v68_v45 = vld [vmem:[%s13681_s0 + $0x158] sm:$0xff] }
  0x96   :  { %v1003_v41 = vpop.permute.xlu1 %1002  ;;  %v1001_v43 = vpop.permute.xlu0 %1000  ;;  %v586_v17 = vsel %vm486_vm2, %v583_v63, %v585_v1 }
  0x97   :  { %v9511_v49 = vsel %vm1233_vm7, %v1180_v37, %v1003_v41  ;;  %v9514_v36 = vsel %vm1233_vm7, %v1179_v39, %v1001_v43  ;;  %v9541_v41 = vsel %vm161_vm0, 0.0, %v224_v55  ;;  %v67_v43 = vld [vmem:[%s13681_s0 + $0x150] sm:$0xff] }
  0x98   :  { %716 = vrot.lane.b32.xlu1 %v581_v8, %s8905_s14  ;;  %714 = vrot.lane.b32.xlu0 %v579_v21, %s8905_s14  ;;  %v584_v8 = vsel %vm486_vm2, %v582_v19, %v583_v63  ;;  %v9533_v21 = vsel %vm161_vm0, %v224_v55, %v225_v38  ;;  %v590_v38 = vrot.slane %v412_v23, 1  ;;  %v587_v63 = vrot.slane %v9541_v41, 1 }
  0x99   :  { %7677 = vmatprep.mubr.msk.f32.mxu0 %vm1352_vm8, %v9514_v36  ;;  %v588_v55 = vrot.slane %v9533_v21, 1  ;;  %v227_v1 = vrot.slane %v67_v43, 7  ;;  %v228_v19 = vrot.slane %v68_v45, 7 }
  0x9a   :  { %7678 = vmatmul.mubr.msk.f32.gmra.mrb[6].mxu0 %vm1352_vm8, %v9511_v49  ;;  %v665_v11 = vpop.permute.xlu1 %664  ;;  %v663_v10 = vpop.permute.xlu0 %662 }
  0x9b   :  { %v1182_v34 = vsel %vm1170_vm6, %v9055_v7, %v665_v11  ;;  %v1181_v35 = vsel %vm1170_vm6, %v9059_v12, %v663_v10  ;;  %v928_v12 = vsel %vm828_vm1, %v925_v14, %v927_v16  ;;  %v930_v16 = vrot.slane %v9533_v21, 2 }
  0x9c   :  { %1058 = vrot.lane.b32.xlu1 %v923_v53, %s8904_s13  ;;  %1056 = vrot.lane.b32.xlu0 %v921_v62, %s8904_s13  ;;  %v926_v62 = vsel %vm828_vm1, %v924_v20, %v925_v14  ;;  %v589_v14 = vsel %vm486_vm2, %v587_v63, %v588_v55  ;;  %v929_v20 = vrot.slane %v9541_v41, 2 }
  0x9e   :  { %v1007_v37 = vpop.permute.xlu1 %1006  ;;  %v1005_v39 = vpop.permute.xlu0 %1004 }
  0x9f   :  { %v9550_v53 = vsel %vm1233_vm7, %v1182_v34, %v1007_v37  ;;  %v9553_v7 = vsel %vm1233_vm7, %v1181_v35, %v1005_v39  ;;  %v9572_v34 = vsel %vm161_vm0, %v227_v1, %v228_v19  ;;  %v69_v35 = vld [vmem:[%s13681_s0 + $0x160] sm:$0xff]  ;;  %v70_v37 = vld [vmem:[%s13681_s0 + $0x168] sm:$0xff] }
  0xa0   :  { %13858 = vst [vmem:[#allocation2_spill] sm:$0xff] %v9550_v53  ;;  %13859 = vst [vmem:[#allocation3_spill] sm:$0xff] %v9553_v7  ;;  %720 = vrot.lane.b32.xlu1 %v586_v17, %s8905_s14  ;;  %718 = vrot.lane.b32.xlu0 %v584_v8, %s8905_s14  ;;  %v932_v17 = vrot.slane %v412_v23, 2  ;;  %v591_v8 = vsel %vm486_vm2, %v588_v55, %v590_v38  ;;  %v9586_v55 = vsel %vm161_vm0, 0.0, %v227_v1  ;;  %v231_v63 = vrot.slane %v70_v37, 7 }
  0xa1   :  { %7680 = vmatprep.mubr.msk.f32.mxu0 %vm1352_vm8, %v9553_v7  ;;  %v931_v1 = vsel %vm828_vm1, %v929_v20, %v930_v16  ;;  %v934_v37 = vrot.slane %v9586_v55, 2  ;;  %v93_v7 = vld [vmem:[%s13682_s2 + $0x20] sm:$0xff] }
  0xa2   :  { %7681 = vmatmul.mubr.msk.f32.gmra.mrb[8].mxu0 %vm1352_vm8, %v9550_v53  ;;  %v669_v11 = vpop.permute.xlu1 %668  ;;  %v667_v10 = vpop.permute.xlu0 %666 }
  0xa3   :  { %v1184_v23 = vsel %vm1170_vm6, %v9080_v28, %v669_v11  ;;  %v1183_v39 = vsel %vm1170_vm6, %v9077_v27, %v667_v10  ;;  %v933_v28 = vsel %vm828_vm1, %v930_v16, %v932_v17  ;;  %v230_v27 = vrot.slane %v69_v35, 7 }
  0xa4   :  { %1062 = vrot.lane.b32.xlu1 %v928_v12, %s8904_s13  ;;  %1060 = vrot.lane.b32.xlu0 %v926_v62, %s8904_s13  ;;  %v413_v12 = vsel %vm161_vm0, %v228_v19, 0.0  ;;  %v593_v19 = vrot.slane %v9572_v34, 1  ;;  %v592_v10 = vrot.slane %v9586_v55, 1  ;;  %v935_v17 = vrot.slane %v9572_v34, 2 }
  0xa5   :  { %v595_v11 = vrot.slane %v413_v12, 1  ;;  %v937_v35 = vrot.slane %v413_v12, 2 }
  0xa6   :  { %v1011_v43 = vpop.permute.xlu1 %1010  ;;  %v1009_v45 = vpop.permute.xlu0 %1008  ;;  %v594_v20 = vsel %vm486_vm2, %v592_v10, %v593_v19  ;;  %v936_v10 = vsel %vm828_vm1, %v934_v37, %v935_v17 }
  0xa7   :  { %v9589_v38 = vsel %vm1233_vm7, %v1184_v23, %v1011_v43  ;;  %v9592_v62 = vsel %vm1233_vm7, %v1183_v39, %v1009_v45  ;;  %v596_v16 = vsel %vm486_vm2, %v593_v19, %v595_v11  ;;  %v71_v39 = vld [vmem:[%s13681_s0 + $0x170] sm:$0xff]  ;;  %v9622_v11 = vsel %vm161_vm0, 0.0, %v230_v27  ;;  %v13886_v22 = vld [vmem:[#allocation3_spill] sm:$0xff] }
  0xa8   :  { %13860 = vst [vmem:[#allocation4_spill] sm:$0xff] %v9589_v38  ;;  %13861 = vst [vmem:[#allocation5_spill] sm:$0xff] %v9592_v62  ;;  %724 = vrot.lane.b32.xlu1 %v591_v8, %s8905_s14  ;;  %722 = vrot.lane.b32.xlu0 %v589_v14, %s8905_s14  ;;  %v9608_v14 = vsel %vm161_vm0, %v230_v27, %v231_v63  ;;  %v938_v27 = vsel %vm828_vm1, %v935_v17, %v937_v35  ;;  %v939_v37 = vrot.slane %v9622_v11, 2 }
  0xa9   :  { %7683 = vmatprep.mubr.msk.f32.mxu0 %vm1352_vm8, %v9592_v62 }
  0xaa   :  { %7684 = vmatmul.mubr.msk.f32.gmra.mrb[10].mxu0 %vm1352_vm8, %v9589_v38  ;;  %v673_v8 = vpop.permute.xlu1 %672  ;;  %v671_v23 = vpop.permute.xlu0 %670  ;;  %v414_v38 = vsel %vm161_vm0, %v231_v63, 0.0  ;;  %v233_v63 = vrot.slane %v71_v39, 7 }
  0xab   :  { %v1186_v43 = vsel %vm1170_vm6, %v9108_v48, %v673_v8  ;;  %v1185_v45 = vsel %vm1170_vm6, %v9112_v50, %v671_v23  ;;  %v72_v48 = vld [vmem:[%s13681_s0 + $0x178] sm:$0xff]  ;;  %v598_v50 = vrot.slane %v9608_v14, 1  ;;  %v600_v8 = vrot.slane %v414_v38, 1 }
  0xac   :  { %1066 = vrot.lane.b32.xlu1 %v933_v28, %s8904_s13  ;;  %1064 = vrot.lane.b32.xlu0 %v931_v1, %s8904_s13  ;;  %v597_v23 = vrot.slane %v9622_v11, 1  ;;  %v942_v39 = vrot.slane %v414_v38, 2 }
  0xad   :  { %v601_v35 = vsel %vm486_vm2, %v598_v50, %v600_v8 }
  0xae   :  { %v1015_v28 = vpop.permute.xlu1 %1014  ;;  %v1013_v1 = vpop.permute.xlu0 %1012  ;;  %v599_v17 = vsel %vm486_vm2, %v597_v23, %v598_v50 }
  0xaf   :  { %v9625_v12 = vsel %vm1233_vm7, %v1186_v43, %v1015_v28  ;;  %v9628_v19 = vsel %vm1233_vm7, %v1185_v45, %v1013_v1  ;;  %v234_v45 = vrot.slane %v72_v48, 7  ;;  %v9650_v28 = vsel %vm161_vm0, 0.0, %v233_v63  ;;  %v73_v1 = vld [vmem:[%s13681_s0 + $0x180] sm:$0xff]  ;;  %v74_v48 = vld [vmem:[%s13681_s0 + $0x188] sm:$0xff] }
  0xb0   :  { %13862 = vst [vmem:[#allocation6_spill] sm:$0xff] %v9625_v12  ;;  %13863 = vst [vmem:[#allocation7_spill] sm:$0xff] %v9628_v19  ;;  %728 = vrot.lane.b32.xlu1 %v596_v16, %s8905_s14  ;;  %726 = vrot.lane.b32.xlu0 %v594_v20, %s8905_s14  ;;  %v940_v20 = vrot.slane %v9608_v14, 2 }
  0xb1   :  { %7686 = vmatprep.mubr.msk.f32.mxu0 %vm1352_vm8, %v9628_v19  ;;  %v9663_v8 = vsel %vm161_vm0, %v233_v63, %v234_v45  ;;  %v415_v23 = vsel %vm161_vm0, %v234_v45, 0.0 }
  0xb2   :  { %7687 = vmatmul.mubr.msk.f32.gmra.mrb[12].mxu0 %vm1352_vm8, %v9625_v12  ;;  %v677_v43 = vpop.permute.xlu1 %676  ;;  %v675_v16 = vpop.permute.xlu0 %674  ;;  %v941_v63 = vsel %vm828_vm1, %v939_v37, %v940_v20  ;;  %v605_v45 = vrot.slane %v415_v23, 1 }
  0xb3   :  { %v1188_v38 = vsel %vm1170_vm6, %v9124_v61, %v677_v43  ;;  %v943_v61 = vsel %vm828_vm1, %v940_v20, %v942_v39  ;;  %v237_v43 = vrot.slane %v74_v48, 7  ;;  %v945_v39 = vrot.slane %v9663_v8, 2 }
  0xb4   :  { %1070 = vrot.lane.b32.xlu1 %v938_v27, %s8904_s13  ;;  %1068 = vrot.lane.b32.xlu0 %v936_v10, %s8904_s13  ;;  %v1187_v27 = vsel %vm1170_vm6, %v9131_v3, %v675_v16  ;;  %v236_v3 = vrot.slane %v73_v1, 7  ;;  %v603_v16 = vrot.slane %v9663_v8, 1  ;;  %v944_v1 = vrot.slane %v9650_v28, 2 }
  0xb6   :  { %v1019_v50 = vpop.permute.xlu1 %1018  ;;  %v1017_v10 = vpop.permute.xlu0 %1016  ;;  %v606_v20 = vsel %vm486_vm2, %v603_v16, %v605_v45  ;;  %v9689_v48 = vsel %vm161_vm0, %v236_v3, %v237_v43  ;;  %v76_v45 = vld [vmem:[%s13681_s0 + $0x198] sm:$0xff] }
  0xb7   :  { %v9667_v12 = vsel %vm1233_vm7, %v1188_v38, %v1019_v50  ;;  %v9670_v19 = vsel %vm1233_vm7, %v1187_v27, %v1017_v10  ;;  %v602_v38 = vrot.slane %v9650_v28, 1  ;;  %v416_v50 = vsel %vm161_vm0, %v237_v43, 0.0 }
  0xb8   :  { %13864 = vst [vmem:[#allocation8_spill] sm:$0xff] %v9667_v12  ;;  %13865 = vst [vmem:[#allocation9_spill] sm:$0xff] %v9670_v19  ;;  %732 = vrot.lane.b32.xlu1 %v601_v35, %s8905_s14  ;;  %730 = vrot.lane.b32.xlu0 %v599_v17, %s8905_s14  ;;  %v947_v17 = vrot.slane %v415_v23, 2  ;;  %v9697_v23 = vsel %vm161_vm0, 0.0, %v236_v3  ;;  %v608_v3 = vrot.slane %v9689_v48, 1 }
  0xb9   :  { %7689 = vmatprep.mubr.msk.f32.mxu0 %vm1352_vm8, %v9670_v19  ;;  %v604_v37 = vsel %vm486_vm2, %v602_v38, %v603_v16  ;;  %v75_v16 = vld [vmem:[%s13681_s0 + $0x190] sm:$0xff]  ;;  %v610_v38 = vrot.slane %v416_v50, 1 }
  0xba   :  { %7690 = vmatmul.mubr.msk.f32.gmra.mrb[14].mxu0 %vm1352_vm8, %v9667_v12  ;;  %v681_v35 = vpop.permute.xlu1 %680  ;;  %v679_v27 = vpop.permute.xlu0 %678 }
  0xbb   :  { %v1190_v10 = vsel %vm1170_vm6, %v9165_v30, %v681_v35  ;;  %v946_v35 = vsel %vm828_vm1, %v944_v1, %v945_v39  ;;  %v949_v1 = vrot.slane %v9697_v23, 2 }
  0xbc   :  { %1074 = vrot.lane.b32.xlu1 %v943_v61, %s8904_s13  ;;  %1072 = vrot.lane.b32.xlu0 %v941_v63, %s8904_s13  ;;  %v1189_v61 = vsel %vm1170_vm6, %v9169_v32, %v679_v27  ;;  %v948_v32 = vsel %vm828_vm1, %v945_v39, %v947_v17  ;;  %v607_v27 = vrot.slane %v9697_v23, 1  ;;  %v950_v17 = vrot.slane %v9689_v48, 2 }
  0xbe   :  { %v1023_v63 = vpop.permute.xlu1 %1022  ;;  %v1021_v12 = vpop.permute.xlu0 %1020  ;;  %v609_v39 = vsel %vm486_vm2, %v607_v27, %v608_v3 }
  0xbf   :  { %v9706_v43 = vsel %vm1233_vm7, %v1190_v10, %v1023_v63  ;;  %v9709_v30 = vsel %vm1233_vm7, %v1189_v61, %v1021_v12  ;;  %v239_v10 = vrot.slane %v75_v16, 7  ;;  %v240_v63 = vrot.slane %v76_v45, 7  ;;  %v77_v45 = vld [vmem:[%s13681_s0 + $0x1a0] sm:$0xff] }
  0xc0   :  { %13866 = vst [vmem:[#allocation10_spill] sm:$0xff] %v9706_v43  ;;  %13867 = vst [vmem:[#allocation11_spill] sm:$0xff] %v9709_v30  ;;  %736 = vrot.lane.b32.xlu1 %v606_v20, %s8905_s14  ;;  %734 = vrot.lane.b32.xlu0 %v604_v37, %s8905_s14  ;;  %v952_v37 = vrot.slane %v416_v50, 2  ;;  %v611_v61 = vsel %vm486_vm2, %v608_v3, %v610_v38 }
  0xc1   :  { %7692 = vmatprep.mubr.msk.f32.mxu0 %vm1352_vm8, %v9709_v30  ;;  %v9728_v16 = vsel %vm161_vm0, %v239_v10, %v240_v63  ;;  %v417_v27 = vsel %vm161_vm0, %v240_v63, 0.0 }
  0xc2   :  { %7693 = vmatmul.mubr.msk.f32.gmra.mrb[16].mxu0 %vm1352_vm8, %v9706_v43  ;;  %v685_v12 = vpop.permute.xlu1 %684  ;;  %v683_v20 = vpop.permute.xlu0 %682  ;;  %v9742_v43 = vsel %vm161_vm0, 0.0, %v239_v10  ;;  %v951_v10 = vsel %vm828_vm1, %v949_v1, %v950_v17  ;;  %v613_v63 = vrot.slane %v9728_v16, 1 }
  0xc3   :  { %v1192_v50 = vsel %vm1170_vm6, %v9198_v54, %v685_v12  ;;  %v1191_v38 = vsel %vm1170_vm6, %v9202_v57, %v683_v20  ;;  %v953_v54 = vsel %vm828_vm1, %v950_v17, %v952_v37  ;;  %v242_v57 = vrot.slane %v77_v45, 7 }
  0xc4   :  { %1078 = vrot.lane.b32.xlu1 %v948_v32, %s8904_s13  ;;  %1076 = vrot.lane.b32.xlu0 %v946_v35, %s8904_s13  ;;  %v78_v32 = vld [vmem:[%s13681_s0 + $0x1a8] sm:$0xff]  ;;  %v615_v20 = vrot.slane %v417_v27, 1  ;;  %v955_v37 = vrot.slane %v9728_v16, 2  ;;  %v957_v45 = vrot.slane %v417_v27, 2 }
  0xc5   :  { %v243_v12 = vrot.slane %v78_v32, 7  ;;  %v954_v32 = vrot.slane %v9742_v43, 2 }
  0xc6   :  { %v1027_v3 = vpop.permute.xlu1 %1026  ;;  %v1025_v35 = vpop.permute.xlu0 %1024  ;;  %v616_v17 = vsel %vm486_vm2, %v613_v63, %v615_v20  ;;  %v9778_v20 = vsel %vm161_vm0, 0.0, %v242_v57 }
  0xc7   :  { %v9745_v30 = vsel %vm1233_vm7, %v1192_v50, %v1027_v3  ;;  %v9748_v19 = vsel %vm1233_vm7, %v1191_v38, %v1025_v35  ;;  %v612_v50 = vrot.slane %v9742_v43, 1  ;;  %v79_v3 = vld [vmem:[%s13681_s0 + $0x1b0] sm:$0xff] }
  0xc8   :  { %13868 = vst [vmem:[#allocation12_spill] sm:$0xff] %v9745_v30  ;;  %13869 = vst [vmem:[#allocation13_spill] sm:$0xff] %v9748_v19  ;;  %740 = vrot.lane.b32.xlu1 %v611_v61, %s8905_s14  ;;  %738 = vrot.lane.b32.xlu0 %v609_v39, %s8905_s14  ;;  %v9764_v39 = vsel %vm161_vm0, %v242_v57, %v243_v12  ;;  %v958_v57 = vsel %vm828_vm1, %v955_v37, %v957_v45 }
  0xc9   :  { %7695 = vmatprep.mubr.msk.f32.mxu0 %vm1352_vm8, %v9748_v19  ;;  %v614_v1 = vsel %vm486_vm2, %v612_v50, %v613_v63  ;;  %v418_v19 = vsel %vm161_vm0, %v243_v12, 0.0  ;;  %v245_v12 = vrot.slane %v79_v3, 7  ;;  %v956_v50 = vsel %vm828_vm1, %v954_v32, %v955_v37 }
  0xca   :  { %7696 = vmatmul.mubr.msk.f32.gmra.mrb[18].mxu0 %vm1352_vm8, %v9745_v30  ;;  %v689_v61 = vpop.permute.xlu1 %688  ;;  %v687_v38 = vpop.permute.xlu0 %686  ;;  %v962_v3 = vrot.slane %v418_v19, 2  ;;  %v959_v32 = vrot.slane %v9778_v20, 2 }
  0xcb   :  { %v1194_v35 = vsel %vm1170_vm6, %v9217_v13, %v689_v61  ;;  %v80_v13 = vld [vmem:[%s13681_s0 + $0x1b8] sm:$0xff]  ;;  %v617_v61 = vrot.slane %v9778_v20, 1 }
  0xcc   :  { %1082 = vrot.lane.b32.xlu1 %v953_v54, %s8904_s13  ;;  %1080 = vrot.lane.b32.xlu0 %v951_v10, %s8904_s13  ;;  %v1193_v54 = vsel %vm1170_vm6, %v9221_v15, %v687_v38  ;;  %v618_v15 = vrot.slane %v9764_v39, 1 }
  0xce   :  { %v1031_v10 = vpop.permute.xlu1 %1030  ;;  %v1029_v30 = vpop.permute.xlu0 %1028  ;;  %v619_v37 = vsel %vm486_vm2, %v617_v61, %v618_v15 }
  0xcf   :  { %v9781_v27 = vsel %vm1233_vm7, %v1194_v35, %v1031_v10  ;;  %v9784_v63 = vsel %vm1233_vm7, %v1193_v54, %v1029_v30  ;;  %v620_v30 = vrot.slane %v418_v19, 1  ;;  %v246_v35 = vrot.slane %v80_v13, 7  ;;  %v81_v10 = vld [vmem:[%s13681_s0 + $0x1c0] sm:$0xff]  ;;  %v82_v13 = vld [vmem:[%s13681_s0 + $0x1c8] sm:$0xff] }
  0xd0   :  { %13870 = vst [vmem:[#allocation14_spill] sm:$0xff] %v9781_v27  ;;  %13871 = vst [vmem:[#allocation15_spill] sm:$0xff] %v9784_v63  ;;  %744 = vrot.lane.b32.xlu1 %v616_v17, %s8905_s14  ;;  %742 = vrot.lane.b32.xlu0 %v614_v1, %s8905_s14  ;;  %v960_v1 = vrot.slane %v9764_v39, 2  ;;  %v9806_v54 = vsel %vm161_vm0, 0.0, %v245_v12 }
  0xd1   :  { %7698 = vmatprep.mubr.msk.f32.mxu0 %vm1352_vm8, %v9784_v63  ;;  %v621_v45 = vsel %vm486_vm2, %v618_v15, %v620_v30  ;;  %v9819_v30 = vsel %vm161_vm0, %v245_v12, %v246_v35  ;;  %v419_v61 = vsel %vm161_vm0, %v246_v35, 0.0 }
  0xd2   :  { %7699 = vmatmul.mubr.msk.f32.gmra.mrb[20].mxu0 %vm1352_vm8, %v9781_v27  ;;  %v693_v38 = vpop.permute.xlu1 %692  ;;  %v691_v17 = vpop.permute.xlu0 %690  ;;  %v961_v12 = vsel %vm828_vm1, %v959_v32, %v960_v1  ;;  %v625_v35 = vrot.slane %v419_v61, 1 }
  0xd3   :  { %v1196_v19 = vsel %vm1170_vm6, %v9248_v40, %v693_v38  ;;  %v963_v40 = vsel %vm828_vm1, %v960_v1, %v962_v3  ;;  %v249_v38 = vrot.slane %v82_v13, 7  ;;  %v965_v3 = vrot.slane %v9819_v30, 2 }
  0xd4   :  { %1086 = vrot.lane.b32.xlu1 %v958_v57, %s8904_s13  ;;  %1084 = vrot.lane.b32.xlu0 %v956_v50, %s8904_s13  ;;  %v1195_v57 = vsel %vm1170_vm6, %v9252_v42, %v691_v17  ;;  %v248_v42 = vrot.slane %v81_v10, 7  ;;  %v623_v17 = vrot.slane %v9819_v30, 1  ;;  %v964_v10 = vrot.slane %v9806_v54, 2 }
  0xd6   :  { %v1035_v15 = vpop.permute.xlu1 %1034  ;;  %v1033_v50 = vpop.permute.xlu0 %1032  ;;  %v626_v1 = vsel %vm486_vm2, %v623_v17, %v625_v35  ;;  %v9845_v13 = vsel %vm161_vm0, %v248_v42, %v249_v38  ;;  %v84_v35 = vld [vmem:[%s13681_s0 + $0x1d8] sm:$0xff] }
  0xd7   :  { %v9823_v27 = vsel %vm1233_vm7, %v1196_v19, %v1035_v15  ;;  %v9826_v63 = vsel %vm1233_vm7, %v1195_v57, %v1033_v50  ;;  %v622_v19 = vrot.slane %v9806_v54, 1  ;;  %v420_v15 = vsel %vm161_vm0, %v249_v38, 0.0 }
  0xd8   :  { %13872 = vst [vmem:[#allocation16_spill] sm:$0xff] %v9823_v27  ;;  %13873 = vst [vmem:[#allocation17_spill] sm:$0xff] %v9826_v63  ;;  %748 = vrot.lane.b32.xlu1 %v621_v45, %s8905_s14  ;;  %746 = vrot.lane.b32.xlu0 %v619_v37, %s8905_s14  ;;  %v967_v37 = vrot.slane %v419_v61, 2  ;;  %v9853_v61 = vsel %vm161_vm0, 0.0, %v248_v42  ;;  %v628_v42 = vrot.slane %v9845_v13, 1 }
  0xd9   :  { %7701 = vmatprep.mubr.msk.f32.mxu0 %vm1352_vm8, %v9826_v63  ;;  %v624_v32 = vsel %vm486_vm2, %v622_v19, %v623_v17  ;;  %v83_v17 = vld [vmem:[%s13681_s0 + $0x1d0] sm:$0xff]  ;;  %v630_v19 = vrot.slane %v420_v15, 1 }
  0xda   :  { %7702 = vmatmul.mubr.msk.f32.gmra.mrb[22].mxu0 %vm1352_vm8, %v9823_v27  ;;  %v697_v45 = vpop.permute.xlu1 %696  ;;  %v695_v57 = vpop.permute.xlu0 %694 }
  0xdb   :  { %v1198_v50 = vsel %vm1170_vm6, %v9264_v56, %v697_v45  ;;  %v966_v45 = vsel %vm828_vm1, %v964_v10, %v965_v3  ;;  %v969_v10 = vrot.slane %v9853_v61, 2 }
  0xdc   :  { %1090 = vrot.lane.b32.xlu1 %v963_v40, %s8904_s13  ;;  %1088 = vrot.lane.b32.xlu0 %v961_v12, %s8904_s13  ;;  %v1197_v40 = vsel %vm1170_vm6, %v9271_v0, %v695_v57  ;;  %v968_v0 = vsel %vm828_vm1, %v965_v3, %v967_v37  ;;  %v627_v57 = vrot.slane %v9853_v61, 1  ;;  %v970_v37 = vrot.slane %v9845_v13, 2 }
  0xde   :  { %v1039_v12 = vpop.permute.xlu1 %1038  ;;  %v1037_v27 = vpop.permute.xlu0 %1036  ;;  %v629_v3 = vsel %vm486_vm2, %v627_v57, %v628_v42 }
  0xdf   :  { %v9862_v38 = vsel %vm1233_vm7, %v1198_v50, %v1039_v12  ;;  %v9865_v56 = vsel %vm1233_vm7, %v1197_v40, %v1037_v27  ;;  %v251_v50 = vrot.slane %v83_v17, 7  ;;  %v252_v12 = vrot.slane %v84_v35, 7  ;;  %v85_v35 = vld [vmem:[%s13681_s0 + $0x1e0] sm:$0xff] }
  0xe0   :  { %13874 = vst [vmem:[#allocation18_spill] sm:$0xff] %v9862_v38  ;;  %13875 = vst [vmem:[#allocation19_spill] sm:$0xff] %v9865_v56  ;;  %752 = vrot.lane.b32.xlu1 %v626_v1, %s8905_s14  ;;  %750 = vrot.lane.b32.xlu0 %v624_v32, %s8905_s14  ;;  %v972_v32 = vrot.slane %v420_v15, 2  ;;  %v631_v40 = vsel %vm486_vm2, %v628_v42, %v630_v19 }
  0xe1   :  { %7704 = vmatprep.mubr.msk.f32.mxu0 %vm1352_vm8, %v9865_v56  ;;  %v9884_v17 = vsel %vm161_vm0, %v251_v50, %v252_v12  ;;  %v421_v57 = vsel %vm161_vm0, %v252_v12, 0.0 }
  0xe2   :  { %7705 = vmatmul.mubr.msk.f32.gmra.mrb[24].mxu0 %vm1352_vm8, %v9862_v38  ;;  %v701_v27 = vpop.permute.xlu1 %700  ;;  %v699_v1 = vpop.permute.xlu0 %698  ;;  %v9898_v38 = vsel %vm161_vm0, 0.0, %v251_v50  ;;  %v971_v50 = vsel %vm828_vm1, %v969_v10, %v970_v37  ;;  %v633_v12 = vrot.slane %v9884_v17, 1 }
  0xe3   :  { %v1200_v15 = vsel %vm1170_vm6, %v9298_v29, %v701_v27  ;;  %v1199_v19 = vsel %vm1170_vm6, %v9302_v33, %v699_v1  ;;  %v973_v29 = vsel %vm828_vm1, %v970_v37, %v972_v32  ;;  %v254_v33 = vrot.slane %v85_v35, 7 }
  0xe4   :  { %1094 = vrot.lane.b32.xlu1 %v968_v0, %s8904_s13  ;;  %1092 = vrot.lane.b32.xlu0 %v966_v45, %s8904_s13  ;;  %v86_v0 = vld [vmem:[%s13681_s0 + $0x1e8] sm:$0xff]  ;;  %v635_v1 = vrot.slane %v421_v57, 1  ;;  %v975_v32 = vrot.slane %v9884_v17, 2  ;;  %v974_v35 = vrot.slane %v9898_v38, 2 }
  0xe5   :  { %v255_v27 = vrot.slane %v86_v0, 7 }
  0xe6   :  { %v1043_v42 = vpop.permute.xlu1 %1042  ;;  %v1041_v45 = vpop.permute.xlu0 %1040  ;;  %v636_v10 = vsel %vm486_vm2, %v633_v12, %v635_v1 }
  0xe7   :  { %v9901_v56 = vsel %vm1233_vm7, %v1200_v15, %v1043_v42  ;;  %v9904_v63 = vsel %vm1233_vm7, %v1199_v19, %v1041_v45  ;;  %v632_v15 = vrot.slane %v9898_v38, 1  ;;  %v9921_v37 = vsel %vm161_vm0, %v254_v33, %v255_v27 }
  0xe8   :  { %13876 = vst [vmem:[#allocation20_spill] sm:$0xff] %v9901_v56  ;;  %13877 = vst [vmem:[#allocation21_spill] sm:$0xff] %v9904_v63  ;;  %756 = vrot.lane.b32.xlu1 %v631_v40, %s8905_s14  ;;  %754 = vrot.lane.b32.xlu0 %v629_v3, %s8905_s14  ;;  %v977_v3 = vrot.slane %v421_v57, 2  ;;  %v422_v42 = vsel %vm161_vm0, %v255_v27, 0.0  ;;  %v9927_v45 = vsel %vm161_vm0, 0.0, %v254_v33  ;;  %v88_v57 = vld [vmem:[%s13681_s0 + $0x1f8] sm:$0xff] }
  0xe9   :  { %7707 = vmatprep.mubr.msk.f32.mxu0 %vm1352_vm8, %v9904_v63  ;;  %v634_v0 = vsel %vm486_vm2, %v632_v15, %v633_v12  ;;  %v640_v63 = vrot.slane %v422_v42, 1  ;;  %v258_v62 = vrot.slane %v88_v57, 7  ;;  %v979_v57 = vrot.slane %v9927_v45, 2 }
  0xea   :  { %7708 = vmatmul.mubr.msk.f32.gmra.mrb[26].mxu0 %vm1352_vm8, %v9901_v56  ;;  %v705_v40 = vpop.permute.xlu1 %704  ;;  %v703_v19 = vpop.permute.xlu0 %702  ;;  %v638_v56 = vrot.slane %v9921_v37, 1 }
  0xeb   :  { %v1201_v1 = vsel %vm1170_vm6, %v9321_v59, %v703_v19  ;;  %v978_v59 = vsel %vm828_vm1, %v975_v32, %v977_v3  ;;  %v976_v19 = vsel %vm828_vm1, %v974_v35, %v975_v32  ;;  %v423_v3 = vsel %vm161_vm0, %v258_v62, 0.0 }
  0xec   :  { %1098 = vrot.lane.b32.xlu1 %v973_v29, %s8904_s13  ;;  %1096 = vrot.lane.b32.xlu0 %v971_v50, %s8904_s13  ;;  %v87_v29 = vld [vmem:[%s13681_s0 + $0x1f0] sm:$0xff]  ;;  %v1202_v50 = vsel %vm1170_vm6, %v9317_v52, %v705_v40  ;;  %v637_v52 = vrot.slane %v9927_v45, 1  ;;  %v980_v32 = vrot.slane %v9921_v37, 2  ;;  %v982_v35 = vrot.slane %v422_v42, 2 }
  0xed   :  { %v257_v40 = vrot.slane %v87_v29, 7 }
  0xee   :  { %v1047_v12 = vpop.permute.xlu1 %1046  ;;  %v1045_v15 = vpop.permute.xlu0 %1044 }
  0xef   :  { %v9940_v27 = vsel %vm1233_vm7, %v1202_v50, %v1047_v12  ;;  %v9943_v33 = vsel %vm1233_vm7, %v1201_v1, %v1045_v15  ;;  %v9960_v29 = vsel %vm161_vm0, %v257_v40, %v258_v62  ;;  %v9966_v12 = vsel %vm161_vm0, 0.0, %v257_v40 }
  0xf0   :  { %13878 = vst [vmem:[#allocation22_spill] sm:$0xff] %v9940_v27  ;;  %13879 = vst [vmem:[#allocation23_spill] sm:$0xff] %v9943_v33  ;;  %760 = vrot.lane.b32.xlu1 %v636_v10, %s8905_s14  ;;  %758 = vrot.lane.b32.xlu0 %v634_v0, %s8905_s14  ;;  %v641_v10 = vsel %vm486_vm2, %v638_v56, %v640_v63  ;;  %v639_v0 = vsel %vm486_vm2, %v637_v52, %v638_v56  ;;  %v1306_v40 = vrot.slane %v9960_v29, 1 }
  0xf1   :  { %7710 = vmatprep.mubr.msk.f32.mxu0 %vm1352_vm8, %v9943_v33 }
  0xf2   :  { %7711 = vmatmul.mubr.msk.f32.gmra.mrb[28].mxu0 %vm1352_vm8, %v9940_v27  ;;  %v1313_v50 = vpop.permute.xlu1 %1312  ;;  %v1311_v1 = vpop.permute.xlu0 %1310  ;;  %v1308_v27 = vrot.slane %v423_v3, 1 }
  0xf3   :  { %v1345_v15 = vsel %vm1170_vm6, %v9348_v24, %v1313_v50  ;;  %v1344_v63 = vsel %vm1170_vm6, %v9352_v26, %v1311_v1  ;;  %v1305_v24 = vrot.slane %v9966_v12, 1  ;;  %v983_v26 = vsel %vm828_vm1, %v980_v32, %v982_v35 }
  0xf4   :  { %1102 = vrot.lane.b32.xlu1 %v978_v59, %s8904_s13  ;;  %1100 = vrot.lane.b32.xlu0 %v976_v19, %s8904_s13  ;;  %v8907_v59 = vmov 0.0   ;;  %v981_v50 = vsel %vm828_vm1, %v979_v57, %v980_v32  ;;  %v1328_v35 = vrot.slane %v9960_v29, 2  ;;  %v1330_v57 = vrot.slane %v423_v3, 2 }
  0xf5   :  { %v9972_v19 = vrot.slane %v8907_v59, 7  ;;  %v1307_v32 = vsel %vm486_vm2, %v1305_v24, %v1306_v40 }
  0xf6   :  { %v1335_v56 = vpop.permute.xlu1 %1334  ;;  %v1333_v52 = vpop.permute.xlu0 %1332 }
  0xf7   :  { %13880 = vst [vmem:[#allocation24_spill] sm:$0xff] %v9972_v19  ;;  %v9975_v62 = vsel %vm1233_vm7, %v1345_v15, %v1335_v56  ;;  %v9978_v42 = vsel %vm1233_vm7, %v1344_v63, %v1333_v52  ;;  %v9992_v63 = vsel %vm161_vm0, 0.0, %v9972_v19  ;;  %v1327_v56 = vrot.slane %v9966_v12, 2 }
  0xf8   :  { %13881 = vst [vmem:[#allocation25_spill] sm:$0xff] %v9975_v62  ;;  %13882 = vst [vmem:[#allocation26_spill] sm:$0xff] %v9978_v42  ;;  %764 = vrot.lane.b32.xlu1 %v641_v10, %s8905_s14  ;;  %762 = vrot.lane.b32.xlu0 %v639_v0, %s8905_s14  ;;  %v391_v10 = vsel %vm161_vm0, %v9972_v19, 0.0  ;;  %v1309_v0 = vsel %vm486_vm2, %v1306_v40, %v1308_v27  ;;  %v487_v52 = vrot.slane %v9992_v63, 1  ;;  %v488_v59 = vrot.slane %v9972_v19, 1 }
  0xf9   :  { %7713 = vmatprep.mubr.msk.f32.mxu0 %vm1352_vm8, %v9978_v42  ;;  %13883 = vst [vmem:[#allocation27_spill] sm:$0xff] %v9992_v63  ;;  %v829_v42 = vrot.slane %v9992_v63, 2  ;;  %v830_v24 = vrot.slane %v9972_v19, 2  ;;  %v832_v3 = vrot.slane %v391_v10, 2 }
  0xfa   :  { %7714 = vmatmul.mubr.msk.f32.gmra.mrb[30].mxu0 %vm1352_vm8, %v9975_v62  ;;  %v709_v1 = vpop.permute.xlu1 %708  ;;  %v707_v15 = vpop.permute.xlu0 %706  ;;  %v490_v62 = vrot.slane %v391_v10, 1  ;;  %v489_v10 = vsel %vm486_vm2, %v487_v52, %v488_v59 }
  0xfb   :  { %v1204_v27 = vsel %vm1170_vm6, %v9369_v58, %v709_v1  ;;  %v94_v58 = vld [vmem:[%s13682_s2 + $0x28] sm:$0xf]  ;;  %v1331_v1 = vsel %vm828_vm1, %v1328_v35, %v1330_v57 }
  0xfc   :  { %1106 = vrot.lane.b32.xlu1 %v983_v26, %s8904_s13  ;;  %1104 = vrot.lane.b32.xlu0 %v981_v50, %s8904_s13  ;;  %v1203_v26 = vsel %vm1170_vm6, %v9378_v4, %v707_v15  ;;  %v10024_v4 = vpack.c.bf16 %v94_v58, %v93_v7  ;;  %v1329_v15 = vsel %vm828_vm1, %v1327_v56, %v1328_v35 }
  0xfd   :  { %v833_v7 = vsel %vm828_vm1, %v830_v24, %v832_v3 }
  0xfe   :  { %v1051_v50 = vpop.permute.xlu1 %1050  ;;  %v1049_v40 = vpop.permute.xlu0 %1048  ;;  %8278 = vmatprep.subr.msk.bf16.mxu0 %vm9152_vm5, %v10024_v4 }
  0xff   :  { %v10011_v33 = vsel %vm1233_vm7, %v1204_v27, %v1051_v50  ;;  %v10014_v53 = vsel %vm1233_vm7, %v1203_v26, %v1049_v40  ;;  %v491_v27 = vsel %vm486_vm2, %v488_v59, %v490_v62 }
 0x100   :  { %1316 = vrot.lane.b32.xlu1 %v1309_v0, %s8905_s14  ;;  %1314 = vrot.lane.b32.xlu0 %v1307_v32, %s8905_s14  ;;  %v831_v32 = vsel %vm828_vm1, %v829_v42, %v830_v24  ;;  %v10041_v35 = vpack.i.bf16 %v491_v27, %v489_v10 }
 0x101   :  { %7716 = vmatprep.mubr.msk.f32.mxu0 %vm1352_vm8, %v10014_v53  ;;  %v10043_v62 = vpack.i.bf16 %v833_v7, %v831_v32 }
 0x102   :  { %7717 = vmatmul.mubr.msk.f32.gmra.mrb[32].mxu0 %vm1352_vm8, %v10011_v33  ;;  %v713_v26 = vpop.permute.xlu1 %712  ;;  %v711_v0 = vpop.permute.xlu0 %710  ;;  %13884 = vst [vmem:[#allocation28_spill] sm:$0xff] %v10041_v35 }
 0x103   :  { %13885 = vst [vmem:[#allocation29_spill] sm:$0xff] %v10043_v62  ;;  %v1206_v57 = vsel %vm1170_vm6, %v9416_v46, %v713_v26  ;;  %v1205_v42 = vsel %vm1170_vm6, %v9430_v2, %v711_v0 }
 0x104   :  { %1338 = vrot.lane.b32.xlu1 %v1331_v1, %s8904_s13  ;;  %1336 = vrot.lane.b32.xlu0 %v1329_v15, %s8904_s13 }
 0x106   :  { %v1055_v56 = vpop.permute.xlu1 %1054  ;;  %v1053_v52 = vpop.permute.xlu0 %1052 }
 0x107   :  { %v10050_v59 = vsel %vm1233_vm7, %v1206_v57, %v1055_v56  ;;  %v10053_v50 = vsel %vm1233_vm7, %v1205_v42, %v1053_v52 }
 0x108   :  { %8564 = vrot.lane.b32.xlu0 %v10041_v35, %s8905_s14  ;;  %7719 = vmatprep.mubr.msk.f32.mxu0 %vm1352_vm8, %v10053_v50  ;;  %v2853_v35 = vld [vmem:[%s13683_s1 + $0x18] sm:$0xff] }
 0x109   :  { %8569 = vrot.lane.b32.xlu1 %v10043_v62, %s8904_s13  ;;  %7720 = vmatmul.mubr.msk.f32.gmra.mrb[34].mxu0 %vm1352_vm8, %v10050_v59  ;;  %v2871_v62 = vld [vmem:[%s13683_s1 + $0xa8] sm:$0xff] }
 0x10a   :  { %v717_v46 = vpop.permute.xlu1 %716  ;;  %v715_v2 = vpop.permute.xlu0 %714 }
 0x10b   :  { %v1208_v40 = vsel %vm1170_vm6, %v9452_v25, %v717_v46  ;;  %v1207_v24 = vsel %vm1170_vm6, %v9466_v51, %v715_v2 }
 0x10e   :  { %v1059_v3 = vpop.permute.xlu1 %1058  ;;  %v1057_v58 = vpop.permute.xlu0 %1056 }
 0x10f   :  { %v10068_v1 = vsel %vm1233_vm7, %v1208_v40, %v1059_v3  ;;  %v10071_v15 = vsel %vm1233_vm7, %v1207_v24, %v1057_v58 }
 0x110   :  { %7722 = vmatprep.mubr.msk.f32.mxu0 %vm1352_vm8, %v10071_v15 }
 0x111   :  { %7723 = vmatmul.mubr.msk.f32.gmra.mrb[36].mxu0 %vm1352_vm8, %v10068_v1 }
 0x112   :  { %v721_v10 = vpop.permute.xlu1 %720  ;;  %v719_v27 = vpop.permute.xlu0 %718 }
 0x113   :  { %v1210_v25 = vsel %vm1170_vm6, %v9507_v44, %v721_v10  ;;  %v1209_v51 = vsel %vm1170_vm6, %v9494_v31, %v719_v27 }
 0x116   :  { %v1063_v26 = vpop.permute.xlu1 %1062  ;;  %v1061_v0 = vpop.permute.xlu0 %1060 }
 0x117   :  { %v10082_v32 = vsel %vm1233_vm7, %v1210_v25, %v1063_v26  ;;  %v10085_v7 = vsel %vm1233_vm7, %v1209_v51, %v1061_v0 }
 0x118   :  { %7725 = vmatprep.mubr.msk.f32.mxu0 %vm1352_vm8, %v10085_v7 }
 0x119   :  { %7726 = vmatmul.mubr.msk.f32.gmra.mrb[38].mxu0 %vm1352_vm8, %v10082_v32 }
 0x11a   :  { %v725_v57 = vpop.permute.xlu1 %724  ;;  %v723_v42 = vpop.permute.xlu0 %722 }
 0x11b   :  { %v1212_v44 = vsel %vm1170_vm6, %v9533_v21, %v725_v57  ;;  %v1211_v31 = vsel %vm1170_vm6, %v9541_v41, %v723_v42 }
 0x11e   :  { %v1067_v56 = vpop.permute.xlu1 %1066  ;;  %v1065_v52 = vpop.permute.xlu0 %1064 }
 0x11f   :  { %v10096_v46 = vsel %vm1233_vm7, %v1212_v44, %v1067_v56  ;;  %v10099_v2 = vsel %vm1233_vm7, %v1211_v31, %v1065_v52 }
 0x120   :  { %7728 = vmatprep.mubr.msk.f32.mxu0 %vm1352_vm8, %v10099_v2 }
 0x121   :  { %7729 = vmatmul.mubr.msk.f32.gmra.mrb[40].mxu0 %vm1352_vm8, %v10096_v46 }
 0x122   :  { %v729_v40 = vpop.permute.xlu1 %728  ;;  %v727_v24 = vpop.permute.xlu0 %726 }
 0x123   :  { %v1214_v21 = vsel %vm1170_vm6, %v9572_v34, %v729_v40  ;;  %v1213_v41 = vsel %vm1170_vm6, %v9586_v55, %v727_v24 }
 0x126   :  { %v1071_v3 = vpop.permute.xlu1 %1070  ;;  %v1069_v58 = vpop.permute.xlu0 %1068 }
 0x127   :  { %v10110_v10 = vsel %vm1233_vm7, %v1214_v21, %v1071_v3  ;;  %v10113_v27 = vsel %vm1233_vm7, %v1213_v41, %v1069_v58 }
 0x128   :  { %7731 = vmatprep.mubr.msk.f32.mxu0 %vm1352_vm8, %v10113_v27 }
 0x129   :  { %7732 = vmatmul.mubr.msk.f32.gmra.mrb[42].mxu0 %vm1352_vm8, %v10110_v10 }
 0x12a   :  { %v733_v25 = vpop.permute.xlu1 %732  ;;  %v731_v51 = vpop.permute.xlu0 %730 }
 0x12b   :  { %v1216_v34 = vsel %vm1170_vm6, %v9608_v14, %v733_v25  ;;  %v1215_v55 = vsel %vm1170_vm6, %v9622_v11, %v731_v51 }
 0x12e   :  { %v1075_v26 = vpop.permute.xlu1 %1074  ;;  %v1073_v0 = vpop.permute.xlu0 %1072 }
 0x12f   :  { %v10124_v57 = vsel %vm1233_vm7, %v1216_v34, %v1075_v26  ;;  %v10127_v42 = vsel %vm1233_vm7, %v1215_v55, %v1073_v0 }
 0x130   :  { %7734 = vmatprep.mubr.msk.f32.mxu0 %vm1352_vm8, %v10127_v42 }
 0x131   :  { %7735 = vmatmul.mubr.msk.f32.gmra.mrb[44].mxu0 %vm1352_vm8, %v10124_v57 }
 0x132   :  { %v737_v44 = vpop.permute.xlu1 %736  ;;  %v735_v31 = vpop.permute.xlu0 %734 }
 0x133   :  { %v1218_v14 = vsel %vm1170_vm6, %v9663_v8, %v737_v44  ;;  %v1217_v11 = vsel %vm1170_vm6, %v9650_v28, %v735_v31 }
 0x136   :  { %v1079_v56 = vpop.permute.xlu1 %1078  ;;  %v1077_v52 = vpop.permute.xlu0 %1076 }
 0x137   :  { %v10138_v40 = vsel %vm1233_vm7, %v1218_v14, %v1079_v56  ;;  %v10141_v24 = vsel %vm1233_vm7, %v1217_v11, %v1077_v52 }
 0x138   :  { %7737 = vmatprep.mubr.msk.f32.mxu0 %vm1352_vm8, %v10141_v24 }
 0x139   :  { %7738 = vmatmul.mubr.msk.f32.gmra.mrb[46].mxu0 %vm1352_vm8, %v10138_v40 }
 0x13a   :  { %v741_v21 = vpop.permute.xlu1 %740  ;;  %v739_v41 = vpop.permute.xlu0 %738 }
 0x13b   :  { %v1220_v8 = vsel %vm1170_vm6, %v9689_v48, %v741_v21  ;;  %v1219_v28 = vsel %vm1170_vm6, %v9697_v23, %v739_v41 }
 0x13e   :  { %v1083_v3 = vpop.permute.xlu1 %1082  ;;  %v1081_v58 = vpop.permute.xlu0 %1080 }
 0x13f   :  { %v10152_v25 = vsel %vm1233_vm7, %v1220_v8, %v1083_v3  ;;  %v10155_v51 = vsel %vm1233_vm7, %v1219_v28, %v1081_v58 }
 0x140   :  { %7740 = vmatprep.mubr.msk.f32.mxu0 %vm1352_vm8, %v10155_v51 }
 0x141   :  { %7741 = vmatmul.mubr.msk.f32.gmra.mrb[48].mxu0 %vm1352_vm8, %v10152_v25 }
 0x142   :  { %v745_v34 = vpop.permute.xlu1 %744  ;;  %v743_v55 = vpop.permute.xlu0 %742 }
 0x143   :  { %v1222_v48 = vsel %vm1170_vm6, %v9728_v16, %v745_v34  ;;  %v1221_v23 = vsel %vm1170_vm6, %v9742_v43, %v743_v55 }
 0x146   :  { %v1087_v26 = vpop.permute.xlu1 %1086  ;;  %v1085_v0 = vpop.permute.xlu0 %1084 }
 0x147   :  { %v10166_v44 = vsel %vm1233_vm7, %v1222_v48, %v1087_v26  ;;  %v10169_v31 = vsel %vm1233_vm7, %v1221_v23, %v1085_v0 }
 0x148   :  { %7743 = vmatprep.mubr.msk.f32.mxu0 %vm1352_vm8, %v10169_v31 }
 0x149   :  { %7744 = vmatmul.mubr.msk.f32.gmra.mrb[50].mxu0 %vm1352_vm8, %v10166_v44 }
 0x14a   :  { %v749_v14 = vpop.permute.xlu1 %748  ;;  %v747_v11 = vpop.permute.xlu0 %746 }
 0x14b   :  { %v1224_v16 = vsel %vm1170_vm6, %v9764_v39, %v749_v14  ;;  %v1223_v43 = vsel %vm1170_vm6, %v9778_v20, %v747_v11 }
 0x14e   :  { %v1091_v56 = vpop.permute.xlu1 %1090  ;;  %v1089_v52 = vpop.permute.xlu0 %1088 }
 0x14f   :  { %v10180_v21 = vsel %vm1233_vm7, %v1224_v16, %v1091_v56  ;;  %v10183_v41 = vsel %vm1233_vm7, %v1223_v43, %v1089_v52 }
 0x150   :  { %7746 = vmatprep.mubr.msk.f32.mxu0 %vm1352_vm8, %v10183_v41 }
 0x151   :  { %7747 = vmatmul.mubr.msk.f32.gmra.mrb[52].mxu0 %vm1352_vm8, %v10180_v21 }
 0x152   :  { %v753_v8 = vpop.permute.xlu1 %752  ;;  %v751_v28 = vpop.permute.xlu0 %750 }
 0x153   :  { %v1226_v39 = vsel %vm1170_vm6, %v9819_v30, %v753_v8  ;;  %v1225_v20 = vsel %vm1170_vm6, %v9806_v54, %v751_v28 }
 0x156   :  { %v1095_v3 = vpop.permute.xlu1 %1094  ;;  %v1093_v58 = vpop.permute.xlu0 %1092 }
 0x157   :  { %v10194_v34 = vsel %vm1233_vm7, %v1226_v39, %v1095_v3  ;;  %v10197_v55 = vsel %vm1233_vm7, %v1225_v20, %v1093_v58 }
 0x158   :  { %7749 = vmatprep.mubr.msk.f32.mxu0 %vm1352_vm8, %v10197_v55 }
 0x159   :  { %7750 = vmatmul.mubr.msk.f32.gmra.mrb[54].mxu0 %vm1352_vm8, %v10194_v34 }
 0x15a   :  { %v757_v48 = vpop.permute.xlu1 %756  ;;  %v755_v23 = vpop.permute.xlu0 %754 }
 0x15b   :  { %v1228_v30 = vsel %vm1170_vm6, %v9845_v13, %v757_v48  ;;  %v1227_v54 = vsel %vm1170_vm6, %v9853_v61, %v755_v23 }
 0x15e   :  { %v1099_v26 = vpop.permute.xlu1 %1098  ;;  %v1097_v0 = vpop.permute.xlu0 %1096 }
 0x15f   :  { %v10208_v14 = vsel %vm1233_vm7, %v1228_v30, %v1099_v26  ;;  %v10211_v11 = vsel %vm1233_vm7, %v1227_v54, %v1097_v0 }
 0x160   :  { %7752 = vmatprep.mubr.msk.f32.mxu0 %vm1352_vm8, %v10211_v11 }
 0x161   :  { %7753 = vmatmul.mubr.msk.f32.gmra.mrb[56].mxu0 %vm1352_vm8, %v10208_v14 }
 0x162   :  { %v761_v16 = vpop.permute.xlu1 %760  ;;  %v759_v43 = vpop.permute.xlu0 %758 }
 0x163   :  { %v1230_v13 = vsel %vm1170_vm6, %v9884_v17, %v761_v16  ;;  %v1229_v61 = vsel %vm1170_vm6, %v9898_v38, %v759_v43 }
 0x166   :  { %v1103_v56 = vpop.permute.xlu1 %1102  ;;  %v1101_v52 = vpop.permute.xlu0 %1100 }
 0x167   :  { %v10222_v8 = vsel %vm1233_vm7, %v1230_v13, %v1103_v56  ;;  %v10225_v28 = vsel %vm1233_vm7, %v1229_v61, %v1101_v52 }
 0x168   :  { %7755 = vmatprep.mubr.msk.f32.mxu0 %vm1352_vm8, %v10225_v28 }
 0x169   :  { %7756 = vmatmul.mubr.msk.f32.gmra.mrb[58].mxu0 %vm1352_vm8, %v10222_v8 }
 0x16a   :  { %v765_v39 = vpop.permute.xlu1 %764  ;;  %v763_v20 = vpop.permute.xlu0 %762 }
 0x16b   :  { %v1232_v17 = vsel %vm1170_vm6, %v9921_v37, %v765_v39  ;;  %v1231_v38 = vsel %vm1170_vm6, %v9927_v45, %v763_v20 }
 0x16e   :  { %v1107_v3 = vpop.permute.xlu1 %1106  ;;  %v1105_v58 = vpop.permute.xlu0 %1104 }
 0x16f   :  { %v10236_v48 = vsel %vm1233_vm7, %v1232_v17, %v1107_v3  ;;  %v10239_v23 = vsel %vm1233_vm7, %v1231_v38, %v1105_v58  ;;  %v13890_v3 = vld [vmem:[#allocation7_spill] sm:$0xff]  ;;  %v13891_v58 = vld [vmem:[#allocation6_spill] sm:$0xff] }
 0x170   :  { %7758 = vmatprep.mubr.msk.f32.mxu0 %vm1352_vm8, %v10239_v23 }
 0x171   :  { %7759 = vmatmul.mubr.msk.f32.gmra.mrb[60].mxu0 %vm1352_vm8, %v10236_v48 }
 0x172   :  { %v1317_v30 = vpop.permute.xlu1 %1316  ;;  %v1315_v54 = vpop.permute.xlu0 %1314 }
 0x173   :  { %v1347_v37 = vsel %vm1170_vm6, %v9960_v29, %v1317_v30  ;;  %v1346_v45 = vsel %vm1170_vm6, %v9966_v12, %v1315_v54  ;;  %v13892_v30 = vld [vmem:[#allocation9_spill] sm:$0xff]  ;;  %v13893_v54 = vld [vmem:[#allocation8_spill] sm:$0xff] }
 0x176   :  { %v1339_v26 = vpop.permute.xlu1 %1338  ;;  %v1337_v0 = vpop.permute.xlu0 %1336 }
 0x177   :  { %v10250_v16 = vsel %vm1233_vm7, %v1347_v37, %v1339_v26  ;;  %v10253_v43 = vsel %vm1233_vm7, %v1346_v45, %v1337_v0  ;;  %v13894_v37 = vld [vmem:[#allocation11_spill] sm:$0xff]  ;;  %v13895_v45 = vld [vmem:[#allocation10_spill] sm:$0xff]  ;;  %v13896_v26 = vld [vmem:[#allocation13_spill] sm:$0xff] }
 0x178   :  { %7761 = vmatprep.mubr.msk.f32.mxu0 %vm1352_vm8, %v10253_v43  ;;  %v13897_v0 = vld [vmem:[#allocation12_spill] sm:$0xff] }
 0x179   :  { %7762 = vmatmul.mubr.msk.f32.gmra.mrb[62].mxu0 %vm1352_vm8, %v10250_v16 }
 0x17a   :  { %v8565_v13 = vpop.permute.xlu0 %8564 }
 0x17b   :  { %v8567_v61 = vunpack.i.h.bf16 %v8565_v13  ;;  %v8566_v29 = vunpack.i.l.bf16 %v8565_v13  ;;  %v8570_v56 = vpop.permute.xlu1 %8569  ;;  %v13898_v13 = vld [vmem:[#allocation15_spill] sm:$0xff] }
 0x17c   :  { %v8572_v52 = vunpack.i.h.bf16 %v8570_v56  ;;  %v8571_v12 = vunpack.i.l.bf16 %v8570_v56  ;;  %v13901_v56 = vld [vmem:[#allocation16_spill] sm:$0xff] }
 0x17d   :  { %v1172_v39 = vsel %vm1170_vm6, %v9972_v19, %v8567_v61  ;;  %v1171_v20 = vsel %vm1170_vm6, %v9992_v63, %v8566_v29  ;;  %v13899_v61 = vld [vmem:[#allocation14_spill] sm:$0xff]  ;;  %v13900_v29 = vld [vmem:[#allocation17_spill] sm:$0xff]  ;;  %v13906_v63 = vld [vmem:[#allocation23_spill] sm:$0xff] }
 0x17e   :  { %v10264_v17 = vsel %vm1233_vm7, %v1172_v39, %v8572_v52  ;;  %v10267_v38 = vsel %vm1233_vm7, %v1171_v20, %v8571_v12  ;;  %v13902_v52 = vld [vmem:[#allocation19_spill] sm:$0xff]  ;;  %v13903_v12 = vld [vmem:[#allocation18_spill] sm:$0xff]  ;;  %v13904_v39 = vld [vmem:[#allocation21_spill] sm:$0xff] }
 0x17f   :  { %7768 = vmatprep.mubr.msk.f32.mxu0 %vm1352_vm8, %v10267_v38  ;;  %v13905_v20 = vld [vmem:[#allocation20_spill] sm:$0xff]  ;;  %v13907_v19 = vld [vmem:[#allocation22_spill] sm:$0xff] }
 0x180   :  { %7769 = vmatmul.mubr.msk.f32.vlgmr.msra.gmra.mrb[0].mxu0 %vm1352_vm8, %v10264_v17 }
 0x181   :  { %8281 = vmatpush3.bf16.msk.msra.mxu0 %vm9152_vm5, %v10024_v4  ;;  %7771 = vmatprep.mubr.msk.f32.mxu0 %vm1352_vm8, %v9365_v47  ;;  %v13887_v47 = vld [vmem:[#allocation2_spill] sm:$0xff]  ;;  %v13889_v4 = vld [vmem:[#allocation4_spill] sm:$0xff] }
 0x184   :  { %7772 = vmatmul.mubr.msk.f32.gmra.mrb[2].mxu0 %vm1352_vm8, %v9398_v18  ;;  %v13888_v18 = vld [vmem:[#allocation5_spill] sm:$0xff] }
 0x185   :  { %7774 = vmatprep.mubr.msk.f32.mxu0 %vm1352_vm8, %v9436_v6 }
 0x188   :  { %7775 = vmatmul.mubr.msk.f32.gmra.mrb[4].mxu0 %vm1352_vm8, %v9433_v5 }
 0x189   :  { %7777 = vmatprep.mubr.msk.f32.mxu0 %vm1352_vm8, %v9472_v9 }
 0x18c   :  { %7778 = vmatmul.mubr.msk.f32.gmra.mrb[6].mxu0 %vm1352_vm8, %v9469_v60 }
 0x18d   :  { %7780 = vmatprep.mubr.msk.f32.mxu0 %vm1352_vm8, %v9514_v36 }
 0x190   :  { %7781 = vmatmul.mubr.msk.f32.gmra.mrb[8].mxu0 %vm1352_vm8, %v9511_v49 }
 0x191   :  { %7783 = vmatprep.mubr.msk.f32.mxu0 %vm1352_vm8, %v13886_v22 }
 0x194   :  { %7784 = vmatmul.mubr.msk.f32.gmra.mrb[10].mxu0 %vm1352_vm8, %v13887_v47 }
 0x195   :  { %7786 = vmatprep.mubr.msk.f32.mxu0 %vm1352_vm8, %v13888_v18 }
 0x198   :  { %7787 = vmatmul.mubr.msk.f32.gmra.mrb[12].mxu0 %vm1352_vm8, %v13889_v4 }
 0x199   :  { %7789 = vmatprep.mubr.msk.f32.mxu0 %vm1352_vm8, %v13890_v3 }
 0x19c   :  { %7790 = vmatmul.mubr.msk.f32.gmra.mrb[14].mxu0 %vm1352_vm8, %v13891_v58 }
 0x19d   :  { %7792 = vmatprep.mubr.msk.f32.mxu0 %vm1352_vm8, %v13892_v30 }
 0x1a0   :  { %7793 = vmatmul.mubr.msk.f32.gmra.mrb[16].mxu0 %vm1352_vm8, %v13893_v54 }
 0x1a1   :  { %7795 = vmatprep.mubr.msk.f32.mxu0 %vm1352_vm8, %v13894_v37 }
 0x1a4   :  { %7796 = vmatmul.mubr.msk.f32.gmra.mrb[18].mxu0 %vm1352_vm8, %v13895_v45 }
 0x1a5   :  { %7798 = vmatprep.mubr.msk.f32.mxu0 %vm1352_vm8, %v13896_v26 }
 0x1a8   :  { %7799 = vmatmul.mubr.msk.f32.gmra.mrb[20].mxu0 %vm1352_vm8, %v13897_v0 }
 0x1a9   :  { %7801 = vmatprep.mubr.msk.f32.mxu0 %vm1352_vm8, %v13898_v13 }
 0x1ac   :  { %7802 = vmatmul.mubr.msk.f32.gmra.mrb[22].mxu0 %vm1352_vm8, %v13899_v61 }
 0x1ad   :  { %7804 = vmatprep.mubr.msk.f32.mxu0 %vm1352_vm8, %v13900_v29 }
 0x1b0   :  { %7805 = vmatmul.mubr.msk.f32.gmra.mrb[24].mxu0 %vm1352_vm8, %v13901_v56 }
 0x1b1   :  { %7807 = vmatprep.mubr.msk.f32.mxu0 %vm1352_vm8, %v13902_v52 }
 0x1b4   :  { %7808 = vmatmul.mubr.msk.f32.gmra.mrb[26].mxu0 %vm1352_vm8, %v13903_v12 }
 0x1b5   :  { %7810 = vmatprep.mubr.msk.f32.mxu0 %vm1352_vm8, %v13904_v39 }
 0x1b8   :  { %7811 = vmatmul.mubr.msk.f32.gmra.mrb[28].mxu0 %vm1352_vm8, %v13905_v20 }
 0x1b9   :  { %7813 = vmatprep.mubr.msk.f32.mxu0 %vm1352_vm8, %v13906_v63 }
 0x1bc   :  { %7814 = vmatmul.mubr.msk.f32.gmra.mrb[30].mxu0 %vm1352_vm8, %v13907_v19 }
 0x1bd   :  { %7816 = vmatprep.mubr.msk.f32.mxu0 %vm1352_vm8, %v10267_v38 }
 0x1c0   :  { %7817 = vmatmul.mubr.msk.f32.gmra.mrb[32].mxu0 %vm1352_vm8, %v10264_v17 }
 0x1c1   :  { %7819 = vmatprep.mubr.msk.f32.mxu0 %vm1352_vm8, %v10014_v53  ;;  %v2851_v53 = vld [vmem:[%s13683_s1 + $0x8] sm:$0xff] }
 0x1c2   :  { %2980 = vrot.lane.b32.xlu1 %v2851_v53, %s8905_s14  ;;  %v2852_v53 = vld [vmem:[%s13683_s1 + $0x10] sm:$0xff] }
 0x1c4   :  { %7820 = vmatmul.mubr.msk.f32.gmra.mrb[34].mxu0 %vm1352_vm8, %v10011_v33  ;;  %v2850_v33 = vld [vmem:[%s13683_s1] sm:$0xff] }
 0x1c5   :  { %7822 = vmatprep.mubr.msk.f32.mxu0 %vm1352_vm8, %v10053_v50  ;;  %2978 = vrot.lane.b32.xlu0 %v2850_v33, %s8905_s14  ;;  %v2855_v33 = vld [vmem:[%s13683_s1 + $0x28] sm:$0xff] }
 0x1c6   :  { %2984 = vrot.lane.b32.xlu1 %v2853_v35, %s8905_s14  ;;  %v2854_v35 = vld [vmem:[%s13683_s1 + $0x20] sm:$0xff] }
 0x1c8   :  { %7823 = vmatmul.mubr.msk.f32.gmra.mrb[36].mxu0 %vm1352_vm8, %v10050_v59 }
 0x1c9   :  { %7825 = vmatprep.mubr.msk.f32.mxu0 %vm1352_vm8, %v10071_v15  ;;  %2982 = vrot.lane.b32.xlu0 %v2852_v53, %s8905_s14  ;;  %v2857_v53 = vld [vmem:[%s13683_s1 + $0x38] sm:$0xff] }
 0x1ca   :  { %2988 = vrot.lane.b32.xlu1 %v2855_v33, %s8905_s14  ;;  %v2856_v33 = vld [vmem:[%s13683_s1 + $0x30] sm:$0xff] }
 0x1cc   :  { %7826 = vmatmul.mubr.msk.f32.gmra.mrb[38].mxu0 %vm1352_vm8, %v10068_v1 }
 0x1cd   :  { %7828 = vmatprep.mubr.msk.f32.mxu0 %vm1352_vm8, %v10085_v7  ;;  %2986 = vrot.lane.b32.xlu0 %v2854_v35, %s8905_s14  ;;  %v2859_v35 = vld [vmem:[%s13683_s1 + $0x48] sm:$0xff] }
 0x1ce   :  { %2992 = vrot.lane.b32.xlu1 %v2857_v53, %s8905_s14  ;;  %v2858_v53 = vld [vmem:[%s13683_s1 + $0x40] sm:$0xff] }
 0x1d0   :  { %7829 = vmatmul.mubr.msk.f32.gmra.mrb[40].mxu0 %vm1352_vm8, %v10082_v32 }
 0x1d1   :  { %7831 = vmatprep.mubr.msk.f32.mxu0 %vm1352_vm8, %v10099_v2  ;;  %2990 = vrot.lane.b32.xlu0 %v2856_v33, %s8905_s14  ;;  %v2861_v33 = vld [vmem:[%s13683_s1 + $0x58] sm:$0xff] }
 0x1d2   :  { %2996 = vrot.lane.b32.xlu1 %v2859_v35, %s8905_s14  ;;  %v2860_v35 = vld [vmem:[%s13683_s1 + $0x50] sm:$0xff] }
 0x1d4   :  { %7832 = vmatmul.mubr.msk.f32.gmra.mrb[42].mxu0 %vm1352_vm8, %v10096_v46 }
 0x1d5   :  { %7834 = vmatprep.mubr.msk.f32.mxu0 %vm1352_vm8, %v10113_v27  ;;  %2994 = vrot.lane.b32.xlu0 %v2858_v53, %s8905_s14  ;;  %v2863_v53 = vld [vmem:[%s13683_s1 + $0x68] sm:$0xff] }
 0x1d6   :  { %3000 = vrot.lane.b32.xlu1 %v2861_v33, %s8905_s14  ;;  %v2862_v33 = vld [vmem:[%s13683_s1 + $0x60] sm:$0xff] }
 0x1d8   :  { %7835 = vmatmul.mubr.msk.f32.gmra.mrb[44].mxu0 %vm1352_vm8, %v10110_v10 }
 0x1d9   :  { %7837 = vmatprep.mubr.msk.f32.mxu0 %vm1352_vm8, %v10127_v42  ;;  %2998 = vrot.lane.b32.xlu0 %v2860_v35, %s8905_s14  ;;  %v2865_v35 = vld [vmem:[%s13683_s1 + $0x78] sm:$0xff] }
 0x1da   :  { %3004 = vrot.lane.b32.xlu1 %v2863_v53, %s8905_s14  ;;  %v2864_v53 = vld [vmem:[%s13683_s1 + $0x70] sm:$0xff] }
 0x1dc   :  { %7838 = vmatmul.mubr.msk.f32.gmra.mrb[46].mxu0 %vm1352_vm8, %v10124_v57 }
 0x1dd   :  { %7840 = vmatprep.mubr.msk.f32.mxu0 %vm1352_vm8, %v10141_v24  ;;  %3002 = vrot.lane.b32.xlu0 %v2862_v33, %s8905_s14  ;;  %v2867_v33 = vld [vmem:[%s13683_s1 + $0x88] sm:$0xff] }
 0x1de   :  { %3008 = vrot.lane.b32.xlu1 %v2865_v35, %s8905_s14  ;;  %v2866_v35 = vld [vmem:[%s13683_s1 + $0x80] sm:$0xff] }
 0x1e0   :  { %7841 = vmatmul.mubr.msk.f32.gmra.mrb[48].mxu0 %vm1352_vm8, %v10138_v40 }
 0x1e1   :  { %7843 = vmatprep.mubr.msk.f32.mxu0 %vm1352_vm8, %v10155_v51  ;;  %3006 = vrot.lane.b32.xlu0 %v2864_v53, %s8905_s14  ;;  %v2869_v53 = vld [vmem:[%s13683_s1 + $0x98] sm:$0xff] }
 0x1e2   :  { %3012 = vrot.lane.b32.xlu1 %v2867_v33, %s8905_s14  ;;  %v2868_v33 = vld [vmem:[%s13683_s1 + $0x90] sm:$0xff] }
 0x1e4   :  { %7844 = vmatmul.mubr.msk.f32.gmra.mrb[50].mxu0 %vm1352_vm8, %v10152_v25 }
 0x1e5   :  { %7846 = vmatprep.mubr.msk.f32.mxu0 %vm1352_vm8, %v10169_v31  ;;  %3010 = vrot.lane.b32.xlu0 %v2866_v35, %s8905_s14  ;;  %v2870_v35 = vld [vmem:[%s13683_s1 + $0xa0] sm:$0xff] }
 0x1e6   :  { %3016 = vrot.lane.b32.xlu1 %v2869_v53, %s8905_s14  ;;  %v2873_v53 = vld [vmem:[%s13683_s1 + $0xb8] sm:$0xff] }
 0x1e8   :  { %7847 = vmatmul.mubr.msk.f32.gmra.mrb[52].mxu0 %vm1352_vm8, %v10166_v44 }
 0x1e9   :  { %7849 = vmatprep.mubr.msk.f32.mxu0 %vm1352_vm8, %v10183_v41  ;;  %3014 = vrot.lane.b32.xlu0 %v2868_v33, %s8905_s14  ;;  %v13909_v33 = vld [vmem:[#allocation25_spill] sm:$0xff] }
 0x1ea   :  { %3020 = vrot.lane.b32.xlu1 %v2871_v62, %s8905_s14  ;;  %v2878_v62 = vld [vmem:[%s13683_s1 + $0xe0] sm:$0xff] }
 0x1ec   :  { %7850 = vmatmul.mubr.msk.f32.gmra.mrb[54].mxu0 %vm1352_vm8, %v10180_v21 }
 0x1ed   :  { %7852 = vmatprep.mubr.msk.f32.mxu0 %vm1352_vm8, %v10197_v55  ;;  %3018 = vrot.lane.b32.xlu0 %v2870_v35, %s8905_s14  ;;  %v2900_v35 = vld [vmem:[%s13683_s1 + $0x190] sm:$0xff] }
 0x1ee   :  { %3024 = vrot.lane.b32.xlu1 %v2873_v53, %s8905_s14  ;;  %v2903_v53 = vld [vmem:[%s13683_s1 + $0x1a8] sm:$0xff] }
 0x1f0   :  { %7853 = vmatmul.mubr.msk.f32.gmra.mrb[56].mxu0 %vm1352_vm8, %v10194_v34 }
 0x1f1   :  { %7855 = vmatprep.mubr.msk.f32.mxu0 %vm1352_vm8, %v10211_v11 }
 0x1f4   :  { %7856 = vmatmul.mubr.msk.f32.gmra.mrb[58].mxu0 %vm1352_vm8, %v10208_v14 }
 0x1f5   :  { %7858 = vmatprep.mubr.msk.f32.mxu0 %vm1352_vm8, %v10225_v28 }
 0x1f8   :  { %7859 = vmatmul.mubr.msk.f32.gmra.mrb[60].mxu0 %vm1352_vm8, %v10222_v8 }
 0x1f9   :  { %7861 = vmatprep.mubr.msk.f32.mxu0 %vm1352_vm8, %v10239_v23 }
 0x1fc   :  { %7862 = vmatmul.mubr.msk.f32.gmra.mrb[62].mxu0 %vm1352_vm8, %v10236_v48 }
 0x1fd   :  { %7868 = vmatprep.mubr.msk.f32.mxu0 %vm1352_vm8, %v9436_v6  ;;  %v2872_v6 = vld [vmem:[%s13683_s1 + $0xb0] sm:$0xff] }
 0x1fe   :  { %3022 = vrot.lane.b32.xlu0 %v2872_v6, %s8905_s14  ;;  %v2902_v6 = vld [vmem:[%s13683_s1 + $0x1a0] sm:$0xff] }
 0x200   :  { %7869 = vmatmul.mubr.msk.f32.vlgmr.msra.gmra.mrb[0].mxu0 %vm1352_vm8, %v9433_v5  ;;  %v2875_v5 = vld [vmem:[%s13683_s1 + $0xc8] sm:$0xff] }
 0x201   :  { %7871 = vmatprep.mubr.msk.f32.mxu0 %vm1352_vm8, %v9472_v9  ;;  %v2874_v9 = vld [vmem:[%s13683_s1 + $0xc0] sm:$0xff]  ;;  %3028 = vrot.lane.b32.xlu1 %v2875_v5, %s8905_s14  ;;  %v2905_v5 = vld [vmem:[%s13683_s1 + $0x1b8] sm:$0xff] }
 0x202   :  { %3026 = vrot.lane.b32.xlu0 %v2874_v9, %s8905_s14 }
 0x204   :  { %7872 = vmatmul.mubr.msk.f32.gmra.mrb[2].mxu0 %vm1352_vm8, %v9469_v60  ;;  %v2877_v60 = vld [vmem:[%s13683_s1 + $0xd8] sm:$0xff] }
 0x205   :  { %7874 = vmatprep.mubr.msk.f32.mxu0 %vm1352_vm8, %v9514_v36  ;;  %v2876_v36 = vld [vmem:[%s13683_s1 + $0xd0] sm:$0xff]  ;;  %3032 = vrot.lane.b32.xlu1 %v2877_v60, %s8905_s14  ;;  %v10819_v60 = vld [vmem:[%s13684_s3] ss:$0 sm:$0xff]  ;;  %s8908_s3 = smov 124  }
 0x206   :  { %3030 = vrot.lane.b32.xlu0 %v2876_v36, %s8905_s14 }
 0x208   :  { %7875 = vmatmul.mubr.msk.f32.gmra.mrb[4].mxu0 %vm1352_vm8, %v9511_v49  ;;  %v2879_v49 = vld [vmem:[%s13683_s1 + $0xe8] sm:$0xff] }
 0x209   :  { %7877 = vmatprep.mubr.msk.f32.mxu0 %vm1352_vm8, %v13886_v22  ;;  %3036 = vrot.lane.b32.xlu1 %v2879_v49, %s8905_s14  ;;  %v2881_v22 = vld [vmem:[%s13683_s1 + $0xf8] sm:$0xff] }
 0x20a   :  { %3034 = vrot.lane.b32.xlu0 %v2878_v62, %s8905_s14 }
 0x20c   :  { %7878 = vmatmul.mubr.msk.f32.gmra.mrb[6].mxu0 %vm1352_vm8, %v13887_v47  ;;  %v2880_v47 = vld [vmem:[%s13683_s1 + $0xf0] sm:$0xff] }
 0x20d   :  { %7880 = vmatprep.mubr.msk.f32.mxu0 %vm1352_vm8, %v13888_v18  ;;  %3040 = vrot.lane.b32.xlu1 %v2881_v22, %s8905_s14  ;;  %v2883_v18 = vld [vmem:[%s13683_s1 + $0x108] sm:$0xff] }
 0x20e   :  { %3038 = vrot.lane.b32.xlu0 %v2880_v47, %s8905_s14 }
 0x210   :  { %7881 = vmatmul.mubr.msk.f32.gmra.mrb[8].mxu0 %vm1352_vm8, %v13889_v4  ;;  %v2882_v4 = vld [vmem:[%s13683_s1 + $0x100] sm:$0xff] }
 0x211   :  { %7883 = vmatprep.mubr.msk.f32.mxu0 %vm1352_vm8, %v13890_v3  ;;  %3044 = vrot.lane.b32.xlu1 %v2883_v18, %s8905_s14  ;;  %v2885_v3 = vld [vmem:[%s13683_s1 + $0x118] sm:$0xff] }
 0x212   :  { %3042 = vrot.lane.b32.xlu0 %v2882_v4, %s8905_s14 }
 0x214   :  { %7884 = vmatmul.mubr.msk.f32.gmra.mrb[10].mxu0 %vm1352_vm8, %v13891_v58  ;;  %v2884_v58 = vld [vmem:[%s13683_s1 + $0x110] sm:$0xff] }
 0x215   :  { %7886 = vmatprep.mubr.msk.f32.mxu0 %vm1352_vm8, %v13892_v30  ;;  %3048 = vrot.lane.b32.xlu1 %v2885_v3, %s8905_s14  ;;  %v2887_v30 = vld [vmem:[%s13683_s1 + $0x128] sm:$0xff] }
 0x216   :  { %3046 = vrot.lane.b32.xlu0 %v2884_v58, %s8905_s14 }
 0x218   :  { %7887 = vmatmul.mubr.msk.f32.gmra.mrb[12].mxu0 %vm1352_vm8, %v13893_v54  ;;  %v2886_v54 = vld [vmem:[%s13683_s1 + $0x120] sm:$0xff] }
 0x219   :  { %7889 = vmatprep.mubr.msk.f32.mxu0 %vm1352_vm8, %v13894_v37  ;;  %3052 = vrot.lane.b32.xlu1 %v2887_v30, %s8905_s14  ;;  %v2889_v37 = vld [vmem:[%s13683_s1 + $0x138] sm:$0xff] }
 0x21a   :  { %3050 = vrot.lane.b32.xlu0 %v2886_v54, %s8905_s14 }
 0x21c   :  { %7890 = vmatmul.mubr.msk.f32.gmra.mrb[14].mxu0 %vm1352_vm8, %v13895_v45  ;;  %v2888_v45 = vld [vmem:[%s13683_s1 + $0x130] sm:$0xff] }
 0x21d   :  { %7892 = vmatprep.mubr.msk.f32.mxu0 %vm1352_vm8, %v13896_v26  ;;  %3056 = vrot.lane.b32.xlu1 %v2889_v37, %s8905_s14  ;;  %v2891_v26 = vld [vmem:[%s13683_s1 + $0x148] sm:$0xff] }
 0x21e   :  { %3054 = vrot.lane.b32.xlu0 %v2888_v45, %s8905_s14 }
 0x220   :  { %7893 = vmatmul.mubr.msk.f32.gmra.mrb[16].mxu0 %vm1352_vm8, %v13897_v0  ;;  %v2890_v0 = vld [vmem:[%s13683_s1 + $0x140] sm:$0xff] }
 0x221   :  { %7895 = vmatprep.mubr.msk.f32.mxu0 %vm1352_vm8, %v13898_v13  ;;  %3060 = vrot.lane.b32.xlu1 %v2891_v26, %s8905_s14  ;;  %v2893_v13 = vld [vmem:[%s13683_s1 + $0x158] sm:$0xff] }
 0x222   :  { %3058 = vrot.lane.b32.xlu0 %v2890_v0, %s8905_s14 }
 0x224   :  { %7896 = vmatmul.mubr.msk.f32.gmra.mrb[18].mxu0 %vm1352_vm8, %v13899_v61  ;;  %v2892_v61 = vld [vmem:[%s13683_s1 + $0x150] sm:$0xff] }
 0x225   :  { %7898 = vmatprep.mubr.msk.f32.mxu0 %vm1352_vm8, %v13900_v29  ;;  %3064 = vrot.lane.b32.xlu1 %v2893_v13, %s8905_s14  ;;  %v2895_v29 = vld [vmem:[%s13683_s1 + $0x168] sm:$0xff] }
 0x226   :  { %3062 = vrot.lane.b32.xlu0 %v2892_v61, %s8905_s14 }
 0x228   :  { %7899 = vmatmul.mubr.msk.f32.gmra.mrb[20].mxu0 %vm1352_vm8, %v13901_v56  ;;  %v2894_v56 = vld [vmem:[%s13683_s1 + $0x160] sm:$0xff] }
 0x229   :  { %7901 = vmatprep.mubr.msk.f32.mxu0 %vm1352_vm8, %v13902_v52  ;;  %3068 = vrot.lane.b32.xlu1 %v2895_v29, %s8905_s14  ;;  %v2897_v52 = vld [vmem:[%s13683_s1 + $0x178] sm:$0xff] }
 0x22a   :  { %3066 = vrot.lane.b32.xlu0 %v2894_v56, %s8905_s14 }
 0x22c   :  { %7902 = vmatmul.mubr.msk.f32.gmra.mrb[22].mxu0 %vm1352_vm8, %v13903_v12  ;;  %v2896_v12 = vld [vmem:[%s13683_s1 + $0x170] sm:$0xff] }
 0x22d   :  { %7904 = vmatprep.mubr.msk.f32.mxu0 %vm1352_vm8, %v13904_v39  ;;  %3072 = vrot.lane.b32.xlu1 %v2897_v52, %s8905_s14  ;;  %v2899_v39 = vld [vmem:[%s13683_s1 + $0x188] sm:$0xff] }
 0x22e   :  { %3070 = vrot.lane.b32.xlu0 %v2896_v12, %s8905_s14 }
 0x230   :  { %7905 = vmatmul.mubr.msk.f32.gmra.mrb[24].mxu0 %vm1352_vm8, %v13905_v20  ;;  %v13908_v20 = vld [vmem:[#allocation26_spill] sm:$0xff] }
 0x231   :  { %7907 = vmatprep.mubr.msk.f32.mxu0 %vm1352_vm8, %v13906_v63  ;;  %v2898_v63 = vld [vmem:[%s13683_s1 + $0x180] sm:$0xff]  ;;  %3076 = vrot.lane.b32.xlu1 %v2899_v39, %s8905_s14 }
 0x232   :  { %3074 = vrot.lane.b32.xlu0 %v2898_v63, %s8905_s14 }
 0x234   :  { %7908 = vmatmul.mubr.msk.f32.gmra.mrb[26].mxu0 %vm1352_vm8, %v13907_v19  ;;  %v2901_v19 = vld [vmem:[%s13683_s1 + $0x198] sm:$0xff] }
 0x235   :  { %7910 = vmatprep.mubr.msk.f32.mxu0 %vm1352_vm8, %v13908_v20  ;;  %3080 = vrot.lane.b32.xlu1 %v2901_v19, %s8905_s14 }
 0x236   :  { %3078 = vrot.lane.b32.xlu0 %v2900_v35, %s8905_s14 }
 0x238   :  { %7911 = vmatmul.mubr.msk.f32.gmra.mrb[28].mxu0 %vm1352_vm8, %v13909_v33 }
 0x239   :  { %7913 = vmatprep.mubr.msk.f32.mxu0 %vm1352_vm8, %v10267_v38  ;;  %3084 = vrot.lane.b32.xlu1 %v2903_v53, %s8905_s14 }
 0x23a   :  { %3082 = vrot.lane.b32.xlu0 %v2902_v6, %s8905_s14 }
 0x23c   :  { %7914 = vmatmul.mubr.msk.f32.gmra.mrb[30].mxu0 %vm1352_vm8, %v10264_v17 }
 0x23d   :  { %7916 = vmatprep.mubr.msk.f32.mxu0 %vm1352_vm8, %v10053_v50  ;;  %v2904_v50 = vld [vmem:[%s13683_s1 + $0x1b0] sm:$0xff]  ;;  %3088 = vrot.lane.b32.xlu1 %v2905_v5, %s8905_s14 }
 0x23e   :  { %3086 = vrot.lane.b32.xlu0 %v2904_v50, %s8905_s14 }
 0x240   :  { %7917 = vmatmul.mubr.msk.f32.gmra.mrb[32].mxu0 %vm1352_vm8, %v10050_v59  ;;  %v2907_v59 = vld [vmem:[%s13683_s1 + $0x1c8] sm:$0xff] }
 0x241   :  { %7919 = vmatprep.mubr.msk.f32.mxu0 %vm1352_vm8, %v10071_v15  ;;  %v2906_v15 = vld [vmem:[%s13683_s1 + $0x1c0] sm:$0xff]  ;;  %3092 = vrot.lane.b32.xlu1 %v2907_v59, %s8905_s14 }
 0x242   :  { %3090 = vrot.lane.b32.xlu0 %v2906_v15, %s8905_s14 }
 0x244   :  { %7920 = vmatmul.mubr.msk.f32.gmra.mrb[34].mxu0 %vm1352_vm8, %v10068_v1  ;;  %v2909_v1 = vld [vmem:[%s13683_s1 + $0x1d8] sm:$0xff] }
 0x245   :  { %7922 = vmatprep.mubr.msk.f32.mxu0 %vm1352_vm8, %v10085_v7  ;;  %v2908_v7 = vld [vmem:[%s13683_s1 + $0x1d0] sm:$0xff]  ;;  %3096 = vrot.lane.b32.xlu1 %v2909_v1, %s8905_s14 }
 0x246   :  { %3094 = vrot.lane.b32.xlu0 %v2908_v7, %s8905_s14 }
 0x248   :  { %7923 = vmatmul.mubr.msk.f32.gmra.mrb[36].mxu0 %vm1352_vm8, %v10082_v32  ;;  %v2911_v32 = vld [vmem:[%s13683_s1 + $0x1e8] sm:$0xff] }
 0x249   :  { %7925 = vmatprep.mubr.msk.f32.mxu0 %vm1352_vm8, %v10099_v2  ;;  %v2910_v2 = vld [vmem:[%s13683_s1 + $0x1e0] sm:$0xff]  ;;  %3100 = vrot.lane.b32.xlu1 %v2911_v32, %s8905_s14 }
 0x24a   :  { %3098 = vrot.lane.b32.xlu0 %v2910_v2, %s8905_s14 }
 0x24c   :  { %7926 = vmatmul.mubr.msk.f32.gmra.mrb[38].mxu0 %vm1352_vm8, %v10096_v46  ;;  %v2913_v46 = vld [vmem:[%s13683_s1 + $0x1f8] sm:$0xff] }
 0x24d   :  { %7928 = vmatprep.mubr.msk.f32.mxu0 %vm1352_vm8, %v10113_v27  ;;  %3104 = vrot.lane.b32.xlu1 %v2913_v46, %s8905_s14  ;;  %v2981_v27 = vpop.permute.xlu1 %2980 }
 0x250   :  { %7929 = vmatmul.mubr.msk.f32.gmra.mrb[40].mxu0 %vm1352_vm8, %v10110_v10  ;;  %v2912_v10 = vld [vmem:[%s13683_s1 + $0x1f0] sm:$0xff] }
 0x251   :  { %7931 = vmatprep.mubr.msk.f32.mxu0 %vm1352_vm8, %v10127_v42  ;;  %3102 = vrot.lane.b32.xlu0 %v2912_v10, %s8905_s14  ;;  %v2985_v42 = vpop.permute.xlu1 %2984 }
 0x254   :  { %7932 = vmatmul.mubr.msk.f32.gmra.mrb[42].mxu0 %vm1352_vm8, %v10124_v57  ;;  %v2979_v57 = vpop.permute.xlu0 %2978 }
 0x255   :  { %7934 = vmatprep.mubr.msk.f32.mxu0 %vm1352_vm8, %v10141_v24  ;;  %v2989_v24 = vpop.permute.xlu1 %2988 }
 0x258   :  { %7935 = vmatmul.mubr.msk.f32.gmra.mrb[44].mxu0 %vm1352_vm8, %v10138_v40  ;;  %v2983_v40 = vpop.permute.xlu0 %2982 }
 0x259   :  { %7937 = vmatprep.mubr.msk.f32.mxu0 %vm1352_vm8, %v10155_v51  ;;  %v2993_v51 = vpop.permute.xlu1 %2992 }
 0x25c   :  { %7938 = vmatmul.mubr.msk.f32.gmra.mrb[46].mxu0 %vm1352_vm8, %v10152_v25  ;;  %v2987_v25 = vpop.permute.xlu0 %2986 }
 0x25d   :  { %7940 = vmatprep.mubr.msk.f32.mxu0 %vm1352_vm8, %v10169_v31  ;;  %v10784_v31 = vpop.permute.xlu1 %2996 }
 0x260   :  { %7941 = vmatmul.mubr.msk.f32.gmra.mrb[48].mxu0 %vm1352_vm8, %v10166_v44  ;;  %v2991_v44 = vpop.permute.xlu0 %2990 }
 0x261   :  { %7943 = vmatprep.mubr.msk.f32.mxu0 %vm1352_vm8, %v10183_v41  ;;  %v10788_v41 = vpop.permute.xlu1 %3000 }
 0x264   :  { %7944 = vmatmul.mubr.msk.f32.gmra.mrb[50].mxu0 %vm1352_vm8, %v10180_v21  ;;  %v10786_v21 = vpop.permute.xlu0 %2994 }
 0x265   :  { %7946 = vmatprep.mubr.msk.f32.mxu0 %vm1352_vm8, %v10197_v55  ;;  %v10792_v55 = vpop.permute.xlu1 %3004 }
 0x268   :  { %7947 = vmatmul.mubr.msk.f32.gmra.mrb[52].mxu0 %vm1352_vm8, %v10194_v34  ;;  %v10790_v34 = vpop.permute.xlu0 %2998 }
 0x269   :  { %7949 = vmatprep.mubr.msk.f32.mxu0 %vm1352_vm8, %v10211_v11  ;;  %v10796_v11 = vpop.permute.xlu1 %3008 }
 0x26c   :  { %7950 = vmatmul.mubr.msk.f32.gmra.mrb[54].mxu0 %vm1352_vm8, %v10208_v14  ;;  %v10794_v14 = vpop.permute.xlu0 %3002 }
 0x26d   :  { %7952 = vmatprep.mubr.msk.f32.mxu0 %vm1352_vm8, %v10225_v28  ;;  %v10800_v28 = vpop.permute.xlu1 %3012 }
 0x270   :  { %7953 = vmatmul.mubr.msk.f32.gmra.mrb[56].mxu0 %vm1352_vm8, %v10222_v8  ;;  %v10798_v8 = vpop.permute.xlu0 %3006 }
 0x271   :  { %7955 = vmatprep.mubr.msk.f32.mxu0 %vm1352_vm8, %v10239_v23  ;;  %v10804_v23 = vpop.permute.xlu1 %3016 }
 0x274   :  { %7956 = vmatmul.mubr.msk.f32.gmra.mrb[58].mxu0 %vm1352_vm8, %v10236_v48  ;;  %v10802_v48 = vpop.permute.xlu0 %3010 }
 0x275   :  { %7958 = vmatprep.mubr.msk.f32.mxu0 %vm1352_vm8, %v10253_v43  ;;  %v10808_v43 = vpop.permute.xlu1 %3020 }
 0x278   :  { %7959 = vmatmul.mubr.msk.f32.gmra.mrb[60].mxu0 %vm1352_vm8, %v10250_v16  ;;  %v10806_v16 = vpop.permute.xlu0 %3014 }
 0x279   :  { %7961 = vmatprep.mubr.msk.f32.mxu0 %vm1352_vm8, %v10267_v38  ;;  %v10812_v38 = vpop.permute.xlu1 %3024 }
 0x27c   :  { %7962 = vmatmul.mubr.msk.f32.gmra.mrb[62].mxu0 %vm1352_vm8, %v10264_v17  ;;  %v10810_v17 = vpop.permute.xlu0 %3018 }
 0x27d   :  { %v10821_v36 = vpop.permute.xlu1 %3028 }
 0x280   :  { %v10814_v9 = vpop.permute.xlu0 %3022 }
 0x281   :  { %v10837_v37 = vpop.permute.xlu1 %3032 }
 0x284   :  { %v10823_v62 = vpop.permute.xlu0 %3026 }
 0x285   :  { %v10856_v39 = vpop.permute.xlu1 %3036 }
 0x288   :  { %v10843_v26 = vpop.permute.xlu0 %3030 }
 0x289   :  { %v10875_v1 = vpop.permute.xlu1 %3040 }
 0x28c   :  { %v10859_v33 = vpop.permute.xlu0 %3034 }
 0x290   :  { %v10881_v32 = vpop.permute.xlu0 %3038 }
 0x2d3   :  { %v7870_v49 = vpop.f32.mrb[0].mxu0 }
 0x2d4   :  { %v10826_v22 = vadd.f32 %v7870_v49, %v10819_v60  ;;  %v2397_v47 = vpop.f32.mrb[1].mxu0 }
 0x2d5   :  { %v10829_v18 = vadd.f32 %v10819_v60, %v2397_v47 }
 0x2d6   :  { %13910 = vst [vmem:[#allocation3_spill] sm:$0xff] %v10826_v22  ;;  %v3171_v4 = vadd.f32 %v2981_v27, %v10826_v22 }
 0x2d7   :  { %13911 = vst [vmem:[#allocation2_spill] sm:$0xff] %v10829_v18  ;;  %v3170_v3 = vadd.f32 %v2979_v57, %v10829_v18  ;;  %v7873_v58 = vpop.f32.mrb[2].mxu0 }
 0x2d8   :  { %v10834_v30 = vadd.f32 %v7873_v58, %v10819_v60  ;;  %3300 = vrot.lane.b32.xlu1 %v3171_v4, %s8908_s3  ;;  %v2407_v54 = vpop.f32.mrb[3].mxu0 }
 0x2d9   :  { %v10840_v45 = vadd.f32 %v10819_v60, %v2407_v54  ;;  %3298 = vrot.lane.b32.xlu0 %v3170_v3, %s8908_s3 }
 0x2da   :  { %13912 = vst [vmem:[#allocation5_spill] sm:$0xff] %v10834_v30  ;;  %v3173_v0 = vadd.f32 %v2985_v42, %v10834_v30 }
 0x2db   :  { %13913 = vst [vmem:[#allocation4_spill] sm:$0xff] %v10840_v45  ;;  %v3172_v13 = vadd.f32 %v2983_v40, %v10840_v45  ;;  %v7876_v61 = vpop.f32.mrb[4].mxu0 }
 0x2dc   :  { %v10848_v29 = vadd.f32 %v7876_v61, %v10819_v60  ;;  %3304 = vrot.lane.b32.xlu1 %v3173_v0, %s8908_s3  ;;  %v2417_v56 = vpop.f32.mrb[5].mxu0 }
 0x2dd   :  { %v10852_v52 = vadd.f32 %v10819_v60, %v2417_v56  ;;  %3302 = vrot.lane.b32.xlu0 %v3172_v13, %s8908_s3 }
 0x2de   :  { %13914 = vst [vmem:[#allocation7_spill] sm:$0xff] %v10848_v29  ;;  %v3175_v12 = vadd.f32 %v2989_v24, %v10848_v29  ;;  %v10897_v24 = vpop.permute.xlu1 %3044 }
 0x2df   :  { %13915 = vst [vmem:[#allocation6_spill] sm:$0xff] %v10852_v52  ;;  %v3174_v20 = vadd.f32 %v2987_v25, %v10852_v52  ;;  %v7879_v63 = vpop.f32.mrb[6].mxu0 }
 0x2e0   :  { %v10862_v19 = vadd.f32 %v7879_v63, %v10819_v60  ;;  %3308 = vrot.lane.b32.xlu1 %v3175_v12, %s8908_s3  ;;  %v2427_v35 = vpop.f32.mrb[7].mxu0 }
 0x2e1   :  { %v10866_v53 = vadd.f32 %v10819_v60, %v2427_v35  ;;  %3306 = vrot.lane.b32.xlu0 %v3174_v20, %s8908_s3 }
 0x2e2   :  { %13916 = vst [vmem:[#allocation9_spill] sm:$0xff] %v10862_v19  ;;  %v3177_v6 = vadd.f32 %v2993_v51, %v10862_v19  ;;  %v10919_v58 = vpop.permute.xlu1 %3048 }
 0x2e3   :  { %13917 = vst [vmem:[#allocation8_spill] sm:$0xff] %v10866_v53  ;;  %v3176_v5 = vadd.f32 %v2991_v44, %v10866_v53  ;;  %v7882_v50 = vpop.f32.mrb[8].mxu0  ;;  %v10901_v44 = vpop.permute.xlu0 %3042 }
 0x2e4   :  { %v10872_v59 = vadd.f32 %v7882_v50, %v10819_v60  ;;  %3312 = vrot.lane.b32.xlu1 %v3177_v6, %s8908_s3  ;;  %v2437_v15 = vpop.f32.mrb[9].mxu0 }
 0x2e5   :  { %v10878_v7 = vadd.f32 %v10819_v60, %v2437_v15  ;;  %3310 = vrot.lane.b32.xlu0 %v3176_v5, %s8908_s3 }
 0x2e6   :  { %13918 = vst [vmem:[#allocation11_spill] sm:$0xff] %v10872_v59  ;;  %v3179_v2 = vadd.f32 %v10784_v31, %v10872_v59  ;;  %v10941_v63 = vpop.permute.xlu1 %3052 }
 0x2e7   :  { %13919 = vst [vmem:[#allocation10_spill] sm:$0xff] %v10878_v7  ;;  %v3178_v46 = vadd.f32 %v10786_v21, %v10878_v7  ;;  %v7885_v10 = vpop.f32.mrb[10].mxu0  ;;  %v10925_v0 = vpop.permute.xlu0 %3046 }
 0x2e8   :  { %v10888_v27 = vadd.f32 %v7885_v10, %v10819_v60  ;;  %3316 = vrot.lane.b32.xlu1 %v3179_v2, %s8908_s3  ;;  %v2447_v57 = vpop.f32.mrb[11].mxu0 }
 0x2e9   :  { %v10892_v42 = vadd.f32 %v10819_v60, %v2447_v57  ;;  %3314 = vrot.lane.b32.xlu0 %v3178_v46, %s8908_s3 }
 0x2ea   :  { %13920 = vst [vmem:[#allocation13_spill] sm:$0xff] %v10888_v27  ;;  %v3181_v40 = vadd.f32 %v10788_v41, %v10888_v27  ;;  %v10963_v10 = vpop.permute.xlu1 %3056 }
 0x2eb   :  { %13921 = vst [vmem:[#allocation12_spill] sm:$0xff] %v10892_v42  ;;  %v3180_v25 = vadd.f32 %v10790_v34, %v10892_v42  ;;  %v7888_v51 = vpop.f32.mrb[12].mxu0  ;;  %v10945_v35 = vpop.permute.xlu0 %3050 }
 0x2ec   :  { %v10904_v31 = vadd.f32 %v7888_v51, %v10819_v60  ;;  %3320 = vrot.lane.b32.xlu1 %v3181_v40, %s8908_s3  ;;  %v2457_v21 = vpop.f32.mrb[13].mxu0 }
 0x2ed   :  { %v10908_v49 = vadd.f32 %v10819_v60, %v2457_v21  ;;  %3318 = vrot.lane.b32.xlu0 %v3180_v25, %s8908_s3 }
 0x2ee   :  { %13922 = vst [vmem:[#allocation15_spill] sm:$0xff] %v10904_v31  ;;  %v3183_v41 = vadd.f32 %v10792_v55, %v10904_v31 }
 0x2ef   :  { %13923 = vst [vmem:[#allocation14_spill] sm:$0xff] %v10908_v49  ;;  %v3182_v34 = vadd.f32 %v10794_v14, %v10908_v49  ;;  %v7891_v47 = vpop.f32.mrb[14].mxu0  ;;  %v10969_v40 = vpop.permute.xlu0 %3054 }
 0x2f0   :  { %v10916_v4 = vadd.f32 %v7891_v47, %v10819_v60  ;;  %3324 = vrot.lane.b32.xlu1 %v3183_v41, %s8908_s3  ;;  %v2467_v3 = vpop.f32.mrb[15].mxu0  ;;  %v10985_v47 = vpop.permute.xlu1 %3060 }
 0x2f1   :  { %v10922_v54 = vadd.f32 %v10819_v60, %v2467_v3  ;;  %3322 = vrot.lane.b32.xlu0 %v3182_v34, %s8908_s3 }
 0x2f2   :  { %13924 = vst [vmem:[#allocation17_spill] sm:$0xff] %v10916_v4  ;;  %v3185_v55 = vadd.f32 %v10796_v11, %v10916_v4 }
 0x2f3   :  { %13925 = vst [vmem:[#allocation16_spill] sm:$0xff] %v10922_v54  ;;  %v3184_v14 = vadd.f32 %v10798_v8, %v10922_v54  ;;  %v7894_v13 = vpop.f32.mrb[16].mxu0  ;;  %v10989_v3 = vpop.permute.xlu0 %3058 }
 0x2f4   :  { %v10932_v61 = vadd.f32 %v7894_v13, %v10819_v60  ;;  %3328 = vrot.lane.b32.xlu1 %v3185_v55, %s8908_s3  ;;  %v2477_v56 = vpop.f32.mrb[17].mxu0 }
 0x2f5   :  { %v10936_v12 = vadd.f32 %v10819_v60, %v2477_v56  ;;  %3326 = vrot.lane.b32.xlu0 %v3184_v14, %s8908_s3 }
 0x2f6   :  { %13926 = vst [vmem:[#allocation19_spill] sm:$0xff] %v10932_v61  ;;  %v3187_v20 = vadd.f32 %v10800_v28, %v10932_v61 }
 0x2f7   :  { %13927 = vst [vmem:[#allocation18_spill] sm:$0xff] %v10936_v12  ;;  %v3186_v11 = vadd.f32 %v10802_v48, %v10936_v12  ;;  %v7897_v8 = vpop.f32.mrb[18].mxu0 }
 0x2f8   :  { %v10948_v6 = vadd.f32 %v7897_v8, %v10819_v60  ;;  %3332 = vrot.lane.b32.xlu1 %v3187_v20, %s8908_s3  ;;  %v2487_v5 = vpop.f32.mrb[19].mxu0  ;;  %v11007_v8 = vpop.permute.xlu1 %3064 }
 0x2f9   :  { %v10952_v50 = vadd.f32 %v10819_v60, %v2487_v5  ;;  %3330 = vrot.lane.b32.xlu0 %v3186_v11, %s8908_s3 }
 0x2fa   :  { %13928 = vst [vmem:[#allocation21_spill] sm:$0xff] %v10948_v6  ;;  %v3189_v28 = vadd.f32 %v10804_v23, %v10948_v6 }
 0x2fb   :  { %13929 = vst [vmem:[#allocation20_spill] sm:$0xff] %v10952_v50  ;;  %v3188_v48 = vadd.f32 %v10806_v16, %v10952_v50  ;;  %v7900_v15 = vpop.f32.mrb[20].mxu0 }
 0x2fc   :  { %v10960_v2 = vadd.f32 %v7900_v15, %v10819_v60  ;;  %3336 = vrot.lane.b32.xlu1 %v3189_v28, %s8908_s3  ;;  %v2497_v46 = vpop.f32.mrb[21].mxu0  ;;  %v11013_v28 = vpop.permute.xlu0 %3062 }
 0x2fd   :  { %v10966_v57 = vadd.f32 %v10819_v60, %v2497_v46  ;;  %3334 = vrot.lane.b32.xlu0 %v3188_v48, %s8908_s3 }
 0x2fe   :  { %13930 = vst [vmem:[#allocation23_spill] sm:$0xff] %v10960_v2  ;;  %v3191_v23 = vadd.f32 %v10808_v43, %v10960_v2 }
 0x2ff   :  { %13931 = vst [vmem:[#allocation22_spill] sm:$0xff] %v10966_v57  ;;  %v3190_v16 = vadd.f32 %v10810_v17, %v10966_v57  ;;  %v7903_v25 = vpop.f32.mrb[22].mxu0 }
 0x300   :  { %v10976_v51 = vadd.f32 %v7903_v25, %v10819_v60  ;;  %3340 = vrot.lane.b32.xlu1 %v3191_v23, %s8908_s3  ;;  %v2507_v21 = vpop.f32.mrb[23].mxu0  ;;  %v11029_v25 = vpop.permute.xlu1 %3068 }
 0x301   :  { %v10980_v41 = vadd.f32 %v10819_v60, %v2507_v21  ;;  %3338 = vrot.lane.b32.xlu0 %v3190_v16, %s8908_s3  ;;  %v11033_v21 = vpop.permute.xlu0 %3066 }
 0x302   :  { %13932 = vst [vmem:[#allocation26_spill] sm:$0xff] %v10976_v51  ;;  %v3193_v34 = vadd.f32 %v10812_v38, %v10976_v51 }
 0x303   :  { %13933 = vst [vmem:[#allocation25_spill] sm:$0xff] %v10980_v41  ;;  %v3192_v43 = vadd.f32 %v10814_v9, %v10980_v41  ;;  %v7906_v17 = vpop.f32.mrb[24].mxu0 }
 0x304   :  { %v10992_v55 = vadd.f32 %v7906_v17, %v10819_v60  ;;  %3344 = vrot.lane.b32.xlu1 %v3193_v34, %s8908_s3  ;;  %v2517_v14 = vpop.f32.mrb[25].mxu0 }
 0x305   :  { %v10996_v13 = vadd.f32 %v10819_v60, %v2517_v14  ;;  %3342 = vrot.lane.b32.xlu0 %v3192_v43, %s8908_s3 }
 0x306   :  { %13934 = vst [vmem:[#allocation30_spill] sm:$0xff] %v10992_v55  ;;  %v3195_v38 = vadd.f32 %v10821_v36, %v10992_v55 }
 0x307   :  { %13935 = vst [vmem:[#allocation31_spill] sm:$0xff] %v10996_v13  ;;  %v3194_v9 = vadd.f32 %v10823_v62, %v10996_v13  ;;  %v7909_v56 = vpop.f32.mrb[26].mxu0 }
 0x308   :  { %v11004_v20 = vadd.f32 %v7909_v56, %v10819_v60  ;;  %3348 = vrot.lane.b32.xlu1 %v3195_v38, %s8908_s3  ;;  %v2527_v11 = vpop.f32.mrb[27].mxu0  ;;  %v11051_v56 = vpop.permute.xlu1 %3072 }
 0x309   :  { %v11010_v5 = vadd.f32 %v10819_v60, %v2527_v11  ;;  %3346 = vrot.lane.b32.xlu0 %v3194_v9, %s8908_s3 }
 0x30a   :  { %13936 = vst [vmem:[#allocation32_spill] sm:$0xff] %v11004_v20  ;;  %v3197_v36 = vadd.f32 %v10837_v37, %v11004_v20 }
 0x30b   :  { %13937 = vst [vmem:[#allocation33_spill] sm:$0xff] %v11010_v5  ;;  %v3196_v62 = vadd.f32 %v10843_v26, %v11010_v5  ;;  %v7912_v48 = vpop.f32.mrb[28].mxu0 }
 0x30c   :  { %v11020_v15 = vadd.f32 %v7912_v48, %v10819_v60  ;;  %3352 = vrot.lane.b32.xlu1 %v3197_v36, %s8908_s3  ;;  %v2537_v46 = vpop.f32.mrb[29].mxu0  ;;  %v11057_v36 = vpop.permute.xlu0 %3070 }
 0x30d   :  { %v11024_v23 = vadd.f32 %v10819_v60, %v2537_v46  ;;  %3350 = vrot.lane.b32.xlu0 %v3196_v62, %s8908_s3 }
 0x30e   :  { %13938 = vst [vmem:[#allocation34_spill] sm:$0xff] %v11020_v15  ;;  %v3199_v16 = vadd.f32 %v10856_v39, %v11020_v15 }
 0x30f   :  { %13939 = vst [vmem:[#allocation35_spill] sm:$0xff] %v11024_v23  ;;  %v3198_v37 = vadd.f32 %v10859_v33, %v11024_v23  ;;  %v7915_v26 = vpop.f32.mrb[30].mxu0 }
 0x310   :  { %v11036_v34 = vadd.f32 %v7915_v26, %v10819_v60  ;;  %3356 = vrot.lane.b32.xlu1 %v3199_v16, %s8908_s3  ;;  %v2547_v43 = vpop.f32.mrb[31].mxu0  ;;  %v11073_v26 = vpop.permute.xlu1 %3076 }
 0x311   :  { %v11040_v17 = vadd.f32 %v10819_v60, %v2547_v43  ;;  %3354 = vrot.lane.b32.xlu0 %v3198_v37, %s8908_s3  ;;  %v11077_v43 = vpop.permute.xlu0 %3074 }
 0x312   :  { %13940 = vst [vmem:[#allocation36_spill] sm:$0xff] %v11036_v34  ;;  %v3201_v39 = vadd.f32 %v10875_v1, %v11036_v34 }
 0x313   :  { %13941 = vst [vmem:[#allocation37_spill] sm:$0xff] %v11040_v17  ;;  %v3200_v33 = vadd.f32 %v10881_v32, %v11040_v17  ;;  %v7918_v14 = vpop.f32.mrb[32].mxu0 }
 0x314   :  { %v11048_v38 = vadd.f32 %v7918_v14, %v10819_v60  ;;  %3360 = vrot.lane.b32.xlu1 %v3201_v39, %s8908_s3  ;;  %v2557_v9 = vpop.f32.mrb[33].mxu0 }
 0x315   :  { %v11054_v11 = vadd.f32 %v10819_v60, %v2557_v9  ;;  %3358 = vrot.lane.b32.xlu0 %v3200_v33, %s8908_s3 }
 0x316   :  { %13942 = vst [vmem:[#allocation38_spill] sm:$0xff] %v11048_v38  ;;  %v3203_v1 = vadd.f32 %v10897_v24, %v11048_v38 }
 0x317   :  { %13943 = vst [vmem:[#allocation39_spill] sm:$0xff] %v11054_v11  ;;  %v3202_v32 = vadd.f32 %v10901_v44, %v11054_v11  ;;  %v7921_v62 = vpop.f32.mrb[34].mxu0 }
 0x318   :  { %v11064_v48 = vadd.f32 %v7921_v62, %v10819_v60  ;;  %3364 = vrot.lane.b32.xlu1 %v3203_v1, %s8908_s3  ;;  %v2567_v46 = vpop.f32.mrb[35].mxu0  ;;  %v3081_v62 = vpop.permute.xlu1 %3080 }
 0x319   :  { %v11068_v16 = vadd.f32 %v10819_v60, %v2567_v46  ;;  %3362 = vrot.lane.b32.xlu0 %v3202_v32, %s8908_s3 }
 0x31a   :  { %13944 = vst [vmem:[#allocation40_spill] sm:$0xff] %v11064_v48  ;;  %v3205_v37 = vadd.f32 %v10919_v58, %v11064_v48 }
 0x31b   :  { %13945 = vst [vmem:[#allocation41_spill] sm:$0xff] %v11068_v16  ;;  %v3204_v24 = vadd.f32 %v10925_v0, %v11068_v16  ;;  %v7924_v44 = vpop.f32.mrb[36].mxu0 }
 0x31c   :  { %v11080_v39 = vadd.f32 %v7924_v44, %v10819_v60  ;;  %3368 = vrot.lane.b32.xlu1 %v3205_v37, %s8908_s3  ;;  %v2577_v33 = vpop.f32.mrb[37].mxu0  ;;  %v3079_v37 = vpop.permute.xlu0 %3078 }
 0x31d   :  { %v11084_v14 = vadd.f32 %v10819_v60, %v2577_v33  ;;  %3366 = vrot.lane.b32.xlu0 %v3204_v24, %s8908_s3 }
 0x31e   :  { %13946 = vst [vmem:[#allocation42_spill] sm:$0xff] %v11080_v39  ;;  %v3207_v58 = vadd.f32 %v10941_v63, %v11080_v39 }
 0x31f   :  { %13947 = vst [vmem:[#allocation43_spill] sm:$0xff] %v11084_v14  ;;  %v3206_v0 = vadd.f32 %v10945_v35, %v11084_v14  ;;  %v7927_v9 = vpop.f32.mrb[38].mxu0 }
 0x320   :  { %v11092_v1 = vadd.f32 %v7927_v9, %v10819_v60  ;;  %3372 = vrot.lane.b32.xlu1 %v3207_v58, %s8908_s3  ;;  %v2587_v32 = vpop.f32.mrb[39].mxu0  ;;  %v3085_v9 = vpop.permute.xlu1 %3084 }
 0x321   :  { %v11096_v46 = vadd.f32 %v10819_v60, %v2587_v32  ;;  %3370 = vrot.lane.b32.xlu0 %v3206_v0, %s8908_s3  ;;  %v3083_v32 = vpop.permute.xlu0 %3082 }
 0x322   :  { %13948 = vst [vmem:[#allocation44_spill] sm:$0xff] %v11092_v1  ;;  %v3209_v63 = vadd.f32 %v10963_v10, %v11092_v1 }
 0x323   :  { %13949 = vst [vmem:[#allocation45_spill] sm:$0xff] %v11096_v46  ;;  %v3208_v35 = vadd.f32 %v10969_v40, %v11096_v46  ;;  %v7930_v24 = vpop.f32.mrb[40].mxu0 }
 0x324   :  { %v11104_v44 = vadd.f32 %v7930_v24, %v10819_v60  ;;  %3376 = vrot.lane.b32.xlu1 %v3209_v63, %s8908_s3  ;;  %v2597_v33 = vpop.f32.mrb[41].mxu0 }
 0x325   :  { %v11108_v58 = vadd.f32 %v10819_v60, %v2597_v33  ;;  %3374 = vrot.lane.b32.xlu0 %v3208_v35, %s8908_s3 }
 0x326   :  { %13950 = vst [vmem:[#allocation46_spill] sm:$0xff] %v11104_v44  ;;  %v3211_v0 = vadd.f32 %v10985_v47, %v11104_v44 }
 0x327   :  { %13951 = vst [vmem:[#allocation47_spill] sm:$0xff] %v11108_v58  ;;  %v3210_v10 = vadd.f32 %v10989_v3, %v11108_v58  ;;  %v7933_v40 = vpop.f32.mrb[42].mxu0 }
 0x328   :  { %v11116_v24 = vadd.f32 %v7933_v40, %v10819_v60  ;;  %3380 = vrot.lane.b32.xlu1 %v3211_v0, %s8908_s3  ;;  %v2607_v63 = vpop.f32.mrb[43].mxu0  ;;  %v3089_v0 = vpop.permute.xlu1 %3088 }
 0x329   :  { %v11120_v33 = vadd.f32 %v10819_v60, %v2607_v63  ;;  %3378 = vrot.lane.b32.xlu0 %v3210_v10, %s8908_s3  ;;  %v3087_v10 = vpop.permute.xlu0 %3086 }
 0x32a   :  { %13952 = vst [vmem:[#allocation48_spill] sm:$0xff] %v11116_v24  ;;  %v3213_v47 = vadd.f32 %v11007_v8, %v11116_v24 }
 0x32b   :  { %13953 = vst [vmem:[#allocation49_spill] sm:$0xff] %v11120_v33  ;;  %v3212_v35 = vadd.f32 %v11013_v28, %v11120_v33  ;;  %v7936_v3 = vpop.f32.mrb[44].mxu0 }
 0x32c   :  { %v11128_v58 = vadd.f32 %v7936_v3, %v10819_v60  ;;  %3384 = vrot.lane.b32.xlu1 %v3213_v47, %s8908_s3  ;;  %v2617_v40 = vpop.f32.mrb[45].mxu0 }
 0x32d   :  { %v11132_v44 = vadd.f32 %v10819_v60, %v2617_v40  ;;  %3382 = vrot.lane.b32.xlu0 %v3212_v35, %s8908_s3  ;;  %v3093_v40 = vpop.permute.xlu1 %3092 }
 0x32e   :  { %13954 = vst [vmem:[#allocation50_spill] sm:$0xff] %v11128_v58  ;;  %v3215_v8 = vadd.f32 %v11029_v25, %v11128_v58 }
 0x32f   :  { %13955 = vst [vmem:[#allocation51_spill] sm:$0xff] %v11132_v44  ;;  %v3214_v28 = vadd.f32 %v11033_v21, %v11132_v44  ;;  %v7939_v63 = vpop.f32.mrb[46].mxu0  ;;  %v3091_v44 = vpop.permute.xlu0 %3090 }
 0x330   :  { %v11140_v3 = vadd.f32 %v7939_v63, %v10819_v60  ;;  %3388 = vrot.lane.b32.xlu1 %v3215_v8, %s8908_s3  ;;  %v2627_v47 = vpop.f32.mrb[47].mxu0 }
 0x331   :  { %v11144_v33 = vadd.f32 %v10819_v60, %v2627_v47  ;;  %3386 = vrot.lane.b32.xlu0 %v3214_v28, %s8908_s3 }
 0x332   :  { %13956 = vst [vmem:[#allocation52_spill] sm:$0xff] %v11140_v3  ;;  %v3217_v35 = vadd.f32 %v11051_v56, %v11140_v3 }
 0x333   :  { %13957 = vst [vmem:[#allocation53_spill] sm:$0xff] %v11144_v33  ;;  %v3216_v25 = vadd.f32 %v11057_v36, %v11144_v33  ;;  %v7942_v21 = vpop.f32.mrb[48].mxu0 }
 0x334   :  { %v11152_v63 = vadd.f32 %v7942_v21, %v10819_v60  ;;  %3392 = vrot.lane.b32.xlu1 %v3217_v35, %s8908_s3  ;;  %v2637_v8 = vpop.f32.mrb[49].mxu0  ;;  %v3097_v35 = vpop.permute.xlu1 %3096 }
 0x335   :  { %v11156_v47 = vadd.f32 %v10819_v60, %v2637_v8  ;;  %3390 = vrot.lane.b32.xlu0 %v3216_v25, %s8908_s3  ;;  %v3095_v25 = vpop.permute.xlu0 %3094 }
 0x336   :  { %13958 = vst [vmem:[#allocation54_spill] sm:$0xff] %v11152_v63  ;;  %v3219_v56 = vadd.f32 %v11073_v26, %v11152_v63 }
 0x337   :  { %13959 = vst [vmem:[#allocation55_spill] sm:$0xff] %v11156_v47  ;;  %v3218_v28 = vadd.f32 %v11077_v43, %v11156_v47  ;;  %v7945_v36 = vpop.f32.mrb[50].mxu0 }
 0x338   :  { %v11164_v33 = vadd.f32 %v7945_v36, %v10819_v60  ;;  %3396 = vrot.lane.b32.xlu1 %v3219_v56, %s8908_s3  ;;  %v2647_v21 = vpop.f32.mrb[51].mxu0 }
 0x339   :  { %v11168_v3 = vadd.f32 %v10819_v60, %v2647_v21  ;;  %3394 = vrot.lane.b32.xlu0 %v3218_v28, %s8908_s3  ;;  %v3101_v28 = vpop.permute.xlu1 %3100 }
 0x33a   :  { %13960 = vst [vmem:[#allocation56_spill] sm:$0xff] %v11164_v33  ;;  %v3221_v8 = vadd.f32 %v3081_v62, %v11164_v33  ;;  %v3099_v33 = vpop.permute.xlu0 %3098 }
 0x33b   :  { %13961 = vst [vmem:[#allocation57_spill] sm:$0xff] %v11168_v3  ;;  %v3220_v26 = vadd.f32 %v3079_v37, %v11168_v3  ;;  %v7948_v63 = vpop.f32.mrb[52].mxu0 }
 0x33c   :  { %v11174_v43 = vadd.f32 %v7948_v63, %v10819_v60  ;;  %3400 = vrot.lane.b32.xlu1 %v3221_v8, %s8908_s3  ;;  %v2657_v36 = vpop.f32.mrb[53].mxu0 }
 0x33d   :  { %v11178_v56 = vadd.f32 %v10819_v60, %v2657_v36  ;;  %3398 = vrot.lane.b32.xlu0 %v3220_v26, %s8908_s3 }
 0x33e   :  { %13962 = vst [vmem:[#allocation58_spill] sm:$0xff] %v11174_v43  ;;  %v3223_v21 = vadd.f32 %v3085_v9, %v11174_v43 }
 0x33f   :  { %13963 = vst [vmem:[#allocation59_spill] sm:$0xff] %v11178_v56  ;;  %v3222_v47 = vadd.f32 %v3083_v32, %v11178_v56  ;;  %v7951_v62 = vpop.f32.mrb[54].mxu0  ;;  %v11197_v56 = vpop.permute.xlu1 %3104 }
 0x340   :  { %v11184_v37 = vadd.f32 %v7951_v62, %v10819_v60  ;;  %3404 = vrot.lane.b32.xlu1 %v3223_v21, %s8908_s3  ;;  %v2667_v63 = vpop.f32.mrb[55].mxu0 }
 0x341   :  { %v11188_v8 = vadd.f32 %v10819_v60, %v2667_v63  ;;  %3402 = vrot.lane.b32.xlu0 %v3222_v47, %s8908_s3  ;;  %v11203_v63 = vpop.permute.xlu0 %3102 }
 0x342   :  { %13964 = vst [vmem:[#allocation60_spill] sm:$0xff] %v11184_v37  ;;  %v3225_v26 = vadd.f32 %v3089_v0, %v11184_v37 }
 0x343   :  { %13965 = vst [vmem:[#allocation61_spill] sm:$0xff] %v11188_v8  ;;  %v3224_v9 = vadd.f32 %v3087_v10, %v11188_v8  ;;  %v7954_v36 = vpop.f32.mrb[56].mxu0 }
 0x344   :  { %v11194_v32 = vadd.f32 %v7954_v36, %v10819_v60  ;;  %3408 = vrot.lane.b32.xlu1 %v3225_v26, %s8908_s3  ;;  %v2677_v62 = vpop.f32.mrb[57].mxu0 }
 0x345   :  { %v11200_v21 = vadd.f32 %v10819_v60, %v2677_v62  ;;  %3406 = vrot.lane.b32.xlu0 %v3224_v9, %s8908_s3 }
 0x346   :  { %13966 = vst [vmem:[#allocation62_spill] sm:$0xff] %v11194_v32  ;;  %v3227_v0 = vadd.f32 %v3093_v40, %v11194_v32 }
 0x347   :  { %13967 = vst [vmem:[#allocation63_spill] sm:$0xff] %v11200_v21  ;;  %v3226_v10 = vadd.f32 %v3091_v44, %v11200_v21  ;;  %v7957_v47 = vpop.f32.mrb[58].mxu0 }
 0x348   :  { %v11208_v36 = vadd.f32 %v7957_v47, %v10819_v60  ;;  %3412 = vrot.lane.b32.xlu1 %v3227_v0, %s8908_s3  ;;  %v2687_v26 = vpop.f32.mrb[59].mxu0 }
 0x349   :  { %v11212_v8 = vadd.f32 %v10819_v60, %v2687_v26  ;;  %3410 = vrot.lane.b32.xlu0 %v3226_v10, %s8908_s3  ;;  %v3557_v26 = vld [vmem:[%s13686_s4 + $0x10] sm:$0xff]  ;;  %v3558_v10 = vld [vmem:[%s13686_s4 + $0x18] sm:$0x1] }
 0x34a   :  { %13968 = vst [vmem:[#allocation64_spill] sm:$0xff] %v11208_v36  ;;  %v3229_v9 = vadd.f32 %v3097_v35, %v11208_v36  ;;  %v3301_v62 = vpop.permute.xlu1 %3300  ;;  %v8282_v36 = vpack.c.bf16 %v3558_v10, %v3557_v26 }
 0x34b   :  { %13969 = vst [vmem:[#allocation65_spill] sm:$0xff] %v11212_v8  ;;  %v3228_v40 = vadd.f32 %v3095_v25, %v11212_v8  ;;  %3492 = vst.msk [vmem:[%s13685_s7 + $0x8] sm:$0xff] %vm3490_vm9, %v3301_v62  ;;  %v3563_v44 = vrot.slane %v3301_v62, 7  ;;  %v3299_v47 = vpop.permute.xlu0 %3298  ;;  %v7960_v0 = vpop.f32.mrb[60].mxu0 }
 0x34c   :  { %3491 = vst.msk [vmem:[%s13685_s7] sm:$0xff] %vm3490_vm9, %v3299_v47  ;;  %v3562_v25 = vrot.slane %v3299_v47, 7  ;;  %v11238_v62 = vadd.f32 %v7960_v0, %v10819_v60  ;;  %3416 = vrot.lane.b32.xlu1 %v3229_v9, %s8908_s3  ;;  %v2697_v8 = vpop.f32.mrb[61].mxu0  ;;  %8284 = vmatprep.subr.msk.bf16.mxu1 %vm11229_vm10, %v8282_v36 }
 0x34d   :  { %v3786_v21 = vsel %vm161_vm0, %v3563_v44, 0.0  ;;  %v11243_v32 = vadd.f32 %v10819_v60, %v2697_v8  ;;  %3414 = vrot.lane.b32.xlu0 %v3228_v40, %s8908_s3  ;;  %8287 = vmatpush3.bf16.msk.msra.mxu1 %vm11229_vm10, %v8282_v36 }
 0x34e   :  { %13972 = vst [vmem:[#allocation66_spill] sm:$0xff] %v11238_v62  ;;  %v11247_v37 = vsel %vm161_vm0, %v3562_v25, %v3563_v44  ;;  %v11250_v43 = vsel %vm161_vm0, 0.0, %v3562_v25  ;;  %v3305_v47 = vpop.permute.xlu1 %3304  ;;  %v3231_v9 = vadd.f32 %v3101_v28, %v11238_v62  ;;  %v3881_v44 = vrot.slane %v3786_v21, 1 }
 0x34f   :  { %13973 = vst [vmem:[#allocation67_spill] sm:$0xff] %v11243_v32  ;;  %v3230_v0 = vadd.f32 %v3099_v33, %v11243_v32  ;;  %3494 = vst.msk [vmem:[%s13685_s7 + $0x18] sm:$0xff] %vm3490_vm9, %v3305_v47  ;;  %v3303_v8 = vpop.permute.xlu0 %3302  ;;  %v7963_v40 = vpop.f32.mrb[62].mxu0  ;;  %v3879_v28 = vrot.slane %v11247_v37, 1  ;;  %v3878_v33 = vrot.slane %v11250_v43, 1  ;;  %v4217_v25 = vrot.slane %v3786_v21, 2 }
 0x350   :  { %3493 = vst.msk [vmem:[%s13685_s7 + $0x10] sm:$0xff] %vm3490_vm9, %v3303_v8  ;;  %v2707_v26 = vpop.f32.mrb[63].mxu0  ;;  %3420 = vrot.lane.b32.xlu1 %v3231_v9, %s8908_s3  ;;  %v4215_v62 = vrot.slane %v11247_v37, 2  ;;  %v4214_v9 = vrot.slane %v11250_v43, 2  ;;  %v3565_v3 = vrot.slane %v3303_v8, 7  ;;  %v11287_v24 = vadd.f32 %v7963_v40, %v10819_v60 }
 0x351   :  { %3418 = vrot.lane.b32.xlu0 %v3230_v0, %s8908_s3  ;;  %v3882_v32 = vsel %vm486_vm2, %v3879_v28, %v3881_v44  ;;  %v3566_v0 = vrot.slane %v3305_v47, 7  ;;  %v3880_v58 = vsel %vm486_vm2, %v3878_v33, %v3879_v28  ;;  %v11297_v8 = vadd.f32 %v10819_v60, %v2707_v26 }
 0x352   :  { %v3309_v10 = vpop.permute.xlu1 %3308  ;;  %13974 = vst [vmem:[#allocation68_spill] sm:$0xff] %v11287_v24  ;;  %v4216_v44 = vsel %vm828_vm1, %v4214_v9, %v4215_v62  ;;  %v11312_v60 = vsel %vm161_vm0, 0.0, %v3565_v3  ;;  %v3233_v28 = vadd.f32 %v11197_v56, %v11287_v24 }
 0x353   :  { %3496 = vst.msk [vmem:[%s13685_s7 + $0x28] sm:$0xff] %vm3490_vm9, %v3309_v10  ;;  %v3307_v36 = vpop.permute.xlu0 %3306  ;;  %13975 = vst [vmem:[#allocation69_spill] sm:$0xff] %v11297_v8  ;;  %v11307_v40 = vsel %vm161_vm0, %v3565_v3, %v3566_v0  ;;  %v3232_v3 = vadd.f32 %v11203_v63, %v11297_v8  ;;  %v3569_v9 = vrot.slane %v3309_v10, 7 }
 0x354   :  { %3495 = vst.msk [vmem:[%s13685_s7 + $0x20] sm:$0xff] %vm3490_vm9, %v3307_v36  ;;  %4034 = vrot.lane.b32.xlu1 %v3882_v32, %s8909_s21  ;;  %v3787_v32 = vsel %vm161_vm0, %v3566_v0, 0.0  ;;  %v3884_v56 = vrot.slane %v11307_v40, 1  ;;  %v3568_v0 = vrot.slane %v3307_v36, 7  ;;  %v4220_v36 = vrot.slane %v11307_v40, 2 }
 0x355   :  { %4032 = vrot.lane.b32.xlu0 %v3880_v58, %s8909_s21  ;;  %v4218_v58 = vsel %vm828_vm1, %v4215_v62, %v4217_v25  ;;  %v3886_v25 = vrot.slane %v3787_v32, 1  ;;  %v3883_v62 = vrot.slane %v11312_v60, 1 }
 0x356   :  { %v11284_v21 = vpop.permute.xlu1 %3312  ;;  %v11356_v8 = vsel %vm161_vm0, %v3568_v0, %v3569_v9  ;;  %v11361_v24 = vsel %vm161_vm0, 0.0, %v3568_v0 }
 0x357   :  { %3498 = vst.msk [vmem:[%s13685_s7 + $0x38] sm:$0xff] %vm3490_vm9, %v11284_v21  ;;  %v11294_v47 = vpop.permute.xlu0 %3310  ;;  %v3887_v10 = vsel %vm486_vm2, %v3884_v56, %v3886_v25  ;;  %v3888_v0 = vrot.slane %v11361_v24, 1 }
 0x358   :  { %3497 = vst.msk [vmem:[%s13685_s7 + $0x30] sm:$0xff] %vm3490_vm9, %v11294_v47  ;;  %4370 = vrot.lane.b32.xlu1 %v4218_v58, %s8910_s26 }
 0x359   :  { %4368 = vrot.lane.b32.xlu0 %v4216_v44, %s8910_s26  ;;  %v4222_v44 = vrot.slane %v3787_v32, 2  ;;  %v3885_v32 = vsel %vm486_vm2, %v3883_v62, %v3884_v56  ;;  %v3889_v62 = vrot.slane %v11356_v8, 1 }
 0x35a   :  { %v11315_v26 = vpop.permute.xlu1 %3316 }
 0x35b   :  { %3500 = vst.msk [vmem:[%s13685_s7 + $0x48] sm:$0xff] %vm3490_vm9, %v11315_v26  ;;  %v11324_v33 = vpop.permute.xlu0 %3314  ;;  %v4223_v56 = vsel %vm828_vm1, %v4220_v36, %v4222_v44 }
 0x35c   :  { %3499 = vst.msk [vmem:[%s13685_s7 + $0x40] sm:$0xff] %vm3490_vm9, %v11324_v33  ;;  %3424 = vrot.lane.b32.xlu1 %v3233_v28, %s8908_s3  ;;  %v4219_v28 = vrot.slane %v11312_v60, 2 }
 0x35d   :  { %3422 = vrot.lane.b32.xlu0 %v3232_v3, %s8908_s3  ;;  %v3788_v3 = vsel %vm161_vm0, %v3569_v9, 0.0 }
 0x35e   :  { %v11337_v58 = vpop.permute.xlu1 %3320  ;;  %v3891_v9 = vrot.slane %v3788_v3, 1  ;;  %v4221_v1 = vsel %vm828_vm1, %v4219_v28, %v4220_v36  ;;  %v4227_v39 = vrot.slane %v3788_v3, 2  ;;  %v3890_v3 = vsel %vm486_vm2, %v3888_v0, %v3889_v62 }
 0x35f   :  { %3502 = vst.msk [vmem:[%s13685_s7 + $0x58] sm:$0xff] %vm3490_vm9, %v11337_v58  ;;  %v11344_v63 = vpop.permute.xlu0 %3318 }
 0x360   :  { %3501 = vst.msk [vmem:[%s13685_s7 + $0x50] sm:$0xff] %vm3490_vm9, %v11344_v63  ;;  %4038 = vrot.lane.b32.xlu1 %v3887_v10, %s8909_s21  ;;  %v3572_v10 = vrot.slane %v11284_v21, 7  ;;  %v3892_v21 = vsel %vm486_vm2, %v3889_v62, %v3891_v9 }
 0x361   :  { %4036 = vrot.lane.b32.xlu0 %v3885_v32, %s8909_s21  ;;  %v3571_v32 = vrot.slane %v11294_v47, 7  ;;  %v4224_v47 = vrot.slane %v11361_v24, 2 }
 0x362   :  { %v11364_v46 = vpop.permute.xlu1 %3324  ;;  %v3789_v36 = vsel %vm161_vm0, %v3572_v10, 0.0 }
 0x363   :  { %3504 = vst.msk [vmem:[%s13685_s7 + $0x68] sm:$0xff] %vm3490_vm9, %v11364_v46  ;;  %v11371_v25 = vpop.permute.xlu0 %3322  ;;  %v11405_v28 = vsel %vm161_vm0, %v3571_v32, %v3572_v10  ;;  %v3896_v10 = vrot.slane %v3789_v36, 1  ;;  %v4232_v38 = vrot.slane %v3789_v36, 2 }
 0x364   :  { %3503 = vst.msk [vmem:[%s13685_s7 + $0x60] sm:$0xff] %vm3490_vm9, %v11371_v25  ;;  %4374 = vrot.lane.b32.xlu1 %v4223_v56, %s8910_s26  ;;  %v11410_v56 = vsel %vm161_vm0, 0.0, %v3571_v32  ;;  %v3894_v0 = vrot.slane %v11405_v28, 1 }
 0x365   :  { %4372 = vrot.lane.b32.xlu0 %v4221_v1, %s8910_s26  ;;  %v4225_v1 = vrot.slane %v11356_v8, 2  ;;  %v3893_v32 = vrot.slane %v11410_v56, 1 }
 0x366   :  { %v11386_v14 = vpop.permute.xlu1 %3328 }
 0x367   :  { %3506 = vst.msk [vmem:[%s13685_s7 + $0x78] sm:$0xff] %vm3490_vm9, %v11386_v14  ;;  %v11393_v44 = vpop.permute.xlu0 %3326  ;;  %v4228_v62 = vsel %vm828_vm1, %v4225_v1, %v4227_v39  ;;  %v4226_v48 = vsel %vm828_vm1, %v4224_v47, %v4225_v1  ;;  %v3895_v36 = vsel %vm486_vm2, %v3893_v32, %v3894_v0 }
 0x368   :  { %3505 = vst.msk [vmem:[%s13685_s7 + $0x70] sm:$0xff] %vm3490_vm9, %v11393_v44  ;;  %4042 = vrot.lane.b32.xlu1 %v3892_v21, %s8909_s21  ;;  %v3575_v21 = vrot.slane %v11315_v26, 7  ;;  %v3897_v26 = vsel %vm486_vm2, %v3894_v0, %v3896_v10 }
 0x369   :  { %4040 = vrot.lane.b32.xlu0 %v3890_v3, %s8909_s21  ;;  %v3574_v3 = vrot.slane %v11324_v33, 7  ;;  %v4229_v33 = vrot.slane %v11410_v56, 2 }
 0x36a   :  { %v11413_v16 = vpop.permute.xlu1 %3332  ;;  %v3790_v1 = vsel %vm161_vm0, %v3575_v21, 0.0 }
 0x36b   :  { %3508 = vst.msk [vmem:[%s13685_s7 + $0x88] sm:$0xff] %vm3490_vm9, %v11413_v16  ;;  %v11420_v9 = vpop.permute.xlu0 %3330  ;;  %v11454_v47 = vsel %vm161_vm0, %v3574_v3, %v3575_v21  ;;  %v3901_v21 = vrot.slane %v3790_v1, 1  ;;  %v4237_v15 = vrot.slane %v3790_v1, 2 }
 0x36c   :  { %3507 = vst.msk [vmem:[%s13685_s7 + $0x80] sm:$0xff] %vm3490_vm9, %v11420_v9  ;;  %4378 = vrot.lane.b32.xlu1 %v4228_v62, %s8910_s26  ;;  %v11459_v62 = vsel %vm161_vm0, 0.0, %v3574_v3  ;;  %v3899_v32 = vrot.slane %v11454_v47, 1 }
 0x36d   :  { %4376 = vrot.lane.b32.xlu0 %v4226_v48, %s8910_s26  ;;  %v4230_v48 = vrot.slane %v11405_v28, 2  ;;  %v3898_v3 = vrot.slane %v11459_v62, 1 }
 0x36e   :  { %v11435_v11 = vpop.permute.xlu1 %3336 }
 0x36f   :  { %3510 = vst.msk [vmem:[%s13685_s7 + $0x98] sm:$0xff] %vm3490_vm9, %v11435_v11  ;;  %v11442_v39 = vpop.permute.xlu0 %3334  ;;  %v4233_v0 = vsel %vm828_vm1, %v4230_v48, %v4232_v38  ;;  %v4231_v34 = vsel %vm828_vm1, %v4229_v33, %v4230_v48  ;;  %v3900_v1 = vsel %vm486_vm2, %v3898_v3, %v3899_v32 }
 0x370   :  { %3509 = vst.msk [vmem:[%s13685_s7 + $0x90] sm:$0xff] %vm3490_vm9, %v11442_v39  ;;  %4046 = vrot.lane.b32.xlu1 %v3897_v26, %s8909_s21  ;;  %v3578_v26 = vrot.slane %v11337_v58, 7  ;;  %v3902_v58 = vsel %vm486_vm2, %v3899_v32, %v3901_v21 }
 0x371   :  { %4044 = vrot.lane.b32.xlu0 %v3895_v36, %s8909_s21  ;;  %v3577_v36 = vrot.slane %v11344_v63, 7  ;;  %v4234_v63 = vrot.slane %v11459_v62, 2 }
 0x372   :  { %v11462_v17 = vpop.permute.xlu1 %3340  ;;  %v3791_v48 = vsel %vm161_vm0, %v3578_v26, 0.0 }
 0x373   :  { %3512 = vst.msk [vmem:[%s13685_s7 + $0xa8] sm:$0xff] %vm3490_vm9, %v11462_v17  ;;  %v11469_v10 = vpop.permute.xlu0 %3338  ;;  %v11503_v33 = vsel %vm161_vm0, %v3577_v36, %v3578_v26  ;;  %v3906_v26 = vrot.slane %v3791_v48, 1  ;;  %v4242_v55 = vrot.slane %v3791_v48, 2 }
 0x374   :  { %3511 = vst.msk [vmem:[%s13685_s7 + $0xa0] sm:$0xff] %vm3490_vm9, %v11469_v10  ;;  %4382 = vrot.lane.b32.xlu1 %v4233_v0, %s8910_s26  ;;  %v11508_v0 = vsel %vm161_vm0, 0.0, %v3577_v36  ;;  %v3904_v3 = vrot.slane %v11503_v33, 1 }
 0x375   :  { %4380 = vrot.lane.b32.xlu0 %v4231_v34, %s8910_s26  ;;  %v4235_v34 = vrot.slane %v11454_v47, 2  ;;  %v3903_v36 = vrot.slane %v11508_v0, 1 }
 0x376   :  { %v11484_v23 = vpop.permute.xlu1 %3344 }
 0x377   :  { %3514 = vst.msk [vmem:[%s13685_s7 + $0xb8] sm:$0xff] %vm3490_vm9, %v11484_v23  ;;  %v11491_v38 = vpop.permute.xlu0 %3342  ;;  %v4238_v32 = vsel %vm828_vm1, %v4235_v34, %v4237_v15  ;;  %v4236_v20 = vsel %vm828_vm1, %v4234_v63, %v4235_v34  ;;  %v3905_v48 = vsel %vm486_vm2, %v3903_v36, %v3904_v3 }
 0x378   :  { %3513 = vst.msk [vmem:[%s13685_s7 + $0xb0] sm:$0xff] %vm3490_vm9, %v11491_v38  ;;  %4050 = vrot.lane.b32.xlu1 %v3902_v58, %s8909_s21  ;;  %v3581_v58 = vrot.slane %v11364_v46, 7  ;;  %v3907_v46 = vsel %vm486_vm2, %v3904_v3, %v3906_v26 }
 0x379   :  { %4048 = vrot.lane.b32.xlu0 %v3900_v1, %s8909_s21  ;;  %v3580_v1 = vrot.slane %v11371_v25, 7  ;;  %v4239_v25 = vrot.slane %v11508_v0, 2 }
 0x37a   :  { %v11511_v5 = vpop.permute.xlu1 %3348  ;;  %v3792_v34 = vsel %vm161_vm0, %v3581_v58, 0.0 }
 0x37b   :  { %3516 = vst.msk [vmem:[%s13685_s7 + $0xc8] sm:$0xff] %vm3490_vm9, %v11511_v5  ;;  %v11518_v21 = vpop.permute.xlu0 %3346  ;;  %v11552_v63 = vsel %vm161_vm0, %v3580_v1, %v3581_v58  ;;  %v3911_v58 = vrot.slane %v3792_v34, 1  ;;  %v4247_v2 = vrot.slane %v3792_v34, 2 }
 0x37c   :  { %3515 = vst.msk [vmem:[%s13685_s7 + $0xc0] sm:$0xff] %vm3490_vm9, %v11518_v21  ;;  %4386 = vrot.lane.b32.xlu1 %v4238_v32, %s8910_s26  ;;  %v11557_v32 = vsel %vm161_vm0, 0.0, %v3580_v1  ;;  %v3909_v36 = vrot.slane %v11552_v63, 1 }
 0x37d   :  { %4384 = vrot.lane.b32.xlu0 %v4236_v20, %s8910_s26  ;;  %v4240_v20 = vrot.slane %v11503_v33, 2  ;;  %v3908_v1 = vrot.slane %v11557_v32, 1 }
 0x37e   :  { %v11533_v13 = vpop.permute.xlu1 %3352 }
 0x37f   :  { %3518 = vst.msk [vmem:[%s13685_s7 + $0xd8] sm:$0xff] %vm3490_vm9, %v11533_v13  ;;  %v11540_v15 = vpop.permute.xlu0 %3350  ;;  %v4243_v3 = vsel %vm828_vm1, %v4240_v20, %v4242_v55  ;;  %v4241_v51 = vsel %vm828_vm1, %v4239_v25, %v4240_v20  ;;  %v3910_v34 = vsel %vm486_vm2, %v3908_v1, %v3909_v36 }
 0x380   :  { %3517 = vst.msk [vmem:[%s13685_s7 + $0xd0] sm:$0xff] %vm3490_vm9, %v11540_v15  ;;  %4054 = vrot.lane.b32.xlu1 %v3907_v46, %s8909_s21  ;;  %v3584_v46 = vrot.slane %v11386_v14, 7  ;;  %v3912_v14 = vsel %vm486_vm2, %v3909_v36, %v3911_v58 }
 0x381   :  { %4052 = vrot.lane.b32.xlu0 %v3905_v48, %s8909_s21  ;;  %v3583_v48 = vrot.slane %v11393_v44, 7  ;;  %v4244_v44 = vrot.slane %v11557_v32, 2 }
 0x382   :  { %v11560_v41 = vpop.permute.xlu1 %3356  ;;  %v3793_v20 = vsel %vm161_vm0, %v3584_v46, 0.0 }
 0x383   :  { %3520 = vst.msk [vmem:[%s13685_s7 + $0xe8] sm:$0xff] %vm3490_vm9, %v11560_v41  ;;  %v11567_v26 = vpop.permute.xlu0 %3354  ;;  %v11601_v25 = vsel %vm161_vm0, %v3583_v48, %v3584_v46  ;;  %v3916_v46 = vrot.slane %v3793_v20, 1  ;;  %v4252_v61 = vrot.slane %v3793_v20, 2 }
 0x384   :  { %3519 = vst.msk [vmem:[%s13685_s7 + $0xe0] sm:$0xff] %vm3490_vm9, %v11567_v26  ;;  %4390 = vrot.lane.b32.xlu1 %v4243_v3, %s8910_s26  ;;  %v11606_v3 = vsel %vm161_vm0, 0.0, %v3583_v48  ;;  %v3914_v1 = vrot.slane %v11601_v25, 1 }
 0x385   :  { %4388 = vrot.lane.b32.xlu0 %v4241_v51, %s8910_s26  ;;  %v4245_v51 = vrot.slane %v11552_v63, 2  ;;  %v3913_v48 = vrot.slane %v11606_v3, 1 }
 0x386   :  { %v11582_v57 = vpop.permute.xlu1 %3360 }
 0x387   :  { %3522 = vst.msk [vmem:[%s13685_s7 + $0xf8] sm:$0xff] %vm3490_vm9, %v11582_v57  ;;  %v11589_v55 = vpop.permute.xlu0 %3358  ;;  %v4248_v36 = vsel %vm828_vm1, %v4245_v51, %v4247_v2  ;;  %v4246_v6 = vsel %vm828_vm1, %v4244_v44, %v4245_v51  ;;  %v3915_v20 = vsel %vm486_vm2, %v3913_v48, %v3914_v1 }
 0x388   :  { %3521 = vst.msk [vmem:[%s13685_s7 + $0xf0] sm:$0xff] %vm3490_vm9, %v11589_v55  ;;  %4058 = vrot.lane.b32.xlu1 %v3912_v14, %s8909_s21  ;;  %v3587_v14 = vrot.slane %v11413_v16, 7  ;;  %v3917_v16 = vsel %vm486_vm2, %v3914_v1, %v3916_v46 }
 0x389   :  { %4056 = vrot.lane.b32.xlu0 %v3910_v34, %s8909_s21  ;;  %v3586_v34 = vrot.slane %v11420_v9, 7  ;;  %v4249_v9 = vrot.slane %v11606_v3, 2 }
 0x38a   :  { %v11609_v50 = vpop.permute.xlu1 %3364  ;;  %v3794_v51 = vsel %vm161_vm0, %v3587_v14, 0.0 }
 0x38b   :  { %3524 = vst.msk [vmem:[%s13685_s7 + $0x108] sm:$0xff] %vm3490_vm9, %v11609_v50  ;;  %v11616_v58 = vpop.permute.xlu0 %3362  ;;  %v11650_v44 = vsel %vm161_vm0, %v3586_v34, %v3587_v14  ;;  %v3921_v14 = vrot.slane %v3794_v51, 1  ;;  %v4257_v31 = vrot.slane %v3794_v51, 2 }
 0x38c   :  { %3523 = vst.msk [vmem:[%s13685_s7 + $0x100] sm:$0xff] %vm3490_vm9, %v11616_v58  ;;  %4394 = vrot.lane.b32.xlu1 %v4248_v36, %s8910_s26  ;;  %v11655_v36 = vsel %vm161_vm0, 0.0, %v3586_v34  ;;  %v3919_v48 = vrot.slane %v11650_v44, 1 }
 0x38d   :  { %4392 = vrot.lane.b32.xlu0 %v4246_v6, %s8910_s26  ;;  %v4250_v6 = vrot.slane %v11601_v25, 2  ;;  %v3918_v34 = vrot.slane %v11655_v36, 1 }
 0x38e   :  { %v11631_v12 = vpop.permute.xlu1 %3368 }
 0x38f   :  { %3526 = vst.msk [vmem:[%s13685_s7 + $0x118] sm:$0xff] %vm3490_vm9, %v11631_v12  ;;  %v11638_v2 = vpop.permute.xlu0 %3366  ;;  %v4253_v1 = vsel %vm828_vm1, %v4250_v6, %v4252_v61  ;;  %v4251_v4 = vsel %vm828_vm1, %v4249_v9, %v4250_v6  ;;  %v3920_v51 = vsel %vm486_vm2, %v3918_v34, %v3919_v48 }
 0x390   :  { %3525 = vst.msk [vmem:[%s13685_s7 + $0x110] sm:$0xff] %vm3490_vm9, %v11638_v2  ;;  %4062 = vrot.lane.b32.xlu1 %v3917_v16, %s8909_s21  ;;  %v3590_v16 = vrot.slane %v11435_v11, 7  ;;  %v3922_v11 = vsel %vm486_vm2, %v3919_v48, %v3921_v14 }
 0x391   :  { %4060 = vrot.lane.b32.xlu0 %v3915_v20, %s8909_s21  ;;  %v3589_v20 = vrot.slane %v11442_v39, 7  ;;  %v4254_v39 = vrot.slane %v11655_v36, 2 }
 0x392   :  { %v11658_v54 = vpop.permute.xlu1 %3372  ;;  %v3795_v6 = vsel %vm161_vm0, %v3590_v16, 0.0 }
 0x393   :  { %3528 = vst.msk [vmem:[%s13685_s7 + $0x128] sm:$0xff] %vm3490_vm9, %v11658_v54  ;;  %v11665_v46 = vpop.permute.xlu0 %3370  ;;  %v11699_v9 = vsel %vm161_vm0, %v3589_v20, %v3590_v16  ;;  %v3926_v16 = vrot.slane %v3795_v6, 1  ;;  %v4262_v59 = vrot.slane %v3795_v6, 2 }
 0x394   :  { %3527 = vst.msk [vmem:[%s13685_s7 + $0x120] sm:$0xff] %vm3490_vm9, %v11665_v46  ;;  %4398 = vrot.lane.b32.xlu1 %v4253_v1, %s8910_s26  ;;  %v11704_v1 = vsel %vm161_vm0, 0.0, %v3589_v20  ;;  %v3924_v34 = vrot.slane %v11699_v9, 1 }
 0x395   :  { %4396 = vrot.lane.b32.xlu0 %v4251_v4, %s8910_s26  ;;  %v4255_v4 = vrot.slane %v11650_v44, 2  ;;  %v3923_v20 = vrot.slane %v11704_v1, 1 }
 0x396   :  { %v11680_v49 = vpop.permute.xlu1 %3376 }
 0x397   :  { %3530 = vst.msk [vmem:[%s13685_s7 + $0x138] sm:$0xff] %vm3490_vm9, %v11680_v49  ;;  %v11687_v61 = vpop.permute.xlu0 %3374  ;;  %v4258_v48 = vsel %vm828_vm1, %v4255_v4, %v4257_v31  ;;  %v4256_v27 = vsel %vm828_vm1, %v4254_v39, %v4255_v4  ;;  %v3925_v6 = vsel %vm486_vm2, %v3923_v20, %v3924_v34 }
 0x398   :  { %3529 = vst.msk [vmem:[%s13685_s7 + $0x130] sm:$0xff] %vm3490_vm9, %v11687_v61  ;;  %4066 = vrot.lane.b32.xlu1 %v3922_v11, %s8909_s21  ;;  %v3593_v11 = vrot.slane %v11462_v17, 7  ;;  %v3927_v17 = vsel %vm486_vm2, %v3924_v34, %v3926_v16 }
 0x399   :  { %4064 = vrot.lane.b32.xlu0 %v3920_v51, %s8909_s21  ;;  %v3592_v51 = vrot.slane %v11469_v10, 7  ;;  %v4259_v10 = vrot.slane %v11704_v1, 2 }
 0x39a   :  { %v11707_v42 = vpop.permute.xlu1 %3380  ;;  %v3796_v4 = vsel %vm161_vm0, %v3593_v11, 0.0 }
 0x39b   :  { %3532 = vst.msk [vmem:[%s13685_s7 + $0x148] sm:$0xff] %vm3490_vm9, %v11707_v42  ;;  %v11714_v14 = vpop.permute.xlu0 %3378  ;;  %v11748_v39 = vsel %vm161_vm0, %v3592_v51, %v3593_v11  ;;  %v3931_v11 = vrot.slane %v3796_v4, 1  ;;  %v4267_v29 = vrot.slane %v3796_v4, 2 }
 0x39c   :  { %3531 = vst.msk [vmem:[%s13685_s7 + $0x140] sm:$0xff] %vm3490_vm9, %v11714_v14  ;;  %4402 = vrot.lane.b32.xlu1 %v4258_v48, %s8910_s26  ;;  %13976 = vst [vmem:[#allocation70_spill] sm:$0xff] %v11748_v39  ;;  %v11753_v48 = vsel %vm161_vm0, 0.0, %v3592_v51  ;;  %v3929_v20 = vrot.slane %v11748_v39, 1 }
 0x39d   :  { %4400 = vrot.lane.b32.xlu0 %v4256_v27, %s8910_s26  ;;  %v4260_v27 = vrot.slane %v11699_v9, 2  ;;  %13977 = vst [vmem:[#allocation71_spill] sm:$0xff] %v11753_v48  ;;  %v3928_v51 = vrot.slane %v11753_v48, 1 }
 0x39e   :  { %v11729_v7 = vpop.permute.xlu1 %3384 }
 0x39f   :  { %3534 = vst.msk [vmem:[%s13685_s7 + $0x158] sm:$0xff] %vm3490_vm9, %v11729_v7  ;;  %v11736_v31 = vpop.permute.xlu0 %3382  ;;  %v4263_v34 = vsel %vm828_vm1, %v4260_v27, %v4262_v59  ;;  %v4261_v19 = vsel %vm828_vm1, %v4259_v10, %v4260_v27  ;;  %v3930_v4 = vsel %vm486_vm2, %v3928_v51, %v3929_v20 }
 0x3a0   :  { %3533 = vst.msk [vmem:[%s13685_s7 + $0x150] sm:$0xff] %vm3490_vm9, %v11736_v31  ;;  %4070 = vrot.lane.b32.xlu1 %v3927_v17, %s8909_s21  ;;  %v3596_v17 = vrot.slane %v11484_v23, 7  ;;  %v3932_v23 = vsel %vm486_vm2, %v3929_v20, %v3931_v11 }
 0x3a1   :  { %4068 = vrot.lane.b32.xlu0 %v3925_v6, %s8909_s21  ;;  %v3595_v6 = vrot.slane %v11491_v38, 7  ;;  %v4264_v38 = vrot.slane %v11753_v48, 2 }
 0x3a2   :  { %v11756_v53 = vpop.permute.xlu1 %3388  ;;  %v3797_v27 = vsel %vm161_vm0, %v3596_v17, 0.0 }
 0x3a3   :  { %3536 = vst.msk [vmem:[%s13685_s7 + $0x168] sm:$0xff] %vm3490_vm9, %v11756_v53  ;;  %v11763_v16 = vpop.permute.xlu0 %3386  ;;  %v11797_v10 = vsel %vm161_vm0, %v3595_v6, %v3596_v17  ;;  %v3936_v17 = vrot.slane %v3797_v27, 1  ;;  %v4272_v22 = vrot.slane %v3797_v27, 2 }
 0x3a4   :  { %3535 = vst.msk [vmem:[%s13685_s7 + $0x160] sm:$0xff] %vm3490_vm9, %v11763_v16  ;;  %4406 = vrot.lane.b32.xlu1 %v4263_v34, %s8910_s26  ;;  %13978 = vst [vmem:[#allocation72_spill] sm:$0xff] %v11797_v10  ;;  %v11802_v34 = vsel %vm161_vm0, 0.0, %v3595_v6  ;;  %v3934_v51 = vrot.slane %v11797_v10, 1 }
 0x3a5   :  { %4404 = vrot.lane.b32.xlu0 %v4261_v19, %s8910_s26  ;;  %v4265_v19 = vrot.slane %v11748_v39, 2  ;;  %13979 = vst [vmem:[#allocation73_spill] sm:$0xff] %v11802_v34  ;;  %v3933_v6 = vrot.slane %v11802_v34, 1 }
 0x3a6   :  { %v11778_v52 = vpop.permute.xlu1 %3392 }
 0x3a7   :  { %3538 = vst.msk [vmem:[%s13685_s7 + $0x178] sm:$0xff] %vm3490_vm9, %v11778_v52  ;;  %v11785_v59 = vpop.permute.xlu0 %3390  ;;  %v4268_v20 = vsel %vm828_vm1, %v4265_v19, %v4267_v29  ;;  %v4266_v30 = vsel %vm828_vm1, %v4264_v38, %v4265_v19  ;;  %v3935_v27 = vsel %vm486_vm2, %v3933_v6, %v3934_v51 }
 0x3a8   :  { %3537 = vst.msk [vmem:[%s13685_s7 + $0x170] sm:$0xff] %vm3490_vm9, %v11785_v59  ;;  %4074 = vrot.lane.b32.xlu1 %v3932_v23, %s8909_s21  ;;  %v3599_v23 = vrot.slane %v11511_v5, 7  ;;  %v3937_v5 = vsel %vm486_vm2, %v3934_v51, %v3936_v17 }
 0x3a9   :  { %4072 = vrot.lane.b32.xlu0 %v3930_v4, %s8909_s21  ;;  %v3598_v4 = vrot.slane %v11518_v21, 7  ;;  %v4269_v21 = vrot.slane %v11802_v34, 2 }
 0x3aa   :  { %v11805_v45 = vpop.permute.xlu1 %3396  ;;  %v3798_v19 = vsel %vm161_vm0, %v3599_v23, 0.0 }
 0x3ab   :  { %3540 = vst.msk [vmem:[%s13685_s7 + $0x188] sm:$0xff] %vm3490_vm9, %v11805_v45  ;;  %v11812_v11 = vpop.permute.xlu0 %3394  ;;  %v11846_v38 = vsel %vm161_vm0, %v3598_v4, %v3599_v23  ;;  %v3941_v23 = vrot.slane %v3798_v19, 1  ;;  %v4277_v48 = vrot.slane %v3798_v19, 2 }
 0x3ac   :  { %3539 = vst.msk [vmem:[%s13685_s7 + $0x180] sm:$0xff] %vm3490_vm9, %v11812_v11  ;;  %4410 = vrot.lane.b32.xlu1 %v4268_v20, %s8910_s26  ;;  %13980 = vst [vmem:[#allocation74_spill] sm:$0xff] %v11846_v38  ;;  %v11851_v20 = vsel %vm161_vm0, 0.0, %v3598_v4  ;;  %v3939_v6 = vrot.slane %v11846_v38, 1 }
 0x3ad   :  { %4408 = vrot.lane.b32.xlu0 %v4266_v30, %s8910_s26  ;;  %v4270_v30 = vrot.slane %v11797_v10, 2  ;;  %13981 = vst [vmem:[#allocation75_spill] sm:$0xff] %v11851_v20  ;;  %v3938_v4 = vrot.slane %v11851_v20, 1 }
 0x3ae   :  { %v11827_v18 = vpop.permute.xlu1 %3400 }
 0x3af   :  { %3542 = vst.msk [vmem:[%s13685_s7 + $0x198] sm:$0xff] %vm3490_vm9, %v11827_v18  ;;  %v11834_v29 = vpop.permute.xlu0 %3398  ;;  %v4273_v51 = vsel %vm828_vm1, %v4270_v30, %v4272_v22  ;;  %v4271_v10 = vsel %vm828_vm1, %v4269_v21, %v4270_v30  ;;  %v3940_v19 = vsel %vm486_vm2, %v3938_v4, %v3939_v6 }
 0x3b0   :  { %3541 = vst.msk [vmem:[%s13685_s7 + $0x190] sm:$0xff] %vm3490_vm9, %v11834_v29  ;;  %4078 = vrot.lane.b32.xlu1 %v3937_v5, %s8909_s21  ;;  %v3602_v5 = vrot.slane %v11533_v13, 7  ;;  %v3942_v13 = vsel %vm486_vm2, %v3939_v6, %v3941_v23 }
 0x3b1   :  { %4076 = vrot.lane.b32.xlu0 %v3935_v27, %s8909_s21  ;;  %v3601_v27 = vrot.slane %v11540_v15, 7  ;;  %v4275_v15 = vrot.slane %v11846_v38, 2 }
 0x3b2   :  { %v11854_v39 = vpop.permute.xlu1 %3404  ;;  %v3799_v30 = vsel %vm161_vm0, %v3602_v5, 0.0 }
 0x3b3   :  { %3544 = vst.msk [vmem:[%s13685_s7 + $0x1a8] sm:$0xff] %vm3490_vm9, %v11854_v39  ;;  %v11861_v17 = vpop.permute.xlu0 %3402  ;;  %v11895_v21 = vsel %vm161_vm0, %v3601_v27, %v3602_v5  ;;  %v3946_v5 = vrot.slane %v3799_v30, 1  ;;  %v4278_v6 = vsel %vm828_vm1, %v4275_v15, %v4277_v48 }
 0x3b4   :  { %3543 = vst.msk [vmem:[%s13685_s7 + $0x1a0] sm:$0xff] %vm3490_vm9, %v11861_v17  ;;  %4414 = vrot.lane.b32.xlu1 %v4273_v51, %s8910_s26  ;;  %13983 = vst [vmem:[#allocation77_spill] sm:$0xff] %v11895_v21  ;;  %v11900_v51 = vsel %vm161_vm0, 0.0, %v3601_v27  ;;  %v3944_v4 = vrot.slane %v11895_v21, 1 }
 0x3b5   :  { %4412 = vrot.lane.b32.xlu0 %v4271_v10, %s8910_s26  ;;  %v4274_v10 = vrot.slane %v11851_v20, 2  ;;  %13984 = vst [vmem:[#allocation78_spill] sm:$0xff] %v11900_v51  ;;  %v3943_v27 = vrot.slane %v11900_v51, 1  ;;  %v4282_v20 = vrot.slane %v3799_v30, 2 }
 0x3b6   :  { %v11876_v34 = vpop.permute.xlu1 %3408 }
 0x3b7   :  { %3546 = vst.msk [vmem:[%s13685_s7 + $0x1b8] sm:$0xff] %vm3490_vm9, %v11876_v34  ;;  %v11883_v22 = vpop.permute.xlu0 %3406  ;;  %v4276_v38 = vsel %vm828_vm1, %v4274_v10, %v4275_v15  ;;  %v4279_v15 = vrot.slane %v11900_v51, 2  ;;  %v3945_v30 = vsel %vm486_vm2, %v3943_v27, %v3944_v4  ;;  %v3607_v51 = vrot.slane %v11589_v55, 7 }
 0x3b8   :  { %13982 = vst [vmem:[#allocation76_spill] sm:$0xff] %v11883_v22  ;;  %3545 = vst.msk [vmem:[%s13685_s7 + $0x1b0] sm:$0xff] %vm3490_vm9, %v11883_v22  ;;  %4082 = vrot.lane.b32.xlu1 %v3942_v13, %s8909_s21  ;;  %v3605_v13 = vrot.slane %v11560_v41, 7 }
 0x3b9   :  { %4080 = vrot.lane.b32.xlu0 %v3940_v19, %s8909_s21  ;;  %v3604_v19 = vrot.slane %v11567_v26, 7  ;;  %v3947_v26 = vsel %vm486_vm2, %v3944_v4, %v3946_v5 }
 0x3ba   :  { %v11903_v22 = vpop.permute.xlu1 %3412 }
 0x3bb   :  { %13985 = vst [vmem:[#allocation79_spill] sm:$0xff] %v11903_v22  ;;  %3548 = vst.msk [vmem:[%s13685_s7 + $0x1c8] sm:$0xff] %vm3490_vm9, %v11903_v22  ;;  %v11910_v23 = vpop.permute.xlu0 %3410  ;;  %v11944_v10 = vsel %vm161_vm0, %v3604_v19, %v3605_v13 }
 0x3bc   :  { %13986 = vst [vmem:[#allocation80_spill] sm:$0xff] %v11910_v23  ;;  %3547 = vst.msk [vmem:[%s13685_s7 + $0x1c0] sm:$0xff] %vm3490_vm9, %v11910_v23  ;;  %4418 = vrot.lane.b32.xlu1 %v4278_v6, %s8910_s26  ;;  %v3800_v23 = vsel %vm161_vm0, %v3605_v13, 0.0  ;;  %v11949_v6 = vsel %vm161_vm0, 0.0, %v3604_v19  ;;  %v3949_v4 = vrot.slane %v11944_v10, 1 }
 0x3bd   :  { %4416 = vrot.lane.b32.xlu0 %v4276_v38, %s8910_s26  ;;  %v4280_v38 = vrot.slane %v11895_v21, 2  ;;  %13989 = vst [vmem:[#allocation83_spill] sm:$0xff] %v11944_v10  ;;  %13990 = vst [vmem:[#allocation84_spill] sm:$0xff] %v11949_v6  ;;  %v3608_v21 = vrot.slane %v11582_v57, 7  ;;  %v3948_v57 = vrot.slane %v11949_v6, 1  ;;  %v4287_v27 = vrot.slane %v3800_v23, 2 }
 0x3be   :  { %v11925_v41 = vpop.permute.xlu1 %3416  ;;  %v4284_v22 = vrot.slane %v11949_v6, 2 }
 0x3bf   :  { %13987 = vst [vmem:[#allocation81_spill] sm:$0xff] %v11925_v41  ;;  %3550 = vst.msk [vmem:[%s13685_s7 + $0x1d8] sm:$0xff] %vm3490_vm9, %v11925_v41  ;;  %v11932_v48 = vpop.permute.xlu0 %3414  ;;  %v3951_v41 = vrot.slane %v3800_v23, 1  ;;  %v4283_v13 = vsel %vm828_vm1, %v4280_v38, %v4282_v20  ;;  %v4281_v55 = vsel %vm828_vm1, %v4279_v15, %v4280_v38  ;;  %v3950_v23 = vsel %vm486_vm2, %v3948_v57, %v3949_v4 }
 0x3c0   :  { %13988 = vst [vmem:[#allocation82_spill] sm:$0xff] %v11932_v48  ;;  %3549 = vst.msk [vmem:[%s13685_s7 + $0x1d0] sm:$0xff] %vm3490_vm9, %v11932_v48  ;;  %4086 = vrot.lane.b32.xlu1 %v3947_v26, %s8909_s21  ;;  %v3801_v26 = vsel %vm161_vm0, %v3608_v21, 0.0 }
 0x3c1   :  { %4084 = vrot.lane.b32.xlu0 %v3945_v30, %s8909_s21  ;;  %v11976_v30 = vsel %vm161_vm0, 0.0, %v3607_v51  ;;  %v3952_v20 = vsel %vm486_vm2, %v3949_v4, %v3951_v41  ;;  %v4682_v38 = vrot.slane %v3801_v26, 1  ;;  %v3611_v41 = vrot.slane %v11609_v50, 7 }
 0x3c2   :  { %v11952_v48 = vpop.permute.xlu1 %3420  ;;  %v4679_v15 = vrot.slane %v11976_v30, 1  ;;  %v3610_v4 = vrot.slane %v11616_v58, 7 }
 0x3c3   :  { %13991 = vst [vmem:[#allocation85_spill] sm:$0xff] %v11952_v48  ;;  %v11954_v5 = vpop.permute.xlu0 %3418  ;;  %3552 = vst.msk [vmem:[%s13685_s7 + $0x1e8] sm:$0xff] %vm3490_vm9, %v11952_v48  ;;  %v4285_v48 = vrot.slane %v11944_v10, 2 }
 0x3c4   :  { %13992 = vst [vmem:[#allocation86_spill] sm:$0xff] %v11954_v5  ;;  %3551 = vst.msk [vmem:[%s13685_s7 + $0x1e0] sm:$0xff] %vm3490_vm9, %v11954_v5  ;;  %4422 = vrot.lane.b32.xlu1 %v4283_v13, %s8910_s26  ;;  %v11982_v13 = vsel %vm161_vm0, %v3607_v51, %v3608_v21 }
 0x3c5   :  { %4420 = vrot.lane.b32.xlu0 %v4281_v55, %s8910_s26  ;;  %v4288_v21 = vsel %vm828_vm1, %v4285_v48, %v4287_v27  ;;  %v4680_v51 = vrot.slane %v11982_v13, 1  ;;  %v4286_v50 = vsel %vm828_vm1, %v4284_v22, %v4285_v48  ;;  %v4702_v48 = vrot.slane %v11982_v13, 2 }
 0x3c6   :  { %v4035_v19 = vpop.permute.xlu1 %4034 }
 0x3c7   :  { %v4033_v5 = vpop.permute.xlu0 %4032  ;;  %v4553_v57 = vsel %vm3490_vm9, %v11247_v37, %v4035_v19  ;;  %v4704_v37 = vrot.slane %v3801_v26, 2  ;;  %v4683_v22 = vsel %vm486_vm2, %v4680_v51, %v4682_v38  ;;  %v4681_v27 = vsel %vm486_vm2, %v4679_v15, %v4680_v51  ;;  %v3555_v19 = vld [vmem:[%s13686_s4] sm:$0xff]  ;;  %v3556_v26 = vld [vmem:[%s13686_s4 + $0x8] sm:$0x1] }
 0x3c8   :  { %4090 = vrot.lane.b32.xlu1 %v3952_v20, %s8909_s21  ;;  %v4552_v10 = vsel %vm3490_vm9, %v11250_v43, %v4033_v5  ;;  %v12023_v5 = vsel %vm161_vm0, %v3610_v4, %v3611_v41  ;;  %v12039_v38 = vsel %vm161_vm0, 0.0, %v3610_v4  ;;  %v3613_v4 = vrot.slane %v11638_v2, 7 }
 0x3c9   :  { %4088 = vrot.lane.b32.xlu0 %v3950_v23, %s8909_s21  ;;  %v4705_v15 = vsel %vm828_vm1, %v4702_v48, %v4704_v37  ;;  %v3954_v51 = vrot.slane %v12023_v5, 1  ;;  %v4289_v37 = vrot.slane %v12039_v38, 2 }
 0x3ca   :  { %v4371_v55 = vpop.permute.xlu1 %4370 }
 0x3cb   :  { %v4369_v6 = vpop.permute.xlu0 %4368  ;;  %v12002_v23 = vsel %vm4612_vm11, %v4553_v57, %v4371_v55  ;;  %v8288_v55 = vpack.c.bf16 %v3556_v26, %v3555_v19  ;;  %v3614_v57 = vrot.slane %v11631_v12, 7 }
 0x3cc   :  { %4426 = vrot.lane.b32.xlu1 %v4288_v21, %s8910_s26  ;;  %v11998_v20 = vsel %vm4612_vm11, %v4552_v10, %v4369_v6  ;;  %13994 = vst [vmem:[#allocation88_spill] sm:$0xff] %v12002_v23  ;;  %v4701_v10 = vrot.slane %v11976_v30, 2  ;;  %v3802_v6 = vsel %vm161_vm0, %v3611_v41, 0.0 }
 0x3cd   :  { %13993 = vst [vmem:[#allocation87_spill] sm:$0xff] %v11998_v20  ;;  %7968 = vmatprep.mubr.msk.f32.mxu1 %vm4731_vm12, %v11998_v20  ;;  %4424 = vrot.lane.b32.xlu0 %v4286_v50, %s8910_s26  ;;  %v3956_v21 = vrot.slane %v3802_v6, 1  ;;  %v4292_v12 = vrot.slane %v3802_v6, 2  ;;  %v3803_v26 = vsel %vm161_vm0, %v3614_v57, 0.0 }
 0x3ce   :  { %7969 = vmatmul.mubr.msk.f32.vlgmr.msra.gmra.mrb[0].mxu1 %vm4731_vm12, %v12002_v23  ;;  %v12009_v43 = vpop.permute.xlu1 %3424  ;;  %8290 = vmatprep.subr.msk.bf16.mxu1 %vm11229_vm10, %v8288_v55 }
 0x3cf   :  { %3554 = vst.msk [vmem:[%s13685_s7 + $0x1f8] sm:$0xff] %vm3490_vm9, %v12009_v43  ;;  %v12016_v58 = vpop.permute.xlu0 %3422  ;;  %8293 = vmatpush3.bf16.msk.msra.mxu1 %vm11229_vm10, %v8288_v55  ;;  %v3957_v2 = vsel %vm486_vm2, %v3954_v51, %v3956_v21 }
 0x3d0   :  { %3553 = vst.msk [vmem:[%s13685_s7 + $0x1f0] sm:$0xff] %vm3490_vm9, %v12016_v58  ;;  %4691 = vrot.lane.b32.xlu1 %v4683_v22, %s8909_s21  ;;  %v3953_v22 = vrot.slane %v12039_v38, 1 }
 0x3d1   :  { %4689 = vrot.lane.b32.xlu0 %v4681_v27, %s8909_s21  ;;  %v4703_v27 = vsel %vm828_vm1, %v4701_v10, %v4702_v48  ;;  %v12061_v48 = vsel %vm161_vm0, %v3613_v4, %v3614_v57 }
 0x3d2   :  { %v4039_v41 = vpop.permute.xlu1 %4038  ;;  %v3955_v55 = vsel %vm486_vm2, %v3953_v22, %v3954_v51  ;;  %v3616_v22 = vrot.slane %v11665_v46, 7  ;;  %v4295_v46 = vrot.slane %v12061_v48, 2 }
 0x3d3   :  { %v4037_v50 = vpop.permute.xlu0 %4036  ;;  %v4555_v10 = vsel %vm3490_vm9, %v11307_v40, %v4039_v41  ;;  %v3961_v40 = vrot.slane %v3803_v26, 1 }
 0x3d4   :  { %4713 = vrot.lane.b32.xlu1 %v4705_v15, %s8910_s26  ;;  %v4554_v23 = vsel %vm3490_vm9, %v11312_v60, %v4037_v50  ;;  %v4290_v15 = vrot.slane %v12023_v5, 2  ;;  %v12071_v60 = vsel %vm161_vm0, 0.0, %v3613_v4  ;;  %v3959_v50 = vrot.slane %v12061_v48, 1 }
 0x3d5   :  { %4711 = vrot.lane.b32.xlu0 %v4703_v27, %s8910_s26  ;;  %v3958_v51 = vrot.slane %v12071_v60, 1  ;;  %v4297_v27 = vrot.slane %v3803_v26, 2 }
 0x3d6   :  { %v4375_v19 = vpop.permute.xlu1 %4374  ;;  %v4293_v41 = vsel %vm828_vm1, %v4290_v15, %v4292_v12  ;;  %v4291_v4 = vsel %vm828_vm1, %v4289_v37, %v4290_v15 }
 0x3d7   :  { %v4373_v20 = vpop.permute.xlu0 %4372  ;;  %v12074_v21 = vsel %vm4612_vm11, %v4555_v10, %v4375_v19  ;;  %v4294_v19 = vrot.slane %v12071_v60, 2  ;;  %v3960_v15 = vsel %vm486_vm2, %v3958_v51, %v3959_v50 }
 0x3d8   :  { %v12066_v6 = vsel %vm4612_vm11, %v4554_v23, %v4373_v20  ;;  %4094 = vrot.lane.b32.xlu1 %v3957_v2, %s8909_s21  ;;  %v3617_v20 = vrot.slane %v11658_v54, 7 }
 0x3d9   :  { %4092 = vrot.lane.b32.xlu0 %v3955_v55, %s8909_s21  ;;  %7971 = vmatprep.mubr.msk.f32.mxu1 %vm4731_vm12, %v12066_v6  ;;  %v3962_v55 = vsel %vm486_vm2, %v3959_v50, %v3961_v40  ;;  %v4298_v50 = vsel %vm828_vm1, %v4295_v46, %v4297_v27 }
 0x3da   :  { %v4043_v57 = vpop.permute.xlu1 %4042  ;;  %7972 = vmatmul.mubr.msk.f32.gmra.mrb[2].mxu1 %vm4731_vm12, %v12074_v21  ;;  %v3804_v54 = vsel %vm161_vm0, %v3617_v20, 0.0 }
 0x3db   :  { %v4041_v23 = vpop.permute.xlu0 %4040  ;;  %v4557_v37 = vsel %vm3490_vm9, %v11356_v8, %v4043_v57  ;;  %v3966_v8 = vrot.slane %v3804_v54, 1  ;;  %v3620_v57 = vrot.slane %v11680_v49, 7 }
 0x3dc   :  { %4430 = vrot.lane.b32.xlu1 %v4293_v41, %s8910_s26  ;;  %v4556_v12 = vsel %vm3490_vm9, %v11361_v24, %v4041_v23  ;;  %v12096_v41 = vsel %vm161_vm0, %v3616_v22, %v3617_v20  ;;  %v12106_v24 = vsel %vm161_vm0, 0.0, %v3616_v22 }
 0x3dd   :  { %4428 = vrot.lane.b32.xlu0 %v4291_v4, %s8910_s26  ;;  %v3964_v51 = vrot.slane %v12096_v41, 1  ;;  %v3963_v22 = vrot.slane %v12106_v24, 1  ;;  %v3619_v4 = vrot.slane %v11687_v61, 7  ;;  %v3805_v49 = vsel %vm161_vm0, %v3620_v57, 0.0 }
 0x3de   :  { %v4379_v2 = vpop.permute.xlu1 %4378  ;;  %v4300_v61 = vrot.slane %v12096_v41, 2 }
 0x3df   :  { %v4377_v10 = vpop.permute.xlu0 %4376  ;;  %v12109_v40 = vsel %vm4612_vm11, %v4557_v37, %v4379_v2  ;;  %v4296_v2 = vsel %vm828_vm1, %v4294_v19, %v4295_v46  ;;  %v3965_v46 = vsel %vm486_vm2, %v3963_v22, %v3964_v51 }
 0x3e0   :  { %v12101_v26 = vsel %vm4612_vm11, %v4556_v12, %v4377_v10  ;;  %4098 = vrot.lane.b32.xlu1 %v3962_v55, %s8909_s21  ;;  %v4302_v12 = vrot.slane %v3804_v54, 2  ;;  %v4299_v10 = vrot.slane %v12106_v24, 2 }
 0x3e1   :  { %4096 = vrot.lane.b32.xlu0 %v3960_v15, %s8909_s21  ;;  %7974 = vmatprep.mubr.msk.f32.mxu1 %vm4731_vm12, %v12101_v26  ;;  %v3967_v15 = vsel %vm486_vm2, %v3964_v51, %v3966_v8 }
 0x3e2   :  { %v4047_v20 = vpop.permute.xlu1 %4046  ;;  %7975 = vmatmul.mubr.msk.f32.gmra.mrb[4].mxu1 %vm4731_vm12, %v12109_v40  ;;  %v4303_v51 = vsel %vm828_vm1, %v4300_v61, %v4302_v12 }
 0x3e3   :  { %v4045_v23 = vpop.permute.xlu0 %4044  ;;  %v4559_v19 = vsel %vm3490_vm9, %v11405_v28, %v4047_v20  ;;  %v3971_v28 = vrot.slane %v3805_v49, 1  ;;  %v3623_v20 = vrot.slane %v11707_v42, 7 }
 0x3e4   :  { %4434 = vrot.lane.b32.xlu1 %v4298_v50, %s8910_s26  ;;  %v4558_v27 = vsel %vm3490_vm9, %v11410_v56, %v4045_v23  ;;  %v12131_v50 = vsel %vm161_vm0, %v3619_v4, %v3620_v57  ;;  %v12141_v56 = vsel %vm161_vm0, 0.0, %v3619_v4 }
 0x3e5   :  { %4432 = vrot.lane.b32.xlu0 %v4296_v2, %s8910_s26  ;;  %v3969_v22 = vrot.slane %v12131_v50, 1  ;;  %v3968_v4 = vrot.slane %v12141_v56, 1  ;;  %v3622_v2 = vrot.slane %v11714_v14, 7  ;;  %v3806_v42 = vsel %vm161_vm0, %v3623_v20, 0.0 }
 0x3e6   :  { %v4383_v55 = vpop.permute.xlu1 %4382  ;;  %v4305_v14 = vrot.slane %v12131_v50, 2 }
 0x3e7   :  { %v4381_v37 = vpop.permute.xlu0 %4380  ;;  %v12144_v8 = vsel %vm4612_vm11, %v4559_v19, %v4383_v55  ;;  %v4301_v55 = vsel %vm828_vm1, %v4299_v10, %v4300_v61  ;;  %v3970_v61 = vsel %vm486_vm2, %v3968_v4, %v3969_v22 }
 0x3e8   :  { %v12136_v54 = vsel %vm4612_vm11, %v4558_v27, %v4381_v37  ;;  %4102 = vrot.lane.b32.xlu1 %v3967_v15, %s8909_s21  ;;  %v4307_v27 = vrot.slane %v3805_v49, 2  ;;  %v4304_v37 = vrot.slane %v12141_v56, 2 }
 0x3e9   :  { %4100 = vrot.lane.b32.xlu0 %v3965_v46, %s8909_s21  ;;  %7977 = vmatprep.mubr.msk.f32.mxu1 %vm4731_vm12, %v12136_v54  ;;  %v3972_v46 = vsel %vm486_vm2, %v3969_v22, %v3971_v28 }
 0x3ea   :  { %v4051_v57 = vpop.permute.xlu1 %4050  ;;  %7978 = vmatmul.mubr.msk.f32.gmra.mrb[6].mxu1 %vm4731_vm12, %v12144_v8  ;;  %v4308_v22 = vsel %vm828_vm1, %v4305_v14, %v4307_v27 }
 0x3eb   :  { %v4049_v23 = vpop.permute.xlu0 %4048  ;;  %v4561_v10 = vsel %vm3490_vm9, %v11454_v47, %v4051_v57  ;;  %v3976_v47 = vrot.slane %v3806_v42, 1  ;;  %v3626_v57 = vrot.slane %v11729_v7, 7 }
 0x3ec   :  { %4438 = vrot.lane.b32.xlu1 %v4303_v51, %s8910_s26  ;;  %v4560_v12 = vsel %vm3490_vm9, %v11459_v62, %v4049_v23  ;;  %v12166_v51 = vsel %vm161_vm0, %v3622_v2, %v3623_v20  ;;  %v12176_v62 = vsel %vm161_vm0, 0.0, %v3622_v2 }
 0x3ed   :  { %4436 = vrot.lane.b32.xlu0 %v4301_v55, %s8910_s26  ;;  %v3974_v4 = vrot.slane %v12166_v51, 1  ;;  %v3973_v2 = vrot.slane %v12176_v62, 1  ;;  %v3625_v55 = vrot.slane %v11736_v31, 7  ;;  %v3807_v7 = vsel %vm161_vm0, %v3626_v57, 0.0 }
 0x3ee   :  { %v4387_v15 = vpop.permute.xlu1 %4386  ;;  %v4310_v31 = vrot.slane %v12166_v51, 2 }
 0x3ef   :  { %v4385_v19 = vpop.permute.xlu0 %4384  ;;  %v12179_v28 = vsel %vm4612_vm11, %v4561_v10, %v4387_v15  ;;  %v4306_v15 = vsel %vm828_vm1, %v4304_v37, %v4305_v14  ;;  %v3975_v14 = vsel %vm486_vm2, %v3973_v2, %v3974_v4 }
 0x3f0   :  { %v12171_v49 = vsel %vm4612_vm11, %v4560_v12, %v4385_v19  ;;  %4106 = vrot.lane.b32.xlu1 %v3972_v46, %s8909_s21  ;;  %v4312_v12 = vrot.slane %v3806_v42, 2  ;;  %v4309_v19 = vrot.slane %v12176_v62, 2 }
 0x3f1   :  { %4104 = vrot.lane.b32.xlu0 %v3970_v61, %s8909_s21  ;;  %7980 = vmatprep.mubr.msk.f32.mxu1 %vm4731_vm12, %v12171_v49  ;;  %v3977_v61 = vsel %vm486_vm2, %v3974_v4, %v3976_v47 }
 0x3f2   :  { %v4055_v20 = vpop.permute.xlu1 %4054  ;;  %7981 = vmatmul.mubr.msk.f32.gmra.mrb[8].mxu1 %vm4731_vm12, %v12179_v28  ;;  %v4313_v4 = vsel %vm828_vm1, %v4310_v31, %v4312_v12 }
 0x3f3   :  { %v4053_v23 = vpop.permute.xlu0 %4052  ;;  %v4563_v37 = vsel %vm3490_vm9, %v11503_v33, %v4055_v20  ;;  %v3981_v33 = vrot.slane %v3807_v7, 1  ;;  %v3629_v20 = vrot.slane %v11756_v53, 7 }
 0x3f4   :  { %4442 = vrot.lane.b32.xlu1 %v4308_v22, %s8910_s26  ;;  %v4562_v27 = vsel %vm3490_vm9, %v11508_v0, %v4053_v23  ;;  %v12201_v22 = vsel %vm161_vm0, %v3625_v55, %v3626_v57  ;;  %v12211_v0 = vsel %vm161_vm0, 0.0, %v3625_v55 }
 0x3f5   :  { %4440 = vrot.lane.b32.xlu0 %v4306_v15, %s8910_s26  ;;  %v3979_v2 = vrot.slane %v12201_v22, 1  ;;  %v3978_v55 = vrot.slane %v12211_v0, 1  ;;  %v3628_v15 = vrot.slane %v11763_v16, 7  ;;  %v3808_v53 = vsel %vm161_vm0, %v3629_v20, 0.0 }
 0x3f6   :  { %v4391_v46 = vpop.permute.xlu1 %4390  ;;  %v4315_v16 = vrot.slane %v12201_v22, 2 }
 0x3f7   :  { %v4389_v10 = vpop.permute.xlu0 %4388  ;;  %v12214_v47 = vsel %vm4612_vm11, %v4563_v37, %v4391_v46  ;;  %v4311_v46 = vsel %vm828_vm1, %v4309_v19, %v4310_v31  ;;  %v3980_v31 = vsel %vm486_vm2, %v3978_v55, %v3979_v2 }
 0x3f8   :  { %v12206_v42 = vsel %vm4612_vm11, %v4562_v27, %v4389_v10  ;;  %4110 = vrot.lane.b32.xlu1 %v3977_v61, %s8909_s21  ;;  %13995 = vst [vmem:[#allocation89_spill] sm:$0xff] %v12214_v47  ;;  %v4317_v27 = vrot.slane %v3807_v7, 2  ;;  %v4314_v10 = vrot.slane %v12211_v0, 2 }
 0x3f9   :  { %4108 = vrot.lane.b32.xlu0 %v3975_v14, %s8909_s21  ;;  %7983 = vmatprep.mubr.msk.f32.mxu1 %vm4731_vm12, %v12206_v42  ;;  %v3982_v14 = vsel %vm486_vm2, %v3979_v2, %v3981_v33 }
 0x3fa   :  { %v4059_v57 = vpop.permute.xlu1 %4058  ;;  %7984 = vmatmul.mubr.msk.f32.gmra.mrb[10].mxu1 %vm4731_vm12, %v12214_v47  ;;  %v4318_v2 = vsel %vm828_vm1, %v4315_v16, %v4317_v27 }
 0x3fb   :  { %v4057_v23 = vpop.permute.xlu0 %4056  ;;  %v4565_v19 = vsel %vm3490_vm9, %v11552_v63, %v4059_v57  ;;  %v3986_v63 = vrot.slane %v3808_v53, 1  ;;  %v3632_v57 = vrot.slane %v11778_v52, 7 }
 0x3fc   :  { %4446 = vrot.lane.b32.xlu1 %v4313_v4, %s8910_s26  ;;  %v4564_v12 = vsel %vm3490_vm9, %v11557_v32, %v4057_v23  ;;  %v12236_v4 = vsel %vm161_vm0, %v3628_v15, %v3629_v20  ;;  %v12246_v32 = vsel %vm161_vm0, 0.0, %v3628_v15 }
 0x3fd   :  { %4444 = vrot.lane.b32.xlu0 %v4311_v46, %s8910_s26  ;;  %v3984_v55 = vrot.slane %v12236_v4, 1  ;;  %v3983_v15 = vrot.slane %v12246_v32, 1  ;;  %v3631_v46 = vrot.slane %v11785_v59, 7  ;;  %v3809_v52 = vsel %vm161_vm0, %v3632_v57, 0.0 }
 0x3fe   :  { %v4395_v61 = vpop.permute.xlu1 %4394  ;;  %v4320_v59 = vrot.slane %v12236_v4, 2 }
 0x3ff   :  { %v4393_v37 = vpop.permute.xlu0 %4392  ;;  %v12249_v33 = vsel %vm4612_vm11, %v4565_v19, %v4395_v61  ;;  %v4316_v61 = vsel %vm828_vm1, %v4314_v10, %v4315_v16  ;;  %v3985_v16 = vsel %vm486_vm2, %v3983_v15, %v3984_v55  ;;  %v14035_v35 = vld [vmem:[#allocation89_spill] sm:$0xff] }
 0x400   :  { %v12241_v7 = vsel %vm4612_vm11, %v4564_v12, %v4393_v37  ;;  %4114 = vrot.lane.b32.xlu1 %v3982_v14, %s8909_s21  ;;  %13997 = vst [vmem:[#allocation91_spill] sm:$0xff] %v12249_v33  ;;  %v4322_v12 = vrot.slane %v3808_v53, 2  ;;  %v4319_v37 = vrot.slane %v12246_v32, 2 }
 0x401   :  { %13996 = vst [vmem:[#allocation90_spill] sm:$0xff] %v12241_v7  ;;  %4112 = vrot.lane.b32.xlu0 %v3980_v31, %s8909_s21  ;;  %7986 = vmatprep.mubr.msk.f32.mxu1 %vm4731_vm12, %v12241_v7  ;;  %v3987_v31 = vsel %vm486_vm2, %v3984_v55, %v3986_v63 }
 0x402   :  { %v4063_v20 = vpop.permute.xlu1 %4062  ;;  %7987 = vmatmul.mubr.msk.f32.gmra.mrb[12].mxu1 %vm4731_vm12, %v12249_v33  ;;  %v4323_v55 = vsel %vm828_vm1, %v4320_v59, %v4322_v12 }
 0x403   :  { %v4061_v23 = vpop.permute.xlu0 %4060  ;;  %v4567_v10 = vsel %vm3490_vm9, %v11601_v25, %v4063_v20  ;;  %v3991_v25 = vrot.slane %v3809_v52, 1  ;;  %v3635_v20 = vrot.slane %v11805_v45, 7 }
 0x404   :  { %4450 = vrot.lane.b32.xlu1 %v4318_v2, %s8910_s26  ;;  %v4566_v27 = vsel %vm3490_vm9, %v11606_v3, %v4061_v23  ;;  %v12271_v2 = vsel %vm161_vm0, %v3631_v46, %v3632_v57  ;;  %v12281_v3 = vsel %vm161_vm0, 0.0, %v3631_v46 }
 0x405   :  { %4448 = vrot.lane.b32.xlu0 %v4316_v61, %s8910_s26  ;;  %v3989_v15 = vrot.slane %v12271_v2, 1  ;;  %v3988_v46 = vrot.slane %v12281_v3, 1  ;;  %v3634_v61 = vrot.slane %v11812_v11, 7  ;;  %v3810_v45 = vsel %vm161_vm0, %v3635_v20, 0.0 }
 0x406   :  { %v4399_v14 = vpop.permute.xlu1 %4398  ;;  %v4325_v11 = vrot.slane %v12271_v2, 2 }
 0x407   :  { %v4397_v19 = vpop.permute.xlu0 %4396  ;;  %v12284_v63 = vsel %vm4612_vm11, %v4567_v10, %v4399_v14  ;;  %v4321_v14 = vsel %vm828_vm1, %v4319_v37, %v4320_v59  ;;  %v3990_v59 = vsel %vm486_vm2, %v3988_v46, %v3989_v15 }
 0x408   :  { %v12276_v53 = vsel %vm4612_vm11, %v4566_v27, %v4397_v19  ;;  %4118 = vrot.lane.b32.xlu1 %v3987_v31, %s8909_s21  ;;  %13999 = vst [vmem:[#allocation93_spill] sm:$0xff] %v12284_v63  ;;  %v4327_v27 = vrot.slane %v3809_v52, 2  ;;  %v4324_v19 = vrot.slane %v12281_v3, 2 }
 0x409   :  { %13998 = vst [vmem:[#allocation92_spill] sm:$0xff] %v12276_v53  ;;  %4116 = vrot.lane.b32.xlu0 %v3985_v16, %s8909_s21  ;;  %7989 = vmatprep.mubr.msk.f32.mxu1 %vm4731_vm12, %v12276_v53  ;;  %v3992_v16 = vsel %vm486_vm2, %v3989_v15, %v3991_v25 }
 0x40a   :  { %v4067_v57 = vpop.permute.xlu1 %4066  ;;  %7990 = vmatmul.mubr.msk.f32.gmra.mrb[14].mxu1 %vm4731_vm12, %v12284_v63  ;;  %v4328_v15 = vsel %vm828_vm1, %v4325_v11, %v4327_v27 }
 0x40b   :  { %v4065_v23 = vpop.permute.xlu0 %4064  ;;  %v4569_v37 = vsel %vm3490_vm9, %v11650_v44, %v4067_v57  ;;  %v3996_v44 = vrot.slane %v3810_v45, 1  ;;  %v3638_v57 = vrot.slane %v11827_v18, 7 }
 0x40c   :  { %4454 = vrot.lane.b32.xlu1 %v4323_v55, %s8910_s26  ;;  %v4568_v12 = vsel %vm3490_vm9, %v11655_v36, %v4065_v23  ;;  %v12306_v55 = vsel %vm161_vm0, %v3634_v61, %v3635_v20  ;;  %v12316_v36 = vsel %vm161_vm0, 0.0, %v3634_v61 }
 0x40d   :  { %4452 = vrot.lane.b32.xlu0 %v4321_v14, %s8910_s26  ;;  %v3994_v46 = vrot.slane %v12306_v55, 1  ;;  %v3993_v61 = vrot.slane %v12316_v36, 1  ;;  %v3637_v14 = vrot.slane %v11834_v29, 7  ;;  %v3811_v18 = vsel %vm161_vm0, %v3638_v57, 0.0 }
 0x40e   :  { %v4403_v31 = vpop.permute.xlu1 %4402  ;;  %v4330_v29 = vrot.slane %v12306_v55, 2 }
 0x40f   :  { %v4401_v10 = vpop.permute.xlu0 %4400  ;;  %v12319_v25 = vsel %vm4612_vm11, %v4569_v37, %v4403_v31  ;;  %v4326_v31 = vsel %vm828_vm1, %v4324_v19, %v4325_v11  ;;  %v3995_v11 = vsel %vm486_vm2, %v3993_v61, %v3994_v46 }
 0x410   :  { %v12311_v52 = vsel %vm4612_vm11, %v4568_v12, %v4401_v10  ;;  %4122 = vrot.lane.b32.xlu1 %v3992_v16, %s8909_s21  ;;  %14001 = vst [vmem:[#allocation95_spill] sm:$0xff] %v12319_v25  ;;  %v4332_v12 = vrot.slane %v3810_v45, 2  ;;  %v4329_v10 = vrot.slane %v12316_v36, 2 }
 0x411   :  { %14000 = vst [vmem:[#allocation94_spill] sm:$0xff] %v12311_v52  ;;  %4120 = vrot.lane.b32.xlu0 %v3990_v59, %s8909_s21  ;;  %7992 = vmatprep.mubr.msk.f32.mxu1 %vm4731_vm12, %v12311_v52  ;;  %v3997_v59 = vsel %vm486_vm2, %v3994_v46, %v3996_v44 }
 0x412   :  { %v4071_v20 = vpop.permute.xlu1 %4070  ;;  %7993 = vmatmul.mubr.msk.f32.gmra.mrb[16].mxu1 %vm4731_vm12, %v12319_v25  ;;  %v4333_v46 = vsel %vm828_vm1, %v4330_v29, %v4332_v12 }
 0x413   :  { %v4069_v23 = vpop.permute.xlu0 %4068  ;;  %v4571_v19 = vsel %vm3490_vm9, %v11699_v9, %v4071_v20  ;;  %v4001_v9 = vrot.slane %v3811_v18, 1  ;;  %v3641_v20 = vrot.slane %v11854_v39, 7 }
 0x414   :  { %4458 = vrot.lane.b32.xlu1 %v4328_v15, %s8910_s26  ;;  %v4570_v27 = vsel %vm3490_vm9, %v11704_v1, %v4069_v23  ;;  %v12341_v15 = vsel %vm161_vm0, %v3637_v14, %v3638_v57  ;;  %v12351_v1 = vsel %vm161_vm0, 0.0, %v3637_v14 }
 0x415   :  { %4456 = vrot.lane.b32.xlu0 %v4326_v31, %s8910_s26  ;;  %v3999_v61 = vrot.slane %v12341_v15, 1  ;;  %v3998_v14 = vrot.slane %v12351_v1, 1  ;;  %v3640_v31 = vrot.slane %v11861_v17, 7  ;;  %v3812_v39 = vsel %vm161_vm0, %v3641_v20, 0.0 }
 0x416   :  { %v4407_v16 = vpop.permute.xlu1 %4406  ;;  %v4335_v17 = vrot.slane %v12341_v15, 2 }
 0x417   :  { %v4405_v37 = vpop.permute.xlu0 %4404  ;;  %v12354_v44 = vsel %vm4612_vm11, %v4571_v19, %v4407_v16  ;;  %v4331_v16 = vsel %vm828_vm1, %v4329_v10, %v4330_v29  ;;  %v14004_v19 = vld [vmem:[#allocation71_spill] sm:$0xff]  ;;  %v14005_v10 = vld [vmem:[#allocation70_spill] sm:$0xff] }
 0x418   :  { %v12346_v45 = vsel %vm4612_vm11, %v4570_v27, %v4405_v37  ;;  %4126 = vrot.lane.b32.xlu1 %v3997_v59, %s8909_s21  ;;  %14003 = vst [vmem:[#allocation97_spill] sm:$0xff] %v12354_v44  ;;  %v4337_v27 = vrot.slane %v3811_v18, 2  ;;  %v4334_v37 = vrot.slane %v12351_v1, 2 }
 0x419   :  { %14002 = vst [vmem:[#allocation96_spill] sm:$0xff] %v12346_v45  ;;  %4124 = vrot.lane.b32.xlu0 %v3995_v11, %s8909_s21  ;;  %7995 = vmatprep.mubr.msk.f32.mxu1 %vm4731_vm12, %v12346_v45 }
 0x41a   :  { %v4075_v57 = vpop.permute.xlu1 %4074  ;;  %7996 = vmatmul.mubr.msk.f32.gmra.mrb[18].mxu1 %vm4731_vm12, %v12354_v44  ;;  %v4002_v44 = vsel %vm486_vm2, %v3999_v61, %v4001_v9 }
 0x41b   :  { %v4073_v23 = vpop.permute.xlu0 %4072  ;;  %v4573_v29 = vsel %vm3490_vm9, %v14005_v10, %v4075_v57  ;;  %v4006_v57 = vrot.slane %v3812_v39, 1  ;;  %v4342_v10 = vrot.slane %v3812_v39, 2 }
 0x41c   :  { %4462 = vrot.lane.b32.xlu1 %v4333_v46, %s8910_s26  ;;  %v4572_v12 = vsel %vm3490_vm9, %v14004_v19, %v4073_v23  ;;  %v12376_v46 = vsel %vm161_vm0, %v3640_v31, %v3641_v20  ;;  %v12386_v23 = vsel %vm161_vm0, 0.0, %v3640_v31 }
 0x41d   :  { %4460 = vrot.lane.b32.xlu0 %v4331_v16, %s8910_s26  ;;  %v4000_v16 = vsel %vm486_vm2, %v3998_v14, %v3999_v61  ;;  %v4338_v61 = vsel %vm828_vm1, %v4335_v17, %v4337_v27  ;;  %v4004_v14 = vrot.slane %v12376_v46, 1  ;;  %v4003_v31 = vrot.slane %v12386_v23, 1 }
 0x41e   :  { %v4411_v59 = vpop.permute.xlu1 %4410 }
 0x41f   :  { %v4409_v11 = vpop.permute.xlu0 %4408  ;;  %v12389_v9 = vsel %vm4612_vm11, %v4573_v29, %v4411_v59  ;;  %v14008_v59 = vld [vmem:[#allocation76_spill] sm:$0xff]  ;;  %v4339_v29 = vrot.slane %v12386_v23, 2  ;;  %v4007_v45 = vsel %vm486_vm2, %v4004_v14, %v4006_v57 }
 0x420   :  { %v12381_v18 = vsel %vm4612_vm11, %v4572_v12, %v4409_v11  ;;  %4130 = vrot.lane.b32.xlu1 %v4002_v44, %s8909_s21  ;;  %14007 = vst [vmem:[#allocation70_spill] sm:$0xff] %v12389_v9  ;;  %v3644_v44 = vrot.slane %v11876_v34, 7  ;;  %v3643_v12 = vrot.slane %v14008_v59, 7  ;;  %v4336_v11 = vsel %vm828_vm1, %v4334_v37, %v4335_v17  ;;  %v14010_v37 = vld [vmem:[#allocation72_spill] sm:$0xff] }
 0x421   :  { %14006 = vst [vmem:[#allocation71_spill] sm:$0xff] %v12381_v18  ;;  %4128 = vrot.lane.b32.xlu0 %v4000_v16, %s8909_s21  ;;  %7998 = vmatprep.mubr.msk.f32.mxu1 %vm4731_vm12, %v12381_v18  ;;  %v4340_v59 = vrot.slane %v12376_v46, 2 }
 0x422   :  { %v4079_v20 = vpop.permute.xlu1 %4078  ;;  %7999 = vmatmul.mubr.msk.f32.gmra.mrb[20].mxu1 %vm4731_vm12, %v12389_v9  ;;  %v3813_v34 = vsel %vm161_vm0, %v3644_v44, 0.0  ;;  %v14009_v9 = vld [vmem:[#allocation73_spill] sm:$0xff] }
 0x423   :  { %v4077_v19 = vpop.permute.xlu0 %4076  ;;  %v4575_v17 = vsel %vm3490_vm9, %v14010_v37, %v4079_v20  ;;  %v14013_v20 = vld [vmem:[#allocation79_spill] sm:$0xff]  ;;  %v4341_v37 = vsel %vm828_vm1, %v4339_v29, %v4340_v59  ;;  %v14016_v29 = vld [vmem:[#allocation74_spill] sm:$0xff] }
 0x424   :  { %4466 = vrot.lane.b32.xlu1 %v4338_v61, %s8910_s26  ;;  %v4574_v27 = vsel %vm3490_vm9, %v14009_v9, %v4077_v19  ;;  %v12411_v61 = vsel %vm161_vm0, %v3643_v12, %v3644_v44  ;;  %v12421_v9 = vsel %vm161_vm0, 0.0, %v3643_v12 }
 0x425   :  { %4464 = vrot.lane.b32.xlu0 %v4336_v11, %s8910_s26  ;;  %v4005_v11 = vsel %vm486_vm2, %v4003_v31, %v4004_v14  ;;  %v4343_v14 = vsel %vm828_vm1, %v4340_v59, %v4342_v10  ;;  %v4009_v31 = vrot.slane %v12411_v61, 1  ;;  %v4008_v12 = vrot.slane %v12421_v9, 1 }
 0x426   :  { %v4415_v16 = vpop.permute.xlu1 %4414 }
 0x427   :  { %v4413_v18 = vpop.permute.xlu0 %4412  ;;  %v12424_v57 = vsel %vm4612_vm11, %v4575_v17, %v4415_v16  ;;  %v14014_v16 = vld [vmem:[#allocation80_spill] sm:$0xff]  ;;  %v4347_v17 = vrot.slane %v3813_v34, 2 }
 0x428   :  { %v12416_v39 = vsel %vm4612_vm11, %v4574_v27, %v4413_v18  ;;  %4134 = vrot.lane.b32.xlu1 %v4007_v45, %s8909_s21  ;;  %14012 = vst [vmem:[#allocation73_spill] sm:$0xff] %v12424_v57  ;;  %v4011_v18 = vrot.slane %v3813_v34, 1  ;;  %v3647_v45 = vrot.slane %v14013_v20, 7  ;;  %v3646_v27 = vrot.slane %v14014_v16, 7 }
 0x429   :  { %14011 = vst [vmem:[#allocation76_spill] sm:$0xff] %v12416_v39  ;;  %4132 = vrot.lane.b32.xlu0 %v4005_v11, %s8909_s21  ;;  %8001 = vmatprep.mubr.msk.f32.mxu1 %vm4731_vm12, %v12416_v39  ;;  %v4344_v11 = vrot.slane %v12421_v9, 2  ;;  %v14015_v39 = vld [vmem:[#allocation75_spill] sm:$0xff]  ;;  %v4345_v16 = vrot.slane %v12411_v61, 2 }
 0x42a   :  { %v4083_v44 = vpop.permute.xlu1 %4082  ;;  %8002 = vmatmul.mubr.msk.f32.gmra.mrb[22].mxu1 %vm4731_vm12, %v12424_v57  ;;  %v3814_v20 = vsel %vm161_vm0, %v3647_v45, 0.0  ;;  %v4012_v52 = vsel %vm486_vm2, %v4009_v31, %v4011_v18 }
 0x42b   :  { %v4081_v19 = vpop.permute.xlu0 %4080  ;;  %v4577_v59 = vsel %vm3490_vm9, %v14016_v29, %v4083_v44  ;;  %v14019_v44 = vld [vmem:[#allocation81_spill] sm:$0xff]  ;;  %v4346_v29 = vsel %vm828_vm1, %v4344_v11, %v4345_v16 }
 0x42c   :  { %4470 = vrot.lane.b32.xlu1 %v4343_v14, %s8910_s26  ;;  %v4576_v10 = vsel %vm3490_vm9, %v14015_v39, %v4081_v19  ;;  %v12446_v14 = vsel %vm161_vm0, %v3646_v27, %v3647_v45  ;;  %v12456_v39 = vsel %vm161_vm0, 0.0, %v3646_v27  ;;  %v14020_v27 = vld [vmem:[#allocation82_spill] sm:$0xff]  ;;  %v14022_v11 = vld [vmem:[#allocation77_spill] sm:$0xff] }
 0x42d   :  { %4468 = vrot.lane.b32.xlu0 %v4341_v37, %s8910_s26  ;;  %v4010_v37 = vsel %vm486_vm2, %v4008_v12, %v4009_v31  ;;  %v4348_v31 = vsel %vm828_vm1, %v4345_v16, %v4347_v17  ;;  %v4014_v12 = vrot.slane %v12446_v14, 1 }
 0x42e   :  { %v4419_v57 = vpop.permute.xlu1 %4418 }
 0x42f   :  { %v4417_v25 = vpop.permute.xlu0 %4416  ;;  %v12459_v18 = vsel %vm4612_vm11, %v4577_v59, %v4419_v57  ;;  %v4013_v57 = vrot.slane %v12456_v39, 1  ;;  %v4352_v59 = vrot.slane %v3814_v20, 2 }
 0x430   :  { %v12451_v34 = vsel %vm4612_vm11, %v4576_v10, %v4417_v25  ;;  %4138 = vrot.lane.b32.xlu1 %v4012_v52, %s8909_s21  ;;  %14018 = vst [vmem:[#allocation79_spill] sm:$0xff] %v12459_v18  ;;  %v4016_v25 = vrot.slane %v3814_v20, 1  ;;  %v3650_v52 = vrot.slane %v14019_v44, 7  ;;  %v3649_v10 = vrot.slane %v14020_v27, 7 }
 0x431   :  { %14017 = vst [vmem:[#allocation72_spill] sm:$0xff] %v12451_v34  ;;  %4136 = vrot.lane.b32.xlu0 %v4010_v37, %s8909_s21  ;;  %8004 = vmatprep.mubr.msk.f32.mxu1 %vm4731_vm12, %v12451_v34  ;;  %v4349_v37 = vrot.slane %v12456_v39, 2  ;;  %v14021_v34 = vld [vmem:[#allocation78_spill] sm:$0xff]  ;;  %v4350_v27 = vrot.slane %v12446_v14, 2 }
 0x432   :  { %v4087_v45 = vpop.permute.xlu1 %4086  ;;  %8005 = vmatmul.mubr.msk.f32.gmra.mrb[24].mxu1 %vm4731_vm12, %v12459_v18  ;;  %v3815_v44 = vsel %vm161_vm0, %v3650_v52, 0.0  ;;  %v4017_v53 = vsel %vm486_vm2, %v4014_v12, %v4016_v25 }
 0x433   :  { %v4085_v19 = vpop.permute.xlu0 %4084  ;;  %v4579_v16 = vsel %vm3490_vm9, %v14022_v11, %v4087_v45  ;;  %v4351_v11 = vsel %vm828_vm1, %v4349_v37, %v4350_v27 }
 0x434   :  { %4474 = vrot.lane.b32.xlu1 %v4348_v31, %s8910_s26  ;;  %v4578_v17 = vsel %vm3490_vm9, %v14021_v34, %v4085_v19  ;;  %v12481_v31 = vsel %vm161_vm0, %v3649_v10, %v3650_v52  ;;  %v12491_v34 = vsel %vm161_vm0, 0.0, %v3649_v10  ;;  %v4021_v52 = vrot.slane %v3815_v44, 1  ;;  %v14026_v19 = vld [vmem:[#allocation86_spill] sm:$0xff] }
 0x435   :  { %4472 = vrot.lane.b32.xlu0 %v4346_v29, %s8910_s26  ;;  %v4015_v29 = vsel %vm486_vm2, %v4013_v57, %v4014_v12  ;;  %v3652_v12 = vrot.slane %v14026_v19, 7  ;;  %v4353_v10 = vsel %vm828_vm1, %v4350_v27, %v4352_v59 }
 0x436   :  { %v4423_v18 = vpop.permute.xlu1 %4422 }
 0x437   :  { %v4421_v63 = vpop.permute.xlu0 %4420  ;;  %v12494_v25 = vsel %vm4612_vm11, %v4579_v16, %v4423_v18  ;;  %v4019_v18 = vrot.slane %v12481_v31, 1  ;;  %v4357_v16 = vrot.slane %v3815_v44, 2  ;;  %v12519_v37 = vsel %vm161_vm0, 0.0, %v3652_v12  ;;  %v14028_v44 = vld [vmem:[#allocation83_spill] sm:$0xff] }
 0x438   :  { %v12486_v20 = vsel %vm4612_vm11, %v4578_v17, %v4421_v63  ;;  %4142 = vrot.lane.b32.xlu1 %v4017_v53, %s8909_s21  ;;  %14024 = vst [vmem:[#allocation75_spill] sm:$0xff] %v12494_v25  ;;  %v14025_v63 = vld [vmem:[#allocation85_spill] sm:$0xff]  ;;  %v4018_v17 = vrot.slane %v12491_v34, 1 }
 0x439   :  { %14023 = vst [vmem:[#allocation80_spill] sm:$0xff] %v12486_v20  ;;  %4140 = vrot.lane.b32.xlu0 %v4015_v29, %s8909_s21  ;;  %8007 = vmatprep.mubr.msk.f32.mxu1 %vm4731_vm12, %v12486_v20  ;;  %v3653_v53 = vrot.slane %v14025_v63, 7  ;;  %v4354_v29 = vrot.slane %v12491_v34, 2  ;;  %v4355_v63 = vrot.slane %v12481_v31, 2  ;;  %v14027_v20 = vld [vmem:[#allocation84_spill] sm:$0xff] }
 0x43a   :  { %v4091_v45 = vpop.permute.xlu1 %4090  ;;  %8008 = vmatmul.mubr.msk.f32.gmra.mrb[26].mxu1 %vm4731_vm12, %v12494_v25 }
 0x43b   :  { %v4089_v57 = vpop.permute.xlu0 %4088  ;;  %v3816_v19 = vsel %vm161_vm0, %v3653_v53, 0.0  ;;  %v12513_v59 = vsel %vm161_vm0, %v3652_v12, %v3653_v53  ;;  %v4581_v27 = vsel %vm3490_vm9, %v14028_v44, %v4091_v45  ;;  %v4020_v53 = vsel %vm486_vm2, %v4018_v17, %v4019_v18 }
 0x43c   :  { %4478 = vrot.lane.b32.xlu1 %v4353_v10, %s8910_s26  ;;  %v4580_v33 = vsel %vm3490_vm9, %v14027_v20, %v4089_v57  ;;  %v4022_v10 = vsel %vm486_vm2, %v4019_v18, %v4021_v52  ;;  %v4026_v52 = vrot.slane %v3816_v19, 1  ;;  %v4358_v45 = vsel %vm828_vm1, %v4355_v63, %v4357_v16 }
 0x43d   :  { %4476 = vrot.lane.b32.xlu0 %v4351_v11, %s8910_s26  ;;  %v4024_v12 = vrot.slane %v12513_v59, 1  ;;  %v3655_v57 = vrot.slane %v12016_v58, 7  ;;  %v4356_v18 = vsel %vm828_vm1, %v4354_v29, %v4355_v63  ;;  %v4362_v17 = vrot.slane %v3816_v19, 2 }
 0x43e   :  { %v4427_v25 = vpop.permute.xlu1 %4426  ;;  %v4360_v58 = vrot.slane %v12513_v59, 2 }
 0x43f   :  { %v4425_v7 = vpop.permute.xlu0 %4424  ;;  %v12529_v47 = vsel %vm4612_vm11, %v4581_v27, %v4427_v25  ;;  %v3656_v25 = vrot.slane %v12009_v43, 7 }
 0x440   :  { %v12524_v11 = vsel %vm4612_vm11, %v4580_v33, %v4425_v7  ;;  %4146 = vrot.lane.b32.xlu1 %v4022_v10, %s8909_s21  ;;  %v4023_v7 = vrot.slane %v12519_v37, 1  ;;  %v4359_v10 = vrot.slane %v12519_v37, 2 }
 0x441   :  { %4144 = vrot.lane.b32.xlu0 %v4020_v53, %s8909_s21  ;;  %8010 = vmatprep.mubr.msk.f32.mxu1 %vm4731_vm12, %v12524_v11  ;;  %v4027_v53 = vsel %vm486_vm2, %v4024_v12, %v4026_v52  ;;  %v12552_v29 = vsel %vm161_vm0, %v3655_v57, %v3656_v25 }
 0x442   :  { %v4692_v20 = vpop.permute.xlu1 %4691  ;;  %8011 = vmatmul.mubr.msk.f32.gmra.mrb[28].mxu1 %vm4731_vm12, %v12529_v47  ;;  %v4025_v43 = vsel %vm486_vm2, %v4023_v7, %v4024_v12  ;;  %v4685_v12 = vrot.slane %v12552_v29, 1 }
 0x443   :  { %v4690_v33 = vpop.permute.xlu0 %4689  ;;  %v4724_v63 = vsel %vm3490_vm9, %v11982_v13, %v4692_v20 }
 0x444   :  { %4482 = vrot.lane.b32.xlu1 %v4358_v45, %s8910_s26  ;;  %v4723_v27 = vsel %vm3490_vm9, %v11976_v30, %v4690_v33  ;;  %v3817_v45 = vsel %vm161_vm0, %v3656_v25, 0.0  ;;  %v12561_v30 = vsel %vm161_vm0, 0.0, %v3655_v57  ;;  %v4363_v33 = vsel %vm828_vm1, %v4360_v58, %v4362_v17 }
 0x445   :  { %4480 = vrot.lane.b32.xlu0 %v4356_v18, %s8910_s26  ;;  %v4687_v13 = vrot.slane %v3817_v45, 1  ;;  %v4684_v25 = vrot.slane %v12561_v30, 1  ;;  %v4361_v57 = vsel %vm828_vm1, %v4359_v10, %v4360_v58  ;;  %v4707_v17 = vrot.slane %v12552_v29, 2  ;;  %v3560_v58 = vld [vmem:[%s13686_s4 + $0x28] sm:$0x1] }
 0x446   :  { %v4714_v44 = vpop.permute.xlu1 %4713 }
 0x447   :  { %v4712_v16 = vpop.permute.xlu0 %4711  ;;  %v12564_v52 = vsel %vm4612_vm11, %v4724_v63, %v4714_v44  ;;  %v4709_v44 = vrot.slane %v3817_v45, 2  ;;  %v4686_v10 = vsel %vm486_vm2, %v4684_v25, %v4685_v12 }
 0x448   :  { %v12557_v19 = vsel %vm4612_vm11, %v4723_v27, %v4712_v16  ;;  %4150 = vrot.lane.b32.xlu1 %v4027_v53, %s8909_s21  ;;  %v4688_v53 = vsel %vm486_vm2, %v4685_v12, %v4687_v13 }
 0x449   :  { %4148 = vrot.lane.b32.xlu0 %v4025_v43, %s8909_s21  ;;  %8013 = vmatprep.mubr.msk.f32.mxu1 %vm4731_vm12, %v12557_v19  ;;  %v4706_v43 = vrot.slane %v12561_v30, 2 }
 0x44a   :  { %v4095_v7 = vpop.permute.xlu1 %4094  ;;  %8014 = vmatmul.mubr.msk.f32.gmra.mrb[30].mxu1 %vm4731_vm12, %v12564_v52 }
 0x44b   :  { %v4093_v20 = vpop.permute.xlu0 %4092  ;;  %v4583_v63 = vsel %vm3490_vm9, %v12023_v5, %v4095_v7  ;;  %v4708_v12 = vsel %vm828_vm1, %v4706_v43, %v4707_v17 }
 0x44c   :  { %4486 = vrot.lane.b32.xlu1 %v4363_v33, %s8910_s26  ;;  %v4582_v27 = vsel %vm3490_vm9, %v12039_v38, %v4093_v20  ;;  %v3559_v38 = vld [vmem:[%s13686_s4 + $0x20] sm:$0xff]  ;;  %v4710_v20 = vsel %vm828_vm1, %v4707_v17, %v4709_v44  ;;  %v14030_v17 = vld [vmem:[#allocation28_spill] sm:$0xff] }
 0x44d   :  { %4484 = vrot.lane.b32.xlu0 %v4361_v57, %s8910_s26  ;;  %v12601_v5 = vpack.c.bf16 %v3560_v58, %v3559_v38 }
 0x44e   :  { %v4431_v18 = vpop.permute.xlu1 %4430 }
 0x44f   :  { %v4429_v16 = vpop.permute.xlu0 %4428  ;;  %v12596_v45 = vsel %vm4612_vm11, %v4583_v63, %v4431_v18  ;;  %8296 = vmatprep.subr.msk.bf16.mxu1 %vm11229_vm10, %v12601_v5 }
 0x450   :  { %v12585_v33 = vsel %vm4612_vm11, %v4582_v27, %v4429_v16  ;;  %4695 = vrot.lane.b32.xlu1 %v4688_v53, %s8909_s21  ;;  %v14029_v16 = vld [vmem:[#allocation29_spill] sm:$0xff] }
 0x451   :  { %4693 = vrot.lane.b32.xlu0 %v4686_v10, %s8909_s21  ;;  %8016 = vmatprep.mubr.msk.f32.mxu1 %vm4731_vm12, %v12585_v33 }
 0x452   :  { %v4099_v7 = vpop.permute.xlu1 %4098  ;;  %8017 = vmatmul.mubr.msk.f32.gmra.mrb[32].mxu1 %vm4731_vm12, %v12596_v45 }
 0x453   :  { %v4097_v13 = vpop.permute.xlu0 %4096  ;;  %v4585_v27 = vsel %vm3490_vm9, %v12061_v48, %v4099_v7 }
 0x454   :  { %4717 = vrot.lane.b32.xlu1 %v4710_v20, %s8910_s26  ;;  %v4584_v57 = vsel %vm3490_vm9, %v12071_v60, %v4097_v13 }
 0x455   :  { %4715 = vrot.lane.b32.xlu0 %v4708_v12, %s8910_s26 }
 0x456   :  { %v4435_v25 = vpop.permute.xlu1 %4434 }
 0x457   :  { %v4433_v18 = vpop.permute.xlu0 %4432  ;;  %v12622_v53 = vsel %vm4612_vm11, %v4585_v27, %v4435_v25 }
 0x458   :  { %v12617_v44 = vsel %vm4612_vm11, %v4584_v57, %v4433_v18  ;;  %8579 = vrot.lane.b32.xlu1 %v14029_v16, %s8910_s26 }
 0x459   :  { %8574 = vrot.lane.b32.xlu0 %v14030_v17, %s8909_s21  ;;  %8019 = vmatprep.mubr.msk.f32.mxu1 %vm4731_vm12, %v12617_v44 }
 0x45a   :  { %v4103_v60 = vpop.permute.xlu1 %4102  ;;  %8020 = vmatmul.mubr.msk.f32.gmra.mrb[34].mxu1 %vm4731_vm12, %v12622_v53 }
 0x45b   :  { %v4101_v48 = vpop.permute.xlu0 %4100  ;;  %v4587_v38 = vsel %vm3490_vm9, %v12096_v41, %v4103_v60 }
 0x45c   :  { %v4586_v63 = vsel %vm3490_vm9, %v12106_v24, %v4101_v48 }
 0x45e   :  { %v4439_v43 = vpop.permute.xlu1 %4438 }
 0x45f   :  { %v4437_v10 = vpop.permute.xlu0 %4436  ;;  %v12638_v7 = vsel %vm4612_vm11, %v4587_v38, %v4439_v43 }
 0x460   :  { %v12635_v58 = vsel %vm4612_vm11, %v4586_v63, %v4437_v10 }
 0x461   :  { %8022 = vmatprep.mubr.msk.f32.mxu1 %vm4731_vm12, %v12635_v58 }
 0x462   :  { %v4107_v13 = vpop.permute.xlu1 %4106  ;;  %8023 = vmatmul.mubr.msk.f32.gmra.mrb[36].mxu1 %vm4731_vm12, %v12638_v7 }
 0x463   :  { %v4105_v20 = vpop.permute.xlu0 %4104  ;;  %v4589_v41 = vsel %vm3490_vm9, %v12131_v50, %v4107_v13 }
 0x464   :  { %v4588_v24 = vsel %vm3490_vm9, %v12141_v56, %v4105_v20 }
 0x466   :  { %v4443_v12 = vpop.permute.xlu1 %4442 }
 0x467   :  { %v4441_v25 = vpop.permute.xlu0 %4440  ;;  %v12652_v18 = vsel %vm4612_vm11, %v4589_v41, %v4443_v12 }
 0x468   :  { %v12649_v57 = vsel %vm4612_vm11, %v4588_v24, %v4441_v25 }
 0x469   :  { %8025 = vmatprep.mubr.msk.f32.mxu1 %vm4731_vm12, %v12649_v57 }
 0x46a   :  { %v4111_v27 = vpop.permute.xlu1 %4110  ;;  %8026 = vmatmul.mubr.msk.f32.gmra.mrb[38].mxu1 %vm4731_vm12, %v12652_v18 }
 0x46b   :  { %v4109_v16 = vpop.permute.xlu0 %4108  ;;  %v4591_v50 = vsel %vm3490_vm9, %v12166_v51, %v4111_v27 }
 0x46c   :  { %v4590_v56 = vsel %vm3490_vm9, %v12176_v62, %v4109_v16 }
 0x46e   :  { %v4447_v17 = vpop.permute.xlu1 %4446 }
 0x46f   :  { %v4445_v60 = vpop.permute.xlu0 %4444  ;;  %v12666_v43 = vsel %vm4612_vm11, %v4591_v50, %v4447_v17 }
 0x470   :  { %v12663_v48 = vsel %vm4612_vm11, %v4590_v56, %v4445_v60 }
 0x471   :  { %8028 = vmatprep.mubr.msk.f32.mxu1 %vm4731_vm12, %v12663_v48 }
 0x472   :  { %v4115_v63 = vpop.permute.xlu1 %4114  ;;  %8029 = vmatmul.mubr.msk.f32.gmra.mrb[40].mxu1 %vm4731_vm12, %v12666_v43 }
 0x473   :  { %v4113_v10 = vpop.permute.xlu0 %4112  ;;  %v4593_v51 = vsel %vm3490_vm9, %v12201_v22, %v4115_v63 }
 0x474   :  { %v4592_v62 = vsel %vm3490_vm9, %v12211_v0, %v4113_v10 }
 0x476   :  { %v4451_v38 = vpop.permute.xlu1 %4450 }
 0x477   :  { %v4449_v13 = vpop.permute.xlu0 %4448  ;;  %v12680_v12 = vsel %vm4612_vm11, %v4593_v51, %v4451_v38 }
 0x478   :  { %v12677_v20 = vsel %vm4612_vm11, %v4592_v62, %v4449_v13 }
 0x479   :  { %8031 = vmatprep.mubr.msk.f32.mxu1 %vm4731_vm12, %v12677_v20 }
 0x47a   :  { %v4119_v24 = vpop.permute.xlu1 %4118  ;;  %8032 = vmatmul.mubr.msk.f32.gmra.mrb[42].mxu1 %vm4731_vm12, %v12680_v12 }
 0x47b   :  { %v4117_v25 = vpop.permute.xlu0 %4116  ;;  %v4595_v22 = vsel %vm3490_vm9, %v12236_v4, %v4119_v24 }
 0x47c   :  { %v4594_v0 = vsel %vm3490_vm9, %v12246_v32, %v4117_v25 }
 0x47e   :  { %v4455_v41 = vpop.permute.xlu1 %4454 }
 0x47f   :  { %v4453_v27 = vpop.permute.xlu0 %4452  ;;  %v12694_v17 = vsel %vm4612_vm11, %v4595_v22, %v4455_v41 }
 0x480   :  { %v12691_v16 = vsel %vm4612_vm11, %v4594_v0, %v4453_v27 }
 0x481   :  { %8034 = vmatprep.mubr.msk.f32.mxu1 %vm4731_vm12, %v12691_v16 }
 0x482   :  { %v4123_v56 = vpop.permute.xlu1 %4122  ;;  %8035 = vmatmul.mubr.msk.f32.gmra.mrb[44].mxu1 %vm4731_vm12, %v12694_v17 }
 0x483   :  { %v4121_v60 = vpop.permute.xlu0 %4120  ;;  %v4597_v4 = vsel %vm3490_vm9, %v12271_v2, %v4123_v56 }
 0x484   :  { %v4596_v32 = vsel %vm3490_vm9, %v12281_v3, %v4121_v60 }
 0x486   :  { %v4459_v50 = vpop.permute.xlu1 %4458 }
 0x487   :  { %v4457_v63 = vpop.permute.xlu0 %4456  ;;  %v12708_v38 = vsel %vm4612_vm11, %v4597_v4, %v4459_v50 }
 0x488   :  { %v12705_v10 = vsel %vm4612_vm11, %v4596_v32, %v4457_v63 }
 0x489   :  { %8037 = vmatprep.mubr.msk.f32.mxu1 %vm4731_vm12, %v12705_v10 }
 0x48a   :  { %v4127_v62 = vpop.permute.xlu1 %4126  ;;  %8038 = vmatmul.mubr.msk.f32.gmra.mrb[46].mxu1 %vm4731_vm12, %v12708_v38 }
 0x48b   :  { %v4125_v13 = vpop.permute.xlu0 %4124  ;;  %v4599_v2 = vsel %vm3490_vm9, %v12306_v55, %v4127_v62 }
 0x48c   :  { %v4598_v3 = vsel %vm3490_vm9, %v12316_v36, %v4125_v13 }
 0x48e   :  { %v4463_v51 = vpop.permute.xlu1 %4462 }
 0x48f   :  { %v4461_v24 = vpop.permute.xlu0 %4460  ;;  %v12722_v41 = vsel %vm4612_vm11, %v4599_v2, %v4463_v51 }
 0x490   :  { %v12719_v25 = vsel %vm4612_vm11, %v4598_v3, %v4461_v24 }
 0x491   :  { %8040 = vmatprep.mubr.msk.f32.mxu1 %vm4731_vm12, %v12719_v25 }
 0x492   :  { %v4131_v0 = vpop.permute.xlu1 %4130  ;;  %8041 = vmatmul.mubr.msk.f32.gmra.mrb[48].mxu1 %vm4731_vm12, %v12722_v41 }
 0x493   :  { %v4129_v27 = vpop.permute.xlu0 %4128  ;;  %v4601_v55 = vsel %vm3490_vm9, %v12341_v15, %v4131_v0 }
 0x494   :  { %v4600_v36 = vsel %vm3490_vm9, %v12351_v1, %v4129_v27 }
 0x496   :  { %v4467_v22 = vpop.permute.xlu1 %4466 }
 0x497   :  { %v4465_v56 = vpop.permute.xlu0 %4464  ;;  %v12736_v50 = vsel %vm4612_vm11, %v4601_v55, %v4467_v22 }
 0x498   :  { %v12733_v60 = vsel %vm4612_vm11, %v4600_v36, %v4465_v56 }
 0x499   :  { %8043 = vmatprep.mubr.msk.f32.mxu1 %vm4731_vm12, %v12733_v60 }
 0x49a   :  { %v4135_v32 = vpop.permute.xlu1 %4134  ;;  %8044 = vmatmul.mubr.msk.f32.gmra.mrb[50].mxu1 %vm4731_vm12, %v12736_v50 }
 0x49b   :  { %v4133_v63 = vpop.permute.xlu0 %4132  ;;  %v4603_v15 = vsel %vm3490_vm9, %v12376_v46, %v4135_v32 }
 0x49c   :  { %v4602_v1 = vsel %vm3490_vm9, %v12386_v23, %v4133_v63 }
 0x49e   :  { %v4471_v4 = vpop.permute.xlu1 %4470 }
 0x49f   :  { %v4469_v62 = vpop.permute.xlu0 %4468  ;;  %v12750_v51 = vsel %vm4612_vm11, %v4603_v15, %v4471_v4 }
 0x4a0   :  { %v12747_v13 = vsel %vm4612_vm11, %v4602_v1, %v4469_v62 }
 0x4a1   :  { %8046 = vmatprep.mubr.msk.f32.mxu1 %vm4731_vm12, %v12747_v13 }
 0x4a2   :  { %v4139_v3 = vpop.permute.xlu1 %4138  ;;  %8047 = vmatmul.mubr.msk.f32.gmra.mrb[52].mxu1 %vm4731_vm12, %v12750_v51 }
 0x4a3   :  { %v4137_v24 = vpop.permute.xlu0 %4136  ;;  %v4605_v46 = vsel %vm3490_vm9, %v12411_v61, %v4139_v3 }
 0x4a4   :  { %v4604_v23 = vsel %vm3490_vm9, %v12421_v9, %v4137_v24 }
 0x4a6   :  { %v4475_v2 = vpop.permute.xlu1 %4474 }
 0x4a7   :  { %v4473_v0 = vpop.permute.xlu0 %4472  ;;  %v12764_v22 = vsel %vm4612_vm11, %v4605_v46, %v4475_v2 }
 0x4a8   :  { %v12761_v27 = vsel %vm4612_vm11, %v4604_v23, %v4473_v0 }
 0x4a9   :  { %8049 = vmatprep.mubr.msk.f32.mxu1 %vm4731_vm12, %v12761_v27 }
 0x4aa   :  { %v4143_v36 = vpop.permute.xlu1 %4142  ;;  %8050 = vmatmul.mubr.msk.f32.gmra.mrb[54].mxu1 %vm4731_vm12, %v12764_v22 }
 0x4ab   :  { %v4141_v56 = vpop.permute.xlu0 %4140  ;;  %v4607_v61 = vsel %vm3490_vm9, %v12446_v14, %v4143_v36 }
 0x4ac   :  { %v4606_v9 = vsel %vm3490_vm9, %v12456_v39, %v4141_v56 }
 0x4ae   :  { %v4479_v55 = vpop.permute.xlu1 %4478 }
 0x4af   :  { %v4477_v32 = vpop.permute.xlu0 %4476  ;;  %v12778_v4 = vsel %vm4612_vm11, %v4607_v61, %v4479_v55 }
 0x4b0   :  { %v12775_v63 = vsel %vm4612_vm11, %v4606_v9, %v4477_v32 }
 0x4b1   :  { %8052 = vmatprep.mubr.msk.f32.mxu1 %vm4731_vm12, %v12775_v63 }
 0x4b2   :  { %v4147_v1 = vpop.permute.xlu1 %4146  ;;  %8053 = vmatmul.mubr.msk.f32.gmra.mrb[56].mxu1 %vm4731_vm12, %v12778_v4 }
 0x4b3   :  { %v4145_v62 = vpop.permute.xlu0 %4144  ;;  %v4609_v14 = vsel %vm3490_vm9, %v12481_v31, %v4147_v1 }
 0x4b4   :  { %v4608_v39 = vsel %vm3490_vm9, %v12491_v34, %v4145_v62 }
 0x4b6   :  { %v4483_v15 = vpop.permute.xlu1 %4482 }
 0x4b7   :  { %v4481_v3 = vpop.permute.xlu0 %4480  ;;  %v12792_v2 = vsel %vm4612_vm11, %v4609_v14, %v4483_v15 }
 0x4b8   :  { %v12789_v24 = vsel %vm4612_vm11, %v4608_v39, %v4481_v3 }
 0x4b9   :  { %8055 = vmatprep.mubr.msk.f32.mxu1 %vm4731_vm12, %v12789_v24 }
 0x4ba   :  { %v4151_v23 = vpop.permute.xlu1 %4150  ;;  %8056 = vmatmul.mubr.msk.f32.gmra.mrb[58].mxu1 %vm4731_vm12, %v12792_v2 }
 0x4bb   :  { %v4149_v0 = vpop.permute.xlu0 %4148  ;;  %v4611_v31 = vsel %vm3490_vm9, %v12513_v59, %v4151_v23 }
 0x4bc   :  { %v4610_v34 = vsel %vm3490_vm9, %v12519_v37, %v4149_v0 }
 0x4be   :  { %v4487_v46 = vpop.permute.xlu1 %4486 }
 0x4bf   :  { %v4485_v36 = vpop.permute.xlu0 %4484  ;;  %v12806_v55 = vsel %vm4612_vm11, %v4611_v31, %v4487_v46  ;;  %v14031_v46 = vld [vmem:[#allocation24_spill] sm:$0xff] }
 0x4c0   :  { %v12803_v56 = vsel %vm4612_vm11, %v4610_v34, %v4485_v36  ;;  %v14032_v34 = vld [vmem:[#allocation27_spill] sm:$0xff] }
 0x4c1   :  { %8058 = vmatprep.mubr.msk.f32.mxu1 %vm4731_vm12, %v12803_v56 }
 0x4c2   :  { %v4696_v9 = vpop.permute.xlu1 %4695  ;;  %8059 = vmatmul.mubr.msk.f32.gmra.mrb[60].mxu1 %vm4731_vm12, %v12806_v55 }
 0x4c3   :  { %v4694_v32 = vpop.permute.xlu0 %4693  ;;  %v4726_v59 = vsel %vm3490_vm9, %v12552_v29, %v4696_v9 }
 0x4c4   :  { %v4725_v37 = vsel %vm3490_vm9, %v12561_v30, %v4694_v32  ;;  %v14033_v32 = vld [vmem:[#allocation87_spill] sm:$0xff] }
 0x4c6   :  { %v4718_v61 = vpop.permute.xlu1 %4717 }
 0x4c7   :  { %v4716_v1 = vpop.permute.xlu0 %4715  ;;  %v12820_v15 = vsel %vm4612_vm11, %v4726_v59, %v4718_v61  ;;  %v14034_v61 = vld [vmem:[#allocation88_spill] sm:$0xff]  ;;  %v14039_v59 = vld [vmem:[#allocation93_spill] sm:$0xff] }
 0x4c8   :  { %v12817_v62 = vsel %vm4612_vm11, %v4725_v37, %v4716_v1  ;;  %v14037_v37 = vld [vmem:[#allocation91_spill] sm:$0xff]  ;;  %v14038_v1 = vld [vmem:[#allocation92_spill] sm:$0xff] }
 0x4c9   :  { %8061 = vmatprep.mubr.msk.f32.mxu1 %vm4731_vm12, %v12817_v62 }
 0x4ca   :  { %8062 = vmatmul.mubr.msk.f32.gmra.mrb[62].mxu1 %vm4731_vm12, %v12820_v15  ;;  %v8580_v39 = vpop.permute.xlu1 %8579 }
 0x4cb   :  { %v8575_v3 = vpop.permute.xlu0 %8574  ;;  %v8582_v14 = vunpack.i.h.bf16 %v8580_v39  ;;  %v8581_v30 = vunpack.i.l.bf16 %v8580_v39  ;;  %v14040_v39 = vld [vmem:[#allocation94_spill] sm:$0xff] }
 0x4cc   :  { %v8577_v23 = vunpack.i.h.bf16 %v8575_v3  ;;  %v8576_v0 = vunpack.i.l.bf16 %v8575_v3  ;;  %v14041_v3 = vld [vmem:[#allocation95_spill] sm:$0xff] }
 0x4ce   :  { %v4551_v29 = vsel %vm3490_vm9, %v14031_v46, %v8577_v23  ;;  %v4550_v36 = vsel %vm3490_vm9, %v14032_v34, %v8576_v0  ;;  %v14044_v23 = vld [vmem:[#allocation71_spill] sm:$0xff]  ;;  %v14045_v0 = vld [vmem:[#allocation70_spill] sm:$0xff]  ;;  %v14046_v46 = vld [vmem:[#allocation76_spill] sm:$0xff] }
 0x4cf   :  { %v12831_v31 = vsel %vm4612_vm11, %v4551_v29, %v8582_v14  ;;  %v12834_v9 = vsel %vm4612_vm11, %v4550_v36, %v8581_v30  ;;  %v14042_v14 = vld [vmem:[#allocation96_spill] sm:$0xff]  ;;  %v14043_v30 = vld [vmem:[#allocation97_spill] sm:$0xff]  ;;  %v14049_v36 = vld [vmem:[#allocation79_spill] sm:$0xff] }
 0x4d0   :  { %8068 = vmatprep.mubr.msk.f32.mxu1 %vm4731_vm12, %v12834_v9  ;;  %v14047_v29 = vld [vmem:[#allocation73_spill] sm:$0xff]  ;;  %v14048_v34 = vld [vmem:[#allocation72_spill] sm:$0xff] }
 0x4d1   :  { %8069 = vmatmul.mubr.msk.f32.vlgmr.msra.gmra.mrb[0].mxu1 %vm4731_vm12, %v12831_v31 }
 0x4d2   :  { %8299 = vmatpush3.bf16.msk.msra.mxu1 %vm11229_vm10, %v12601_v5  ;;  %8071 = vmatprep.mubr.msk.f32.mxu1 %vm4731_vm12, %v14033_v32  ;;  %v14036_v5 = vld [vmem:[#allocation90_spill] sm:$0xff]  ;;  %v14050_v32 = vld [vmem:[#allocation80_spill] sm:$0xff] }
 0x4d5   :  { %8072 = vmatmul.mubr.msk.f32.gmra.mrb[2].mxu1 %vm4731_vm12, %v14034_v61  ;;  %v14051_v61 = vld [vmem:[#allocation75_spill] sm:$0xff] }
 0x4d6   :  { %8074 = vmatprep.mubr.msk.f32.mxu1 %vm4731_vm12, %v12066_v6 }
 0x4d9   :  { %8075 = vmatmul.mubr.msk.f32.gmra.mrb[4].mxu1 %vm4731_vm12, %v12074_v21 }
 0x4da   :  { %8077 = vmatprep.mubr.msk.f32.mxu1 %vm4731_vm12, %v12101_v26 }
 0x4dd   :  { %8078 = vmatmul.mubr.msk.f32.gmra.mrb[6].mxu1 %vm4731_vm12, %v12109_v40 }
 0x4de   :  { %8080 = vmatprep.mubr.msk.f32.mxu1 %vm4731_vm12, %v12136_v54 }
 0x4e1   :  { %8081 = vmatmul.mubr.msk.f32.gmra.mrb[8].mxu1 %vm4731_vm12, %v12144_v8 }
 0x4e2   :  { %8083 = vmatprep.mubr.msk.f32.mxu1 %vm4731_vm12, %v12171_v49 }
 0x4e5   :  { %8084 = vmatmul.mubr.msk.f32.gmra.mrb[10].mxu1 %vm4731_vm12, %v12179_v28 }
 0x4e6   :  { %8086 = vmatprep.mubr.msk.f32.mxu1 %vm4731_vm12, %v12206_v42 }
 0x4e9   :  { %8087 = vmatmul.mubr.msk.f32.gmra.mrb[12].mxu1 %vm4731_vm12, %v14035_v35 }
 0x4ea   :  { %8089 = vmatprep.mubr.msk.f32.mxu1 %vm4731_vm12, %v14036_v5 }
 0x4ed   :  { %8090 = vmatmul.mubr.msk.f32.gmra.mrb[14].mxu1 %vm4731_vm12, %v14037_v37 }
 0x4ee   :  { %8092 = vmatprep.mubr.msk.f32.mxu1 %vm4731_vm12, %v14038_v1 }
 0x4f1   :  { %8093 = vmatmul.mubr.msk.f32.gmra.mrb[16].mxu1 %vm4731_vm12, %v14039_v59 }
 0x4f2   :  { %8095 = vmatprep.mubr.msk.f32.mxu1 %vm4731_vm12, %v14040_v39 }
 0x4f5   :  { %8096 = vmatmul.mubr.msk.f32.gmra.mrb[18].mxu1 %vm4731_vm12, %v14041_v3 }
 0x4f6   :  { %8098 = vmatprep.mubr.msk.f32.mxu1 %vm4731_vm12, %v14042_v14 }
 0x4f9   :  { %8099 = vmatmul.mubr.msk.f32.gmra.mrb[20].mxu1 %vm4731_vm12, %v14043_v30 }
 0x4fa   :  { %8101 = vmatprep.mubr.msk.f32.mxu1 %vm4731_vm12, %v14044_v23 }
 0x4fd   :  { %8102 = vmatmul.mubr.msk.f32.gmra.mrb[22].mxu1 %vm4731_vm12, %v14045_v0 }
 0x4fe   :  { %8104 = vmatprep.mubr.msk.f32.mxu1 %vm4731_vm12, %v14046_v46 }
 0x501   :  { %8105 = vmatmul.mubr.msk.f32.gmra.mrb[24].mxu1 %vm4731_vm12, %v14047_v29 }
 0x502   :  { %8107 = vmatprep.mubr.msk.f32.mxu1 %vm4731_vm12, %v14048_v34 }
 0x505   :  { %8108 = vmatmul.mubr.msk.f32.gmra.mrb[26].mxu1 %vm4731_vm12, %v14049_v36 }
 0x506   :  { %8110 = vmatprep.mubr.msk.f32.mxu1 %vm4731_vm12, %v14050_v32 }
 0x509   :  { %8111 = vmatmul.mubr.msk.f32.gmra.mrb[28].mxu1 %vm4731_vm12, %v14051_v61 }
 0x50a   :  { %8113 = vmatprep.mubr.msk.f32.mxu1 %vm4731_vm12, %v12524_v11 }
 0x50d   :  { %8114 = vmatmul.mubr.msk.f32.gmra.mrb[30].mxu1 %vm4731_vm12, %v12529_v47 }
 0x50e   :  { %8116 = vmatprep.mubr.msk.f32.mxu1 %vm4731_vm12, %v12834_v9 }
 0x511   :  { %8117 = vmatmul.mubr.msk.f32.gmra.mrb[32].mxu1 %vm4731_vm12, %v12831_v31 }
 0x512   :  { %8119 = vmatprep.mubr.msk.f32.mxu1 %vm4731_vm12, %v12585_v33 }
 0x515   :  { %8120 = vmatmul.mubr.msk.f32.gmra.mrb[34].mxu1 %vm4731_vm12, %v12596_v45 }
 0x516   :  { %8122 = vmatprep.mubr.msk.f32.mxu1 %vm4731_vm12, %v12617_v44 }
 0x519   :  { %8123 = vmatmul.mubr.msk.f32.gmra.mrb[36].mxu1 %vm4731_vm12, %v12622_v53 }
 0x51a   :  { %8125 = vmatprep.mubr.msk.f32.mxu1 %vm4731_vm12, %v12635_v58 }
 0x51d   :  { %8126 = vmatmul.mubr.msk.f32.gmra.mrb[38].mxu1 %vm4731_vm12, %v12638_v7 }
 0x51e   :  { %8128 = vmatprep.mubr.msk.f32.mxu1 %vm4731_vm12, %v12649_v57 }
 0x521   :  { %8129 = vmatmul.mubr.msk.f32.gmra.mrb[40].mxu1 %vm4731_vm12, %v12652_v18 }
 0x522   :  { %8131 = vmatprep.mubr.msk.f32.mxu1 %vm4731_vm12, %v12663_v48 }
 0x525   :  { %8132 = vmatmul.mubr.msk.f32.gmra.mrb[42].mxu1 %vm4731_vm12, %v12666_v43 }
 0x526   :  { %8134 = vmatprep.mubr.msk.f32.mxu1 %vm4731_vm12, %v12677_v20 }
 0x529   :  { %8135 = vmatmul.mubr.msk.f32.gmra.mrb[44].mxu1 %vm4731_vm12, %v12680_v12 }
 0x52a   :  { %8137 = vmatprep.mubr.msk.f32.mxu1 %vm4731_vm12, %v12691_v16 }
 0x52d   :  { %8138 = vmatmul.mubr.msk.f32.gmra.mrb[46].mxu1 %vm4731_vm12, %v12694_v17 }
 0x52e   :  { %8140 = vmatprep.mubr.msk.f32.mxu1 %vm4731_vm12, %v12705_v10 }
 0x531   :  { %8141 = vmatmul.mubr.msk.f32.gmra.mrb[48].mxu1 %vm4731_vm12, %v12708_v38 }
 0x532   :  { %8143 = vmatprep.mubr.msk.f32.mxu1 %vm4731_vm12, %v12719_v25 }
 0x535   :  { %8144 = vmatmul.mubr.msk.f32.gmra.mrb[50].mxu1 %vm4731_vm12, %v12722_v41 }
 0x536   :  { %8146 = vmatprep.mubr.msk.f32.mxu1 %vm4731_vm12, %v12733_v60 }
 0x539   :  { %8147 = vmatmul.mubr.msk.f32.gmra.mrb[52].mxu1 %vm4731_vm12, %v12736_v50 }
 0x53a   :  { %8149 = vmatprep.mubr.msk.f32.mxu1 %vm4731_vm12, %v12747_v13 }
 0x53d   :  { %8150 = vmatmul.mubr.msk.f32.gmra.mrb[54].mxu1 %vm4731_vm12, %v12750_v51 }
 0x53e   :  { %8152 = vmatprep.mubr.msk.f32.mxu1 %vm4731_vm12, %v12761_v27 }
 0x541   :  { %8153 = vmatmul.mubr.msk.f32.gmra.mrb[56].mxu1 %vm4731_vm12, %v12764_v22 }
 0x542   :  { %8155 = vmatprep.mubr.msk.f32.mxu1 %vm4731_vm12, %v12775_v63 }
 0x545   :  { %8156 = vmatmul.mubr.msk.f32.gmra.mrb[58].mxu1 %vm4731_vm12, %v12778_v4 }
 0x546   :  { %8158 = vmatprep.mubr.msk.f32.mxu1 %vm4731_vm12, %v12789_v24 }
 0x549   :  { %8159 = vmatmul.mubr.msk.f32.gmra.mrb[60].mxu1 %vm4731_vm12, %v12792_v2 }
 0x54a   :  { %8161 = vmatprep.mubr.msk.f32.mxu1 %vm4731_vm12, %v12803_v56 }
 0x54d   :  { %8162 = vmatmul.mubr.msk.f32.gmra.mrb[62].mxu1 %vm4731_vm12, %v12806_v55 }
 0x54e   :  { %8168 = vmatprep.mubr.msk.f32.mxu1 %vm4731_vm12, %v12066_v6  ;;  %v13098_v6 = vld [vmem:[%s13687_s5] ss:$0 sm:$0xff] }
 0x551   :  { %8169 = vmatmul.mubr.msk.f32.vlgmr.msra.gmra.mrb[0].mxu1 %vm4731_vm12, %v12074_v21 }
 0x552   :  { %8171 = vmatprep.mubr.msk.f32.mxu1 %vm4731_vm12, %v12101_v26 }
 0x555   :  { %8172 = vmatmul.mubr.msk.f32.gmra.mrb[2].mxu1 %vm4731_vm12, %v12109_v40 }
 0x556   :  { %8174 = vmatprep.mubr.msk.f32.mxu1 %vm4731_vm12, %v12136_v54 }
 0x559   :  { %8175 = vmatmul.mubr.msk.f32.gmra.mrb[4].mxu1 %vm4731_vm12, %v12144_v8 }
 0x55a   :  { %8177 = vmatprep.mubr.msk.f32.mxu1 %vm4731_vm12, %v12171_v49 }
 0x55d   :  { %8178 = vmatmul.mubr.msk.f32.gmra.mrb[6].mxu1 %vm4731_vm12, %v12179_v28 }
 0x55e   :  { %8180 = vmatprep.mubr.msk.f32.mxu1 %vm4731_vm12, %v12206_v42 }
 0x561   :  { %8181 = vmatmul.mubr.msk.f32.gmra.mrb[8].mxu1 %vm4731_vm12, %v14035_v35 }
 0x562   :  { %8183 = vmatprep.mubr.msk.f32.mxu1 %vm4731_vm12, %v14036_v5 }
 0x565   :  { %8184 = vmatmul.mubr.msk.f32.gmra.mrb[10].mxu1 %vm4731_vm12, %v14037_v37 }
 0x566   :  { %8186 = vmatprep.mubr.msk.f32.mxu1 %vm4731_vm12, %v14038_v1 }
 0x569   :  { %8187 = vmatmul.mubr.msk.f32.gmra.mrb[12].mxu1 %vm4731_vm12, %v14039_v59 }
 0x56a   :  { %8189 = vmatprep.mubr.msk.f32.mxu1 %vm4731_vm12, %v14040_v39 }
 0x56d   :  { %8190 = vmatmul.mubr.msk.f32.gmra.mrb[14].mxu1 %vm4731_vm12, %v14041_v3 }
 0x56e   :  { %8192 = vmatprep.mubr.msk.f32.mxu1 %vm4731_vm12, %v14042_v14 }
 0x571   :  { %8193 = vmatmul.mubr.msk.f32.gmra.mrb[16].mxu1 %vm4731_vm12, %v14043_v30 }
 0x572   :  { %8195 = vmatprep.mubr.msk.f32.mxu1 %vm4731_vm12, %v14044_v23 }
 0x575   :  { %8196 = vmatmul.mubr.msk.f32.gmra.mrb[18].mxu1 %vm4731_vm12, %v14045_v0 }
 0x576   :  { %8198 = vmatprep.mubr.msk.f32.mxu1 %vm4731_vm12, %v14046_v46 }
 0x579   :  { %8199 = vmatmul.mubr.msk.f32.gmra.mrb[20].mxu1 %vm4731_vm12, %v14047_v29 }
 0x57a   :  { %8201 = vmatprep.mubr.msk.f32.mxu1 %vm4731_vm12, %v14048_v34  ;;  %v14052_v34 = vld [vmem:[#allocation3_spill] sm:$0xff] }
 0x57d   :  { %8202 = vmatmul.mubr.msk.f32.gmra.mrb[22].mxu1 %vm4731_vm12, %v14049_v36 }
 0x57e   :  { %8204 = vmatprep.mubr.msk.f32.mxu1 %vm4731_vm12, %v14050_v32 }
 0x581   :  { %8205 = vmatmul.mubr.msk.f32.gmra.mrb[24].mxu1 %vm4731_vm12, %v14051_v61 }
 0x582   :  { %8207 = vmatprep.mubr.msk.f32.mxu1 %vm4731_vm12, %v12524_v11 }
 0x585   :  { %8208 = vmatmul.mubr.msk.f32.gmra.mrb[26].mxu1 %vm4731_vm12, %v12529_v47 }
 0x586   :  { %8210 = vmatprep.mubr.msk.f32.mxu1 %vm4731_vm12, %v12557_v19 }
 0x589   :  { %8211 = vmatmul.mubr.msk.f32.gmra.mrb[28].mxu1 %vm4731_vm12, %v12564_v52 }
 0x58a   :  { %8213 = vmatprep.mubr.msk.f32.mxu1 %vm4731_vm12, %v12834_v9 }
 0x58d   :  { %8214 = vmatmul.mubr.msk.f32.gmra.mrb[30].mxu1 %vm4731_vm12, %v12831_v31 }
 0x58e   :  { %8216 = vmatprep.mubr.msk.f32.mxu1 %vm4731_vm12, %v12617_v44 }
 0x591   :  { %8217 = vmatmul.mubr.msk.f32.gmra.mrb[32].mxu1 %vm4731_vm12, %v12622_v53 }
 0x592   :  { %8219 = vmatprep.mubr.msk.f32.mxu1 %vm4731_vm12, %v12635_v58 }
 0x595   :  { %8220 = vmatmul.mubr.msk.f32.gmra.mrb[34].mxu1 %vm4731_vm12, %v12638_v7 }
 0x596   :  { %8222 = vmatprep.mubr.msk.f32.mxu1 %vm4731_vm12, %v12649_v57 }
 0x599   :  { %8223 = vmatmul.mubr.msk.f32.gmra.mrb[36].mxu1 %vm4731_vm12, %v12652_v18 }
 0x59a   :  { %8225 = vmatprep.mubr.msk.f32.mxu1 %vm4731_vm12, %v12663_v48 }
 0x59d   :  { %8226 = vmatmul.mubr.msk.f32.gmra.mrb[38].mxu1 %vm4731_vm12, %v12666_v43 }
 0x59e   :  { %8228 = vmatprep.mubr.msk.f32.mxu1 %vm4731_vm12, %v12677_v20 }
 0x5a1   :  { %8229 = vmatmul.mubr.msk.f32.gmra.mrb[40].mxu1 %vm4731_vm12, %v12680_v12 }
 0x5a2   :  { %8231 = vmatprep.mubr.msk.f32.mxu1 %vm4731_vm12, %v12691_v16 }
 0x5a5   :  { %8232 = vmatmul.mubr.msk.f32.gmra.mrb[42].mxu1 %vm4731_vm12, %v12694_v17 }
 0x5a6   :  { %8234 = vmatprep.mubr.msk.f32.mxu1 %vm4731_vm12, %v12705_v10 }
 0x5a9   :  { %8235 = vmatmul.mubr.msk.f32.gmra.mrb[44].mxu1 %vm4731_vm12, %v12708_v38 }
 0x5aa   :  { %8237 = vmatprep.mubr.msk.f32.mxu1 %vm4731_vm12, %v12719_v25 }
 0x5ad   :  { %8238 = vmatmul.mubr.msk.f32.gmra.mrb[46].mxu1 %vm4731_vm12, %v12722_v41 }
 0x5ae   :  { %8240 = vmatprep.mubr.msk.f32.mxu1 %vm4731_vm12, %v12733_v60 }
 0x5b1   :  { %8241 = vmatmul.mubr.msk.f32.gmra.mrb[48].mxu1 %vm4731_vm12, %v12736_v50 }
 0x5b2   :  { %8243 = vmatprep.mubr.msk.f32.mxu1 %vm4731_vm12, %v12747_v13 }
 0x5b5   :  { %8244 = vmatmul.mubr.msk.f32.gmra.mrb[50].mxu1 %vm4731_vm12, %v12750_v51 }
 0x5b6   :  { %8246 = vmatprep.mubr.msk.f32.mxu1 %vm4731_vm12, %v12761_v27 }
 0x5b9   :  { %8247 = vmatmul.mubr.msk.f32.gmra.mrb[52].mxu1 %vm4731_vm12, %v12764_v22 }
 0x5ba   :  { %8249 = vmatprep.mubr.msk.f32.mxu1 %vm4731_vm12, %v12775_v63 }
 0x5bd   :  { %8250 = vmatmul.mubr.msk.f32.gmra.mrb[54].mxu1 %vm4731_vm12, %v12778_v4 }
 0x5be   :  { %8252 = vmatprep.mubr.msk.f32.mxu1 %vm4731_vm12, %v12789_v24 }
 0x5c1   :  { %8253 = vmatmul.mubr.msk.f32.gmra.mrb[56].mxu1 %vm4731_vm12, %v12792_v2 }
 0x5c2   :  { %8255 = vmatprep.mubr.msk.f32.mxu1 %vm4731_vm12, %v12803_v56 }
 0x5c5   :  { %8256 = vmatmul.mubr.msk.f32.gmra.mrb[58].mxu1 %vm4731_vm12, %v12806_v55 }
 0x5c6   :  { %8258 = vmatprep.mubr.msk.f32.mxu1 %vm4731_vm12, %v12817_v62 }
 0x5c9   :  { %8259 = vmatmul.mubr.msk.f32.gmra.mrb[60].mxu1 %vm4731_vm12, %v12820_v15 }
 0x5ca   :  { %8261 = vmatprep.mubr.msk.f32.mxu1 %vm4731_vm12, %v12834_v9 }
 0x5cd   :  { %8262 = vmatmul.mubr.msk.f32.gmra.mrb[62].mxu1 %vm4731_vm12, %v12831_v31 }
 0x624   :  { %v8170_v21 = vpop.f32.mrb[0].mxu1 }
 0x625   :  { %v6165_v26 = vadd.f32 %v8170_v21, %v13098_v6  ;;  %v5775_v40 = vpop.f32.mrb[1].mxu1 }
 0x626   :  { %v6164_v54 = vadd.f32 %v13098_v6, %v5775_v40 }
 0x627   :  { %v7205_v8 = vmul.f32 -1.442695, %v6165_v26  ;;  %v14053_v26 = vld [vmem:[#allocation2_spill] sm:$0xff] }
 0x628   :  { %v7204_v49 = vmul.f32 -1.442695, %v6164_v54  ;;  %v8173_v28 = vpop.f32.mrb[2].mxu1 }
 0x629   :  { %8583 = vpow2.f32 %v7205_v8  ;;  %v6167_v42 = vadd.f32 %v8173_v28, %v13098_v6  ;;  %v5785_v47 = vpop.f32.mrb[3].mxu1 }
 0x62a   :  { %8585 = vpow2.f32 %v7204_v49  ;;  %v6166_v11 = vadd.f32 %v13098_v6, %v5785_v47  ;;  %v8839_v49 = vld [vmem:[%s13681_s0 + $0x8] sm:$0xff] }
 0x62b   :  { %v7207_v19 = vmul.f32 -1.442695, %v6167_v42 }
 0x62c   :  { %v7206_v52 = vmul.f32 -1.442695, %v6166_v11  ;;  %v8176_v33 = vpop.f32.mrb[4].mxu1 }
 0x62d   :  { %8587 = vpow2.f32 %v7207_v19  ;;  %v6169_v45 = vadd.f32 %v8176_v33, %v13098_v6  ;;  %v5795_v44 = vpop.f32.mrb[5].mxu1  ;;  %v8840_v19 = vld [vmem:[%s13681_s0] sm:$0xff] }
 0x62e   :  { %8589 = vpow2.f32 %v7206_v52  ;;  %v6168_v53 = vadd.f32 %v13098_v6, %v5795_v44 }
 0x62f   :  { %v7209_v58 = vmul.f32 -1.442695, %v6169_v45 }
 0x630   :  { %v7208_v7 = vmul.f32 -1.442695, %v6168_v53  ;;  %v8179_v57 = vpop.f32.mrb[6].mxu1 }
 0x631   :  { %8591 = vpow2.f32 %v7209_v58  ;;  %v6171_v18 = vadd.f32 %v8179_v57, %v13098_v6  ;;  %v5805_v48 = vpop.f32.mrb[7].mxu1  ;;  %v14054_v58 = vld [vmem:[#allocation5_spill] sm:$0xff] }
 0x632   :  { %8593 = vpow2.f32 %v7208_v7  ;;  %v6170_v43 = vadd.f32 %v13098_v6, %v5805_v48 }
 0x633   :  { %v8584_v20 = vpop.eup %8583  ;;  %v7211_v12 = vmul.f32 -1.442695, %v6171_v18 }
 0x634   :  { %v8586_v16 = vpop.eup %8585  ;;  %v6421_v17 = vadd.f32 1.0, %v8584_v20  ;;  %v7210_v10 = vmul.f32 -1.442695, %v6170_v43  ;;  %v8182_v38 = vpop.f32.mrb[8].mxu1  ;;  %v14055_v43 = vld [vmem:[#allocation4_spill] sm:$0xff] }
 0x635   :  { %v6420_v25 = vadd.f32 1.0, %v8586_v16  ;;  %8595 = vpow2.f32 %v7211_v12  ;;  %v6173_v41 = vadd.f32 %v8182_v38, %v13098_v6  ;;  %v5815_v60 = vpop.f32.mrb[9].mxu1 }
 0x636   :  { %8597 = vrcp.f32 %v6421_v17  ;;  %v6172_v50 = vadd.f32 %v13098_v6, %v5815_v60  ;;  %v8841_v17 = vld [vmem:[%s13681_s0 + $0x18] sm:$0xff]  ;;  %v8842_v60 = vld [vmem:[%s13681_s0 + $0x10] sm:$0xff] }
 0x637   :  { %v8588_v13 = vpop.eup %8587  ;;  %8599 = vrcp.f32 %v6420_v25  ;;  %v7213_v51 = vmul.f32 -1.442695, %v6173_v41 }
 0x638   :  { %v8590_v27 = vpop.eup %8589  ;;  %v6423_v22 = vadd.f32 1.0, %v8588_v13  ;;  %8601 = vpow2.f32 %v7210_v10  ;;  %v7212_v63 = vmul.f32 -1.442695, %v6172_v50  ;;  %v8185_v4 = vpop.f32.mrb[10].mxu1 }
 0x639   :  { %v6422_v24 = vadd.f32 1.0, %v8590_v27  ;;  %8603 = vpow2.f32 %v7213_v51  ;;  %v6175_v2 = vadd.f32 %v8185_v4, %v13098_v6  ;;  %v5825_v56 = vpop.f32.mrb[11].mxu1 }
 0x63a   :  { %8605 = vrcp.f32 %v6423_v22  ;;  %v6174_v55 = vadd.f32 %v13098_v6, %v5825_v56 }
 0x63b   :  { %v8592_v62 = vpop.eup %8591  ;;  %8607 = vrcp.f32 %v6422_v24  ;;  %v7215_v15 = vmul.f32 -1.442695, %v6175_v2 }
 0x63c   :  { %v8594_v31 = vpop.eup %8593  ;;  %v6425_v9 = vadd.f32 1.0, %v8592_v62  ;;  %8609 = vpow2.f32 %v7212_v63  ;;  %v7214_v35 = vmul.f32 -1.442695, %v6174_v55  ;;  %v8188_v5 = vpop.f32.mrb[12].mxu1  ;;  %v14056_v63 = vld [vmem:[#allocation7_spill] sm:$0xff]  ;;  %v14057_v55 = vld [vmem:[#allocation6_spill] sm:$0xff] }
 0x63d   :  { %v6424_v37 = vadd.f32 1.0, %v8594_v31  ;;  %8611 = vpow2.f32 %v7215_v15  ;;  %v6177_v1 = vadd.f32 %v8188_v5, %v13098_v6  ;;  %v5835_v59 = vpop.f32.mrb[13].mxu1 }
 0x63e   :  { %8613 = vrcp.f32 %v6425_v9  ;;  %v6176_v39 = vadd.f32 %v13098_v6, %v5835_v59  ;;  %v8843_v9 = vld [vmem:[%s13681_s0 + $0x28] sm:$0xff]  ;;  %v8844_v59 = vld [vmem:[%s13681_s0 + $0x20] sm:$0xff] }
 0x63f   :  { %v8596_v3 = vpop.eup %8595  ;;  %8615 = vrcp.f32 %v6424_v37  ;;  %v7217_v14 = vmul.f32 -1.442695, %v6177_v1 }
 0x640   :  { %v8598_v30 = vpop.eup %8597  ;;  %v6427_v23 = vadd.f32 1.0, %v8596_v3  ;;  %8617 = vpow2.f32 %v7214_v35  ;;  %v7216_v0 = vmul.f32 -1.442695, %v6176_v39  ;;  %v8191_v46 = vpop.f32.mrb[14].mxu1 }
 0x641   :  { %v8600_v29 = vpop.eup %8599  ;;  %v6613_v36 = vmul.f32 %v8598_v30, %v14052_v34  ;;  %8619 = vpow2.f32 %v7217_v14  ;;  %v6179_v32 = vadd.f32 %v8191_v46, %v13098_v6  ;;  %v5845_v61 = vpop.f32.mrb[15].mxu1 }
 0x642   :  { %v8602_v21 = vpop.eup %8601  ;;  %v6612_v40 = vmul.f32 %v8600_v29, %v14053_v26  ;;  %8621 = vrcp.f32 %v6427_v23  ;;  %v6178_v54 = vadd.f32 %v13098_v6, %v5845_v61  ;;  %v14058_v23 = vld [vmem:[#allocation9_spill] sm:$0xff] }
 0x643   :  { %v8604_v8 = vpop.eup %8603  ;;  %v6677_v28 = vadd.f32 %v8839_v49, %v6613_v36  ;;  %v6426_v42 = vadd.f32 1.0, %v8602_v21  ;;  %8623 = vpow2.f32 %v7216_v0  ;;  %v7219_v47 = vmul.f32 -1.442695, %v6179_v32  ;;  %v8845_v21 = vld [vmem:[%s13681_s0 + $0x38] sm:$0xff] }
 0x644   :  { %v8606_v11 = vpop.eup %8605  ;;  %v6676_v52 = vadd.f32 %v8840_v19, %v6612_v40  ;;  %v6429_v33 = vadd.f32 1.0, %v8604_v8  ;;  %v7218_v45 = vmul.f32 -1.442695, %v6178_v54  ;;  %v8194_v44 = vpop.f32.mrb[16].mxu1  ;;  %v14059_v8 = vld [vmem:[#allocation8_spill] sm:$0xff] }
 0x645   :  { %v8608_v53 = vpop.eup %8607  ;;  %6741 = vst.msk [vmem:[%s13688_s6 + $0x8] sm:$0xff] %vm1170_vm6, %v6677_v28  ;;  %v6615_v7 = vmul.f32 %v8606_v11, %v14054_v58  ;;  %8625 = vrcp.f32 %v6426_v42  ;;  %v6181_v57 = vadd.f32 %v8194_v44, %v13098_v6  ;;  %v5855_v18 = vpop.f32.mrb[17].mxu1  ;;  %v14060_v11 = vld [vmem:[#allocation11_spill] sm:$0xff]  ;;  %v8846_v44 = vld [vmem:[%s13681_s0 + $0x30] sm:$0xff] }
 0x646   :  { %v8610_v48 = vpop.eup %8609  ;;  %6740 = vst.msk [vmem:[%s13688_s6] sm:$0xff] %vm1170_vm6, %v6676_v52  ;;  %v6614_v20 = vmul.f32 %v8608_v53, %v14055_v43  ;;  %8627 = vrcp.f32 %v6429_v33  ;;  %v6180_v12 = vadd.f32 %v13098_v6, %v5855_v18  ;;  %v8847_v18 = vld [vmem:[%s13681_s0 + $0x48] sm:$0xff] }
 0x647   :  { %v8612_v16 = vpop.eup %8611  ;;  %v6679_v10 = vadd.f32 %v8841_v17, %v6615_v7  ;;  %v6428_v38 = vadd.f32 1.0, %v8610_v48  ;;  %8629 = vpow2.f32 %v7219_v47  ;;  %v7221_v25 = vmul.f32 -1.442695, %v6181_v57 }
 0x648   :  { %v8614_v41 = vpop.eup %8613  ;;  %v6678_v50 = vadd.f32 %v8842_v60, %v6614_v20  ;;  %v6431_v13 = vadd.f32 1.0, %v8612_v16  ;;  %8631 = vpow2.f32 %v7218_v45  ;;  %v7220_v51 = vmul.f32 -1.442695, %v6180_v12  ;;  %v8197_v27 = vpop.f32.mrb[18].mxu1  ;;  %v14061_v16 = vld [vmem:[#allocation10_spill] sm:$0xff] }
 0x649   :  { %v8616_v22 = vpop.eup %8615  ;;  %6743 = vst.msk [vmem:[%s13688_s6 + $0x18] sm:$0xff] %vm1170_vm6, %v6679_v10  ;;  %v6617_v4 = vmul.f32 %v8614_v41, %v14056_v63  ;;  %8633 = vrcp.f32 %v6428_v38  ;;  %v6183_v24 = vadd.f32 %v8197_v27, %v13098_v6  ;;  %v5865_v2 = vpop.f32.mrb[19].mxu1  ;;  %v14062_v41 = vld [vmem:[#allocation13_spill] sm:$0xff]  ;;  %v8848_v27 = vld [vmem:[%s13681_s0 + $0x40] sm:$0xff] }
 0x64a   :  { %v8618_v56 = vpop.eup %8617  ;;  %6742 = vst.msk [vmem:[%s13688_s6 + $0x10] sm:$0xff] %vm1170_vm6, %v6678_v50  ;;  %v6616_v62 = vmul.f32 %v8616_v22, %v14057_v55  ;;  %8635 = vrcp.f32 %v6431_v13  ;;  %v6182_v15 = vadd.f32 %v13098_v6, %v5865_v2  ;;  %v8849_v2 = vld [vmem:[%s13681_s0 + $0x58] sm:$0xff] }
 0x64b   :  { %v8620_v31 = vpop.eup %8619  ;;  %v6681_v35 = vadd.f32 %v8843_v9, %v6617_v4  ;;  %v6430_v5 = vadd.f32 1.0, %v8618_v56  ;;  %8637 = vpow2.f32 %v7221_v25  ;;  %v7223_v37 = vmul.f32 -1.442695, %v6183_v24 }
 0x64c   :  { %v8622_v1 = vpop.eup %8621  ;;  %v6680_v39 = vadd.f32 %v8844_v59, %v6616_v62  ;;  %v6433_v3 = vadd.f32 1.0, %v8620_v31  ;;  %8639 = vpow2.f32 %v7220_v51  ;;  %v8200_v14 = vpop.f32.mrb[20].mxu1  ;;  %v7222_v46 = vmul.f32 -1.442695, %v6182_v15  ;;  %v14063_v31 = vld [vmem:[#allocation12_spill] sm:$0xff] }
 0x64d   :  { %v8624_v30 = vpop.eup %8623  ;;  %6745 = vst.msk [vmem:[%s13688_s6 + $0x28] sm:$0xff] %vm1170_vm6, %v6681_v35  ;;  %v6619_v0 = vmul.f32 %v8622_v1, %v14058_v23  ;;  %8641 = vrcp.f32 %v6430_v5  ;;  %v6185_v29 = vadd.f32 %v8200_v14, %v13098_v6  ;;  %v5875_v34 = vpop.f32.mrb[21].mxu1  ;;  %v14064_v1 = vld [vmem:[#allocation15_spill] sm:$0xff] }
 0x64e   :  { %6744 = vst.msk [vmem:[%s13688_s6 + $0x20] sm:$0xff] %vm1170_vm6, %v6680_v39  ;;  %8643 = vrcp.f32 %v6433_v3  ;;  %v6432_v36 = vadd.f32 1.0, %v8624_v30  ;;  %v6184_v32 = vadd.f32 %v13098_v6, %v5875_v34  ;;  %v8850_v30 = vld [vmem:[%s13681_s0 + $0x50] sm:$0xff]  ;;  %v8851_v34 = vld [vmem:[%s13681_s0 + $0x68] sm:$0xff] }
 0x64f   :  { %v8626_v61 = vpop.eup %8625  ;;  %v6683_v26 = vadd.f32 %v8845_v21, %v6619_v0  ;;  %8645 = vpow2.f32 %v7223_v37  ;;  %v7225_v40 = vmul.f32 -1.442695, %v6185_v29 }
 0x650   :  { %v8628_v54 = vpop.eup %8627  ;;  %v6618_v49 = vmul.f32 %v8626_v61, %v14059_v8  ;;  %8647 = vrcp.f32 %v6432_v36  ;;  %v7224_v28 = vmul.f32 -1.442695, %v6184_v32  ;;  %v8203_v42 = vpop.f32.mrb[22].mxu1  ;;  %v14065_v32 = vld [vmem:[#allocation14_spill] sm:$0xff] }
 0x651   :  { %v8630_v47 = vpop.eup %8629  ;;  %6747 = vst.msk [vmem:[%s13688_s6 + $0x38] sm:$0xff] %vm1170_vm6, %v6683_v26  ;;  %v6621_v19 = vmul.f32 %v8628_v54, %v14060_v11  ;;  %8649 = vpow2.f32 %v7222_v46  ;;  %v6187_v52 = vadd.f32 %v8203_v42, %v13098_v6  ;;  %v5885_v33 = vpop.f32.mrb[23].mxu1 }
 0x652   :  { %v8632_v45 = vpop.eup %8631  ;;  %v6682_v53 = vadd.f32 %v8846_v44, %v6618_v49  ;;  %v6435_v58 = vadd.f32 1.0, %v8630_v47  ;;  %8651 = vpow2.f32 %v7225_v40  ;;  %v6186_v7 = vadd.f32 %v13098_v6, %v5885_v33 }
 0x653   :  { %v8634_v57 = vpop.eup %8633  ;;  %v6685_v48 = vadd.f32 %v8847_v18, %v6621_v19  ;;  %v6434_v43 = vadd.f32 1.0, %v8632_v45  ;;  %8653 = vpow2.f32 %v7224_v28  ;;  %v7227_v20 = vmul.f32 -1.442695, %v6187_v52  ;;  %v8852_v28 = vld [vmem:[%s13681_s0 + $0x60] sm:$0xff]  ;;  %v14067_v18 = vld [vmem:[#allocation16_spill] sm:$0xff] }
 0x654   :  { %v8636_v12 = vpop.eup %8635  ;;  %6746 = vst.msk [vmem:[%s13688_s6 + $0x30] sm:$0xff] %vm1170_vm6, %v6682_v53  ;;  %v6620_v17 = vmul.f32 %v8634_v57, %v14061_v16  ;;  %8655 = vrcp.f32 %v6435_v58  ;;  %v7226_v10 = vmul.f32 -1.442695, %v6186_v7  ;;  %v8206_v38 = vpop.f32.mrb[24].mxu1  ;;  %v14066_v53 = vld [vmem:[#allocation17_spill] sm:$0xff] }
 0x655   :  { %v8638_v25 = vpop.eup %8637  ;;  %6749 = vst.msk [vmem:[%s13688_s6 + $0x48] sm:$0xff] %vm1170_vm6, %v6685_v48  ;;  %v6623_v60 = vmul.f32 %v8636_v12, %v14062_v41  ;;  %8657 = vrcp.f32 %v6434_v43  ;;  %v6189_v50 = vadd.f32 %v8206_v38, %v13098_v6  ;;  %v5895_v13 = vpop.f32.mrb[25].mxu1  ;;  %v8853_v16 = vld [vmem:[%s13681_s0 + $0x78] sm:$0xff] }
 0x656   :  { %v8640_v51 = vpop.eup %8639  ;;  %v6684_v22 = vadd.f32 %v8848_v27, %v6620_v17  ;;  %v6437_v63 = vadd.f32 1.0, %v8638_v25  ;;  %8659 = vpow2.f32 %v7227_v20  ;;  %v6188_v4 = vadd.f32 %v13098_v6, %v5895_v13 }
 0x657   :  { %v8642_v24 = vpop.eup %8641  ;;  %v6687_v56 = vadd.f32 %v8849_v2, %v6623_v60  ;;  %v6436_v55 = vadd.f32 1.0, %v8640_v51  ;;  %8661 = vpow2.f32 %v7226_v10  ;;  %v7229_v62 = vmul.f32 -1.442695, %v6189_v50  ;;  %v8854_v60 = vld [vmem:[%s13681_s0 + $0x70] sm:$0xff]  ;;  %v14069_v2 = vld [vmem:[#allocation18_spill] sm:$0xff] }
 0x658   :  { %v8644_v15 = vpop.eup %8643  ;;  %6748 = vst.msk [vmem:[%s13688_s6 + $0x40] sm:$0xff] %vm1170_vm6, %v6684_v22  ;;  %v6622_v9 = vmul.f32 %v8642_v24, %v14063_v31  ;;  %8663 = vrcp.f32 %v6437_v63  ;;  %v7228_v35 = vmul.f32 -1.442695, %v6188_v4  ;;  %v8209_v5 = vpop.f32.mrb[26].mxu1  ;;  %v14068_v22 = vld [vmem:[#allocation19_spill] sm:$0xff] }
 0x659   :  { %v8646_v37 = vpop.eup %8645  ;;  %6751 = vst.msk [vmem:[%s13688_s6 + $0x58] sm:$0xff] %vm1170_vm6, %v6687_v56  ;;  %v6625_v59 = vmul.f32 %v8644_v15, %v14064_v1  ;;  %8665 = vrcp.f32 %v6436_v55  ;;  %v6191_v39 = vadd.f32 %v8209_v5, %v13098_v6  ;;  %v5905_v3 = vpop.f32.mrb[27].mxu1  ;;  %v8855_v31 = vld [vmem:[%s13681_s0 + $0x88] sm:$0xff] }
 0x65a   :  { %v8648_v14 = vpop.eup %8647  ;;  %v6686_v23 = vadd.f32 %v8850_v30, %v6622_v9  ;;  %v6439_v0 = vadd.f32 1.0, %v8646_v37  ;;  %8667 = vpow2.f32 %v7229_v62  ;;  %v6190_v46 = vadd.f32 %v13098_v6, %v5905_v3 }
 0x65b   :  { %v8650_v29 = vpop.eup %8649  ;;  %v6689_v36 = vadd.f32 %v8851_v34, %v6625_v59  ;;  %v6624_v61 = vmul.f32 %v8648_v14, %v14065_v32  ;;  %8669 = vpow2.f32 %v7228_v35  ;;  %v7231_v21 = vmul.f32 -1.442695, %v6191_v39  ;;  %v8856_v59 = vld [vmem:[%s13681_s0 + $0x80] sm:$0xff] }
 0x65c   :  { %v8652_v26 = vpop.eup %8651  ;;  %6750 = vst.msk [vmem:[%s13688_s6 + $0x50] sm:$0xff] %vm1170_vm6, %v6686_v23  ;;  %8671 = vrcp.f32 %v6439_v0  ;;  %v6438_v40 = vadd.f32 1.0, %v8650_v29  ;;  %v7230_v54 = vmul.f32 -1.442695, %v6190_v46  ;;  %v8212_v8 = vpop.f32.mrb[28].mxu1  ;;  %v14070_v23 = vld [vmem:[#allocation21_spill] sm:$0xff] }
 0x65d   :  { %v8654_v49 = vpop.eup %8653  ;;  %6753 = vst.msk [vmem:[%s13688_s6 + $0x68] sm:$0xff] %vm1170_vm6, %v6689_v36  ;;  %v6688_v42 = vadd.f32 %v8852_v28, %v6624_v61  ;;  %v6441_v47 = vadd.f32 1.0, %v8652_v26  ;;  %8673 = vpow2.f32 %v7231_v21  ;;  %v6193_v11 = vadd.f32 %v8212_v8, %v13098_v6  ;;  %v5915_v19 = vpop.f32.mrb[29].mxu1  ;;  %v8857_v21 = vld [vmem:[%s13681_s0 + $0x98] sm:$0xff] }
 0x65e   :  { %v8656_v52 = vpop.eup %8655  ;;  %8675 = vrcp.f32 %v6438_v40  ;;  %v6440_v33 = vadd.f32 1.0, %v8654_v49  ;;  %v6192_v45 = vadd.f32 %v13098_v6, %v5915_v19  ;;  %v14071_v40 = vld [vmem:[#allocation20_spill] sm:$0xff] }
 0x65f   :  { %v8658_v44 = vpop.eup %8657  ;;  %6752 = vst.msk [vmem:[%s13688_s6 + $0x60] sm:$0xff] %vm1170_vm6, %v6688_v42  ;;  %v6627_v58 = vmul.f32 %v8656_v52, %v14066_v53  ;;  %8677 = vrcp.f32 %v6441_v47  ;;  %v7233_v7 = vmul.f32 -1.442695, %v6193_v11  ;;  %v14072_v42 = vld [vmem:[#allocation23_spill] sm:$0xff]  ;;  %v8858_v52 = vld [vmem:[%s13681_s0 + $0x90] sm:$0xff] }
 0x660   :  { %v8660_v57 = vpop.eup %8659  ;;  %v6626_v48 = vmul.f32 %v8658_v44, %v14067_v18  ;;  %8679 = vrcp.f32 %v6440_v33  ;;  %v7232_v43 = vmul.f32 -1.442695, %v6192_v45  ;;  %v8215_v20 = vpop.f32.mrb[30].mxu1  ;;  %v14073_v45 = vld [vmem:[#allocation22_spill] sm:$0xff] }
 0x661   :  { %v8662_v12 = vpop.eup %8661  ;;  %v6691_v17 = vadd.f32 %v8853_v16, %v6627_v58  ;;  %v6443_v10 = vadd.f32 1.0, %v8660_v57  ;;  %8681 = vpow2.f32 %v7230_v54  ;;  %v6195_v38 = vadd.f32 %v8215_v20, %v13098_v6  ;;  %v5925_v25 = vpop.f32.mrb[31].mxu1 }
 0x662   :  { %v8664_v41 = vpop.eup %8663  ;;  %v6690_v50 = vadd.f32 %v8854_v60, %v6626_v48  ;;  %v6442_v13 = vadd.f32 1.0, %v8662_v12  ;;  %8683 = vpow2.f32 %v7233_v7  ;;  %v6194_v51 = vadd.f32 %v13098_v6, %v5925_v25  ;;  %v8859_v7 = vld [vmem:[%s13681_s0 + $0xa8] sm:$0xff]  ;;  %v8860_v12 = vld [vmem:[%s13681_s0 + $0xa0] sm:$0xff] }
 0x663   :  { %v8666_v27 = vpop.eup %8665  ;;  %6755 = vst.msk [vmem:[%s13688_s6 + $0x78] sm:$0xff] %vm1170_vm6, %v6691_v17  ;;  %v6629_v63 = vmul.f32 %v8664_v41, %v14068_v22  ;;  %8685 = vrcp.f32 %v6443_v10  ;;  %v7235_v4 = vmul.f32 -1.442695, %v6195_v38  ;;  %v14074_v41 = vld [vmem:[#allocation26_spill] sm:$0xff] }
 0x664   :  { %v8668_v24 = vpop.eup %8667  ;;  %6754 = vst.msk [vmem:[%s13688_s6 + $0x70] sm:$0xff] %vm1170_vm6, %v6690_v50  ;;  %v6628_v56 = vmul.f32 %v8666_v27, %v14069_v2  ;;  %8687 = vrcp.f32 %v6442_v13  ;;  %v7234_v55 = vmul.f32 -1.442695, %v6194_v51  ;;  %v8218_v62 = vpop.f32.mrb[32].mxu1  ;;  %v14075_v51 = vld [vmem:[#allocation25_spill] sm:$0xff] }
 0x665   :  { %v8670_v15 = vpop.eup %8669  ;;  %v6693_v9 = vadd.f32 %v8855_v31, %v6629_v63  ;;  %v6445_v35 = vadd.f32 1.0, %v8668_v24  ;;  %8689 = vpow2.f32 %v7232_v43  ;;  %v6197_v5 = vadd.f32 %v8218_v62, %v13098_v6  ;;  %v5935_v37 = vpop.f32.mrb[33].mxu1 }
 0x666   :  { %v8672_v1 = vpop.eup %8671  ;;  %v6692_v39 = vadd.f32 %v8856_v59, %v6628_v56  ;;  %v6444_v3 = vadd.f32 1.0, %v8670_v15  ;;  %8691 = vpow2.f32 %v7235_v4  ;;  %v6196_v14 = vadd.f32 %v13098_v6, %v5935_v37  ;;  %v8861_v4 = vld [vmem:[%s13681_s0 + $0xb8] sm:$0xff]  ;;  %v8862_v15 = vld [vmem:[%s13681_s0 + $0xb0] sm:$0xff] }
 0x667   :  { %v8674_v30 = vpop.eup %8673  ;;  %6757 = vst.msk [vmem:[%s13688_s6 + $0x88] sm:$0xff] %vm1170_vm6, %v6693_v9  ;;  %v6631_v0 = vmul.f32 %v8672_v1, %v14070_v23  ;;  %8693 = vrcp.f32 %v6445_v35  ;;  %v7237_v46 = vmul.f32 -1.442695, %v6197_v5  ;;  %v14076_v1 = vld [vmem:[#allocation30_spill] sm:$0xff] }
 0x668   :  { %v8676_v29 = vpop.eup %8675  ;;  %6756 = vst.msk [vmem:[%s13688_s6 + $0x80] sm:$0xff] %vm1170_vm6, %v6692_v39  ;;  %8695 = vrcp.f32 %v6444_v3  ;;  %v6447_v34 = vadd.f32 1.0, %v8674_v30  ;;  %v7236_v36 = vmul.f32 -1.442695, %v6196_v14  ;;  %v8221_v32 = vpop.f32.mrb[34].mxu1  ;;  %v14077_v14 = vld [vmem:[#allocation31_spill] sm:$0xff] }
 0x669   :  { %v8678_v61 = vpop.eup %8677  ;;  %v6695_v26 = vadd.f32 %v8857_v21, %v6631_v0  ;;  %v6630_v54 = vmul.f32 %v8676_v29, %v14071_v40  ;;  %8697 = vpow2.f32 %v7234_v55  ;;  %v6199_v8 = vadd.f32 %v8221_v32, %v13098_v6  ;;  %v5945_v49 = vpop.f32.mrb[35].mxu1  ;;  %v8864_v21 = vld [vmem:[%s13681_s0 + $0xc0] sm:$0xff]  ;;  %v14078_v40 = vld [vmem:[#allocation32_spill] sm:$0xff] }
 0x66a   :  { %v8680_v28 = vpop.eup %8679  ;;  %v6633_v47 = vmul.f32 %v8678_v61, %v14072_v42  ;;  %8699 = vrcp.f32 %v6447_v34  ;;  %v6198_v11 = vadd.f32 %v13098_v6, %v5945_v49 }
 0x66b   :  { %v8682_v19 = vpop.eup %8681  ;;  %6759 = vst.msk [vmem:[%s13688_s6 + $0x98] sm:$0xff] %vm1170_vm6, %v6695_v26  ;;  %v6694_v33 = vadd.f32 %v8858_v52, %v6630_v54  ;;  %v6632_v44 = vmul.f32 %v8680_v28, %v14073_v45  ;;  %8701 = vpow2.f32 %v7237_v46  ;;  %v7239_v53 = vmul.f32 -1.442695, %v6199_v8  ;;  %v8863_v46 = vld [vmem:[%s13681_s0 + $0xc8] sm:$0xff] }
 0x66c   :  { %v8684_v58 = vpop.eup %8683  ;;  %v6697_v57 = vadd.f32 %v8859_v7, %v6633_v47  ;;  %v6446_v18 = vadd.f32 1.0, %v8682_v19  ;;  %8703 = vpow2.f32 %v7236_v36  ;;  %v7238_v48 = vmul.f32 -1.442695, %v6198_v11  ;;  %v8224_v43 = vpop.f32.mrb[36].mxu1  ;;  %v8865_v19 = vld [vmem:[%s13681_s0 + $0xd8] sm:$0xff] }
 0x66d   :  { %v8686_v20 = vpop.eup %8685  ;;  %6758 = vst.msk [vmem:[%s13688_s6 + $0x90] sm:$0xff] %vm1170_vm6, %v6694_v33  ;;  %v6696_v16 = vadd.f32 %v8860_v12, %v6632_v44  ;;  %v6449_v17 = vadd.f32 1.0, %v8684_v58  ;;  %8705 = vpow2.f32 %v7239_v53  ;;  %v6201_v10 = vadd.f32 %v8224_v43, %v13098_v6  ;;  %v5955_v38 = vpop.f32.mrb[37].mxu1 }
 0x66e   :  { %v8688_v25 = vpop.eup %8687  ;;  %6761 = vst.msk [vmem:[%s13688_s6 + $0xa8] sm:$0xff] %vm1170_vm6, %v6697_v57  ;;  %v6635_v60 = vmul.f32 %v8686_v20, %v14074_v41  ;;  %8707 = vrcp.f32 %v6446_v18  ;;  %v6200_v50 = vadd.f32 %v13098_v6, %v5955_v38  ;;  %v14079_v18 = vld [vmem:[#allocation33_spill] sm:$0xff] }
 0x66f   :  { %v8690_v13 = vpop.eup %8689  ;;  %6760 = vst.msk [vmem:[%s13688_s6 + $0xa0] sm:$0xff] %vm1170_vm6, %v6696_v16  ;;  %v6634_v27 = vmul.f32 %v8688_v25, %v14075_v51  ;;  %8709 = vrcp.f32 %v6449_v17  ;;  %v7241_v22 = vmul.f32 -1.442695, %v6201_v10  ;;  %v14080_v16 = vld [vmem:[#allocation34_spill] sm:$0xff]  ;;  %v8866_v25 = vld [vmem:[%s13681_s0 + $0xd0] sm:$0xff]  ;;  %v8867_v51 = vld [vmem:[%s13681_s0 + $0xe8] sm:$0xff] }
 0x670   :  { %v8692_v63 = vpop.eup %8691  ;;  %v6699_v24 = vadd.f32 %v8861_v4, %v6635_v60  ;;  %v6448_v2 = vadd.f32 1.0, %v8690_v13  ;;  %8711 = vpow2.f32 %v7238_v48  ;;  %v7240_v56 = vmul.f32 -1.442695, %v6200_v50  ;;  %v8227_v55 = vpop.f32.mrb[38].mxu1 }
 0x671   :  { %v8694_v62 = vpop.eup %8693  ;;  %v6698_v31 = vadd.f32 %v8862_v15, %v6634_v27  ;;  %v6451_v9 = vadd.f32 1.0, %v8692_v63  ;;  %8713 = vpow2.f32 %v7241_v22  ;;  %v6203_v35 = vadd.f32 %v8227_v55, %v13098_v6  ;;  %v5965_v5 = vpop.f32.mrb[39].mxu1 }
 0x672   :  { %v8696_v37 = vpop.eup %8695  ;;  %6763 = vst.msk [vmem:[%s13688_s6 + $0xb8] sm:$0xff] %vm1170_vm6, %v6699_v24  ;;  %v6637_v59 = vmul.f32 %v8694_v62, %v14076_v1  ;;  %8715 = vrcp.f32 %v6448_v2  ;;  %v6202_v39 = vadd.f32 %v13098_v6, %v5965_v5  ;;  %v14081_v2 = vld [vmem:[#allocation35_spill] sm:$0xff] }
 0x673   :  { %v8698_v3 = vpop.eup %8697  ;;  %6762 = vst.msk [vmem:[%s13688_s6 + $0xb0] sm:$0xff] %vm1170_vm6, %v6698_v31  ;;  %v6636_v30 = vmul.f32 %v8696_v37, %v14077_v14  ;;  %8717 = vrcp.f32 %v6451_v9  ;;  %v7243_v23 = vmul.f32 -1.442695, %v6203_v35  ;;  %v14082_v31 = vld [vmem:[#allocation36_spill] sm:$0xff]  ;;  %v8868_v37 = vld [vmem:[%s13681_s0 + $0xe0] sm:$0xff]  ;;  %v8869_v14 = vld [vmem:[%s13681_s0 + $0xf8] sm:$0xff] }
 0x674   :  { %v8700_v0 = vpop.eup %8699  ;;  %v6701_v29 = vadd.f32 %v8863_v46, %v6637_v59  ;;  %v6450_v34 = vadd.f32 1.0, %v8698_v3  ;;  %8719 = vpow2.f32 %v7240_v56  ;;  %v7242_v36 = vmul.f32 -1.442695, %v6202_v39  ;;  %v8230_v32 = vpop.f32.mrb[40].mxu1 }
 0x675   :  { %v8702_v61 = vpop.eup %8701  ;;  %v6700_v26 = vadd.f32 %v8864_v21, %v6636_v30  ;;  %v6639_v54 = vmul.f32 %v8700_v0, %v14078_v40  ;;  %8721 = vpow2.f32 %v7243_v23  ;;  %v6205_v8 = vadd.f32 %v8230_v32, %v13098_v6  ;;  %v5975_v49 = vpop.f32.mrb[41].mxu1 }
 0x676   :  { %v8704_v28 = vpop.eup %8703  ;;  %6765 = vst.msk [vmem:[%s13688_s6 + $0xc8] sm:$0xff] %vm1170_vm6, %v6701_v29  ;;  %8723 = vrcp.f32 %v6450_v34  ;;  %v6453_v42 = vadd.f32 1.0, %v8702_v61  ;;  %v6204_v47 = vadd.f32 %v13098_v6, %v5975_v49  ;;  %v14083_v29 = vld [vmem:[#allocation37_spill] sm:$0xff] }
 0x677   :  { %v8706_v11 = vpop.eup %8705  ;;  %6764 = vst.msk [vmem:[%s13688_s6 + $0xc0] sm:$0xff] %vm1170_vm6, %v6700_v26  ;;  %v6703_v52 = vadd.f32 %v8865_v19, %v6639_v54  ;;  %v6452_v33 = vadd.f32 1.0, %v8704_v28  ;;  %8725 = vpow2.f32 %v7242_v36  ;;  %v7245_v45 = vmul.f32 -1.442695, %v6205_v8  ;;  %v8870_v8 = vld [vmem:[%s13681_s0 + $0xf0] sm:$0xff]  ;;  %v14084_v28 = vld [vmem:[#allocation38_spill] sm:$0xff] }
 0x678   :  { %v8708_v44 = vpop.eup %8707  ;;  %8727 = vrcp.f32 %v6453_v42  ;;  %v6455_v53 = vadd.f32 1.0, %v8706_v11  ;;  %v7244_v58 = vmul.f32 -1.442695, %v6204_v47  ;;  %v8233_v7 = vpop.f32.mrb[42].mxu1  ;;  %v14085_v19 = vld [vmem:[#allocation39_spill] sm:$0xff] }
 0x679   :  { %v8710_v57 = vpop.eup %8709  ;;  %6767 = vst.msk [vmem:[%s13688_s6 + $0xd8] sm:$0xff] %vm1170_vm6, %v6703_v52  ;;  %v6638_v48 = vmul.f32 %v8708_v44, %v14079_v18  ;;  %8729 = vrcp.f32 %v6452_v33  ;;  %v6207_v43 = vadd.f32 %v8233_v7, %v13098_v6  ;;  %v5985_v20 = vpop.f32.mrb[43].mxu1  ;;  %v14086_v7 = vld [vmem:[#allocation40_spill] sm:$0xff] }
 0x67a   :  { %v8712_v12 = vpop.eup %8711  ;;  %v6641_v17 = vmul.f32 %v8710_v57, %v14080_v16  ;;  %8731 = vrcp.f32 %v6455_v53  ;;  %v6206_v10 = vadd.f32 %v13098_v6, %v5985_v20  ;;  %v8871_v53 = vld [vmem:[%s13681_s0 + $0x108] sm:$0xff]  ;;  %v8872_v20 = vld [vmem:[%s13681_s0 + $0x100] sm:$0xff] }
 0x67b   :  { %v8714_v38 = vpop.eup %8713  ;;  %v6702_v41 = vadd.f32 %v8866_v25, %v6638_v48  ;;  %v6454_v60 = vadd.f32 1.0, %v8712_v12  ;;  %8733 = vpow2.f32 %v7245_v45  ;;  %v7247_v50 = vmul.f32 -1.442695, %v6207_v43 }
 0x67c   :  { %v8716_v13 = vpop.eup %8715  ;;  %v6705_v27 = vadd.f32 %v8867_v51, %v6641_v17  ;;  %v6457_v22 = vadd.f32 1.0, %v8714_v38  ;;  %8735 = vpow2.f32 %v7244_v58  ;;  %v7246_v63 = vmul.f32 -1.442695, %v6206_v10  ;;  %v8236_v4 = vpop.f32.mrb[44].mxu1  ;;  %v8873_v38 = vld [vmem:[%s13681_s0 + $0x118] sm:$0xff] }
 0x67d   :  { %v8718_v24 = vpop.eup %8717  ;;  %6766 = vst.msk [vmem:[%s13688_s6 + $0xd0] sm:$0xff] %vm1170_vm6, %v6702_v41  ;;  %v6640_v56 = vmul.f32 %v8716_v13, %v14081_v2  ;;  %8737 = vrcp.f32 %v6454_v60  ;;  %v6209_v55 = vadd.f32 %v8236_v4, %v13098_v6  ;;  %v5995_v62 = vpop.f32.mrb[45].mxu1  ;;  %v14087_v13 = vld [vmem:[#allocation41_spill] sm:$0xff]  ;;  %v14088_v4 = vld [vmem:[#allocation42_spill] sm:$0xff] }
 0x67e   :  { %v8720_v15 = vpop.eup %8719  ;;  %6769 = vst.msk [vmem:[%s13688_s6 + $0xe8] sm:$0xff] %vm1170_vm6, %v6705_v27  ;;  %v6643_v9 = vmul.f32 %v8718_v24, %v14082_v31  ;;  %8739 = vrcp.f32 %v6457_v22  ;;  %v6208_v35 = vadd.f32 %v13098_v6, %v5995_v62  ;;  %v8874_v62 = vld [vmem:[%s13681_s0 + $0x110] sm:$0xff] }
 0x67f   :  { %v8722_v5 = vpop.eup %8721  ;;  %v6704_v1 = vadd.f32 %v8868_v37, %v6640_v56  ;;  %v6456_v59 = vadd.f32 1.0, %v8720_v15  ;;  %8741 = vpow2.f32 %v7247_v50  ;;  %v7249_v39 = vmul.f32 -1.442695, %v6209_v55 }
 0x680   :  { %v8724_v3 = vpop.eup %8723  ;;  %v6707_v30 = vadd.f32 %v8869_v14, %v6643_v9  ;;  %v6459_v23 = vadd.f32 1.0, %v8722_v5  ;;  %8743 = vpow2.f32 %v7246_v63  ;;  %v8239_v0 = vpop.f32.mrb[46].mxu1  ;;  %v7248_v36 = vmul.f32 -1.442695, %v6208_v35  ;;  %v8875_v5 = vld [vmem:[%s13681_s0 + $0x128] sm:$0xff] }
 0x681   :  { %v8726_v46 = vpop.eup %8725  ;;  %6768 = vst.msk [vmem:[%s13688_s6 + $0xe0] sm:$0xff] %vm1170_vm6, %v6704_v1  ;;  %v6642_v34 = vmul.f32 %v8724_v3, %v14083_v29  ;;  %8745 = vrcp.f32 %v6456_v59  ;;  %v6211_v32 = vadd.f32 %v8239_v0, %v13098_v6  ;;  %v6005_v61 = vpop.f32.mrb[47].mxu1  ;;  %v14089_v3 = vld [vmem:[#allocation43_spill] sm:$0xff] }
 0x682   :  { %v8728_v21 = vpop.eup %8727  ;;  %6771 = vst.msk [vmem:[%s13688_s6 + $0xf8] sm:$0xff] %vm1170_vm6, %v6707_v30  ;;  %8747 = vrcp.f32 %v6459_v23  ;;  %v6458_v26 = vadd.f32 1.0, %v8726_v46  ;;  %v6210_v40 = vadd.f32 %v13098_v6, %v6005_v61  ;;  %v14090_v46 = vld [vmem:[#allocation44_spill] sm:$0xff]  ;;  %v8876_v61 = vld [vmem:[%s13681_s0 + $0x120] sm:$0xff] }
 0x683   :  { %v8730_v54 = vpop.eup %8729  ;;  %v6706_v49 = vadd.f32 %v8870_v8, %v6642_v34  ;;  %v6645_v42 = vmul.f32 %v8728_v21, %v14084_v28  ;;  %8749 = vpow2.f32 %v7249_v39  ;;  %v7251_v47 = vmul.f32 -1.442695, %v6211_v32  ;;  %v8877_v8 = vld [vmem:[%s13681_s0 + $0x138] sm:$0xff] }
 0x684   :  { %v8732_v11 = vpop.eup %8731  ;;  %v6644_v52 = vmul.f32 %v8730_v54, %v14085_v19  ;;  %8751 = vrcp.f32 %v6458_v26  ;;  %v7250_v33 = vmul.f32 -1.442695, %v6210_v40  ;;  %v8242_v45 = vpop.f32.mrb[48].mxu1  ;;  %v14091_v28 = vld [vmem:[#allocation45_spill] sm:$0xff] }
 0x685   :  { %v8734_v44 = vpop.eup %8733  ;;  %6770 = vst.msk [vmem:[%s13688_s6 + $0xf0] sm:$0xff] %vm1170_vm6, %v6706_v49  ;;  %v6709_v58 = vadd.f32 %v8871_v53, %v6645_v42  ;;  %v6647_v57 = vmul.f32 %v8732_v11, %v14086_v7  ;;  %8753 = vpow2.f32 %v7248_v36  ;;  %v6213_v18 = vadd.f32 %v8242_v45, %v13098_v6  ;;  %v6015_v48 = vpop.f32.mrb[49].mxu1  ;;  %v8878_v45 = vld [vmem:[%s13681_s0 + $0x130] sm:$0xff] }
 0x686   :  { %v8736_v43 = vpop.eup %8735  ;;  %v6708_v12 = vadd.f32 %v8872_v20, %v6644_v52  ;;  %v6461_v16 = vadd.f32 1.0, %v8734_v44  ;;  %8755 = vpow2.f32 %v7251_v47  ;;  %v6212_v17 = vadd.f32 %v13098_v6, %v6015_v48 }
 0x687   :  { %v8738_v10 = vpop.eup %8737  ;;  %6773 = vst.msk [vmem:[%s13688_s6 + $0x108] sm:$0xff] %vm1170_vm6, %v6709_v58  ;;  %v6711_v25 = vadd.f32 %v8873_v38, %v6647_v57  ;;  %v6460_v41 = vadd.f32 1.0, %v8736_v43  ;;  %8757 = vpow2.f32 %v7250_v33  ;;  %v7253_v60 = vmul.f32 -1.442695, %v6213_v18  ;;  %v13473_v58 = vld [vmem:[%s13687_s5] ss:$0 sm:$0xff] }
 0x688   :  { %v8740_v50 = vpop.eup %8739  ;;  %6772 = vst.msk [vmem:[%s13688_s6 + $0x100] sm:$0xff] %vm1170_vm6, %v6708_v12  ;;  %v6646_v51 = vmul.f32 %v8738_v10, %v14087_v13  ;;  %8759 = vrcp.f32 %v6461_v16  ;;  %v7252_v27 = vmul.f32 -1.442695, %v6212_v17  ;;  %v8245_v22 = vpop.f32.mrb[50].mxu1  ;;  %v14092_v12 = vld [vmem:[#allocation46_spill] sm:$0xff]  ;;  %v14093_v38 = vld [vmem:[#allocation47_spill] sm:$0xff] }
 0x689   :  { %v8742_v63 = vpop.eup %8741  ;;  %6775 = vst.msk [vmem:[%s13688_s6 + $0x118] sm:$0xff] %vm1170_vm6, %v6711_v25  ;;  %v6649_v24 = vmul.f32 %v8740_v50, %v14088_v4  ;;  %8761 = vrcp.f32 %v6460_v41  ;;  %v6215_v2 = vadd.f32 %v8245_v22, %v13098_v6  ;;  %v6025_v56 = vpop.f32.mrb[51].mxu1  ;;  %v8880_v13 = vld [vmem:[%s13681_s0 + $0x148] sm:$0xff] }
 0x68a   :  { %v8744_v55 = vpop.eup %8743  ;;  %v6710_v15 = vadd.f32 %v8874_v62, %v6646_v51  ;;  %v6463_v31 = vadd.f32 1.0, %v8742_v63  ;;  %8763 = vpow2.f32 %v7253_v60  ;;  %v6214_v9 = vadd.f32 %v13098_v6, %v6025_v56 }
 0x68b   :  { %v8746_v35 = vpop.eup %8745  ;;  %v6713_v37 = vadd.f32 %v8875_v5, %v6649_v24  ;;  %v6462_v1 = vadd.f32 1.0, %v8744_v55  ;;  %8765 = vpow2.f32 %v7252_v27  ;;  %v7255_v59 = vmul.f32 -1.442695, %v6215_v2  ;;  %v8881_v24 = vld [vmem:[%s13681_s0 + $0x140] sm:$0xff]  ;;  %v14095_v5 = vld [vmem:[#allocation49_spill] sm:$0xff] }
 0x68c   :  { %v8748_v39 = vpop.eup %8747  ;;  %6774 = vst.msk [vmem:[%s13688_s6 + $0x110] sm:$0xff] %vm1170_vm6, %v6710_v15  ;;  %v6648_v14 = vmul.f32 %v8746_v35, %v14089_v3  ;;  %8767 = vrcp.f32 %v6463_v31  ;;  %v7254_v30 = vmul.f32 -1.442695, %v6214_v9  ;;  %v8248_v23 = vpop.f32.mrb[52].mxu1  ;;  %v14094_v15 = vld [vmem:[#allocation48_spill] sm:$0xff]  ;;  %v8882_v3 = vld [vmem:[%s13681_s0 + $0x158] sm:$0xff] }
 0x68d   :  { %v8750_v0 = vpop.eup %8749  ;;  %6777 = vst.msk [vmem:[%s13688_s6 + $0x128] sm:$0xff] %vm1170_vm6, %v6713_v37  ;;  %v6651_v29 = vmul.f32 %v8748_v39, %v14090_v46  ;;  %8769 = vrcp.f32 %v6462_v1  ;;  %v6217_v34 = vadd.f32 %v8248_v23, %v13098_v6  ;;  %v6035_v36 = vpop.f32.mrb[53].mxu1 }
 0x68e   :  { %v8752_v32 = vpop.eup %8751  ;;  %v6712_v21 = vadd.f32 %v8876_v61, %v6648_v14  ;;  %v6465_v26 = vadd.f32 1.0, %v8750_v0  ;;  %8771 = vpow2.f32 %v7255_v59  ;;  %v6216_v40 = vadd.f32 %v13098_v6, %v6035_v36 }
 0x68f   :  { %v8754_v54 = vpop.eup %8753  ;;  %v6715_v49 = vadd.f32 %v8877_v8, %v6651_v29  ;;  %v6650_v42 = vmul.f32 %v8752_v32, %v14091_v28  ;;  %8773 = vpow2.f32 %v7254_v30  ;;  %v7257_v47 = vmul.f32 -1.442695, %v6217_v34  ;;  %v8883_v29 = vld [vmem:[%s13681_s0 + $0x150] sm:$0xff] }
 0x690   :  { %v8756_v11 = vpop.eup %8755  ;;  %6776 = vst.msk [vmem:[%s13688_s6 + $0x120] sm:$0xff] %vm1170_vm6, %v6712_v21  ;;  %8775 = vrcp.f32 %v6465_v26  ;;  %v6464_v19 = vadd.f32 1.0, %v8754_v54  ;;  %v7256_v52 = vmul.f32 -1.442695, %v6216_v40  ;;  %v8251_v6 = vpop.f32.mrb[54].mxu1  ;;  %v14096_v21 = vld [vmem:[#allocation50_spill] sm:$0xff] }
 0x691   :  { %v8758_v33 = vpop.eup %8757  ;;  %6779 = vst.msk [vmem:[%s13688_s6 + $0x138] sm:$0xff] %vm1170_vm6, %v6715_v49  ;;  %v6714_v44 = vadd.f32 %v8878_v45, %v6650_v42  ;;  %v6467_v53 = vadd.f32 1.0, %v8756_v11  ;;  %8777 = vpow2.f32 %v7257_v47  ;;  %v6219_v7 = vadd.f32 %v13473_v58, %v8251_v6  ;;  %v6045_v57 = vpop.f32.mrb[55].mxu1  ;;  %v8884_v47 = vld [vmem:[%s13681_s0 + $0x168] sm:$0xff] }
 0x692   :  { %v8760_v18 = vpop.eup %8759  ;;  %8779 = vrcp.f32 %v6464_v19  ;;  %v6466_v48 = vadd.f32 1.0, %v8758_v33  ;;  %v6218_v43 = vadd.f32 %v13473_v58, %v6045_v57  ;;  %v14097_v19 = vld [vmem:[#allocation51_spill] sm:$0xff] }
 0x693   :  { %v8762_v20 = vpop.eup %8761  ;;  %6778 = vst.msk [vmem:[%s13688_s6 + $0x130] sm:$0xff] %vm1170_vm6, %v6714_v44  ;;  %v6653_v16 = vmul.f32 %v8760_v18, %v14092_v12  ;;  %8781 = vrcp.f32 %v6467_v53  ;;  %v7259_v17 = vmul.f32 -1.442695, %v6219_v7  ;;  %v14098_v44 = vld [vmem:[#allocation52_spill] sm:$0xff]  ;;  %v8885_v18 = vld [vmem:[%s13681_s0 + $0x160] sm:$0xff] }
 0x694   :  { %v8764_v10 = vpop.eup %8763  ;;  %v6652_v25 = vmul.f32 %v8762_v20, %v14093_v38  ;;  %8783 = vrcp.f32 %v6466_v48  ;;  %v7258_v41 = vmul.f32 -1.442695, %v6218_v43  ;;  %v8254_v60 = vpop.f32.mrb[56].mxu1  ;;  %v14099_v43 = vld [vmem:[#allocation53_spill] sm:$0xff] }
 0x695   :  { %v8766_v50 = vpop.eup %8765  ;;  %v6717_v51 = vadd.f32 %v8880_v13, %v6653_v16  ;;  %v6469_v27 = vadd.f32 1.0, %v8764_v10  ;;  %8785 = vpow2.f32 %v7256_v52  ;;  %v6221_v22 = vadd.f32 %v13473_v58, %v8254_v60  ;;  %v6055_v63 = vpop.f32.mrb[57].mxu1 }
 0x696   :  { %v8768_v4 = vpop.eup %8767  ;;  %v6716_v2 = vadd.f32 %v8881_v24, %v6652_v25  ;;  %v6468_v56 = vadd.f32 1.0, %v8766_v50  ;;  %8787 = vpow2.f32 %v7259_v17  ;;  %v6220_v55 = vadd.f32 %v13473_v58, %v6055_v63  ;;  %v8886_v17 = vld [vmem:[%s13681_s0 + $0x178] sm:$0xff]  ;;  %v8887_v50 = vld [vmem:[%s13681_s0 + $0x170] sm:$0xff] }
 0x697   :  { %v8770_v62 = vpop.eup %8769  ;;  %6781 = vst.msk [vmem:[%s13688_s6 + $0x148] sm:$0xff] %vm1170_vm6, %v6717_v51  ;;  %v6655_v31 = vmul.f32 %v8768_v4, %v14094_v15  ;;  %8789 = vrcp.f32 %v6469_v27  ;;  %v7261_v9 = vmul.f32 -1.442695, %v6221_v22  ;;  %v14100_v4 = vld [vmem:[#allocation54_spill] sm:$0xff] }
 0x698   :  { %v8772_v35 = vpop.eup %8771  ;;  %6780 = vst.msk [vmem:[%s13688_s6 + $0x140] sm:$0xff] %vm1170_vm6, %v6716_v2  ;;  %v6654_v37 = vmul.f32 %v8770_v62, %v14095_v5  ;;  %8791 = vrcp.f32 %v6468_v56  ;;  %v7260_v1 = vmul.f32 -1.442695, %v6220_v55  ;;  %v8257_v59 = vpop.f32.mrb[58].mxu1  ;;  %v14101_v55 = vld [vmem:[#allocation55_spill] sm:$0xff] }
 0x699   :  { %v8774_v39 = vpop.eup %8773  ;;  %v6719_v14 = vadd.f32 %v8882_v3, %v6655_v31  ;;  %v6471_v30 = vadd.f32 1.0, %v8772_v35  ;;  %8793 = vpow2.f32 %v7258_v41  ;;  %v6223_v23 = vadd.f32 %v13473_v58, %v8257_v59  ;;  %v6065_v0 = vpop.f32.mrb[59].mxu1 }
 0x69a   :  { %v8776_v46 = vpop.eup %8775  ;;  %v6718_v34 = vadd.f32 %v8883_v29, %v6654_v37  ;;  %v6470_v36 = vadd.f32 1.0, %v8774_v39  ;;  %8795 = vpow2.f32 %v7261_v9  ;;  %v6222_v32 = vadd.f32 %v13473_v58, %v6065_v0  ;;  %v8888_v9 = vld [vmem:[%s13681_s0 + $0x188] sm:$0xff]  ;;  %v14103_v0 = vld [vmem:[#allocation57_spill] sm:$0xff] }
 0x69b   :  { %v8778_v61 = vpop.eup %8777  ;;  %6783 = vst.msk [vmem:[%s13688_s6 + $0x158] sm:$0xff] %vm1170_vm6, %v6719_v14  ;;  %v6657_v26 = vmul.f32 %v8776_v46, %v14096_v21  ;;  %8797 = vrcp.f32 %v6471_v30  ;;  %v7263_v40 = vmul.f32 -1.442695, %v6223_v23  ;;  %v14102_v14 = vld [vmem:[#allocation56_spill] sm:$0xff] }
 0x69c   :  { %v8780_v54 = vpop.eup %8779  ;;  %6782 = vst.msk [vmem:[%s13688_s6 + $0x150] sm:$0xff] %vm1170_vm6, %v6718_v34  ;;  %8799 = vrcp.f32 %v6470_v36  ;;  %v6473_v8 = vadd.f32 1.0, %v8778_v61  ;;  %v7262_v49 = vmul.f32 -1.442695, %v6222_v32  ;;  %v8260_v28 = vpop.f32.mrb[60].mxu1  ;;  %v8890_v34 = vld [vmem:[%s13681_s0 + $0x198] sm:$0xff] }
 0x69d   :  { %v8782_v42 = vpop.eup %8781  ;;  %v6721_v11 = vadd.f32 %v8884_v47, %v6657_v26  ;;  %v6656_v52 = vmul.f32 %v8780_v54, %v14097_v19  ;;  %8801 = vpow2.f32 %v7260_v1  ;;  %v6225_v6 = vadd.f32 %v13473_v58, %v8260_v28  ;;  %v6075_v33 = vpop.f32.mrb[61].mxu1  ;;  %v8889_v1 = vld [vmem:[%s13681_s0 + $0x180] sm:$0xff]  ;;  %v8891_v21 = vld [vmem:[%s13681_s0 + $0x190] sm:$0xff] }
 0x69e   :  { %v8784_v45 = vpop.eup %8783  ;;  %v6659_v53 = vmul.f32 %v8782_v42, %v14098_v44  ;;  %8803 = vrcp.f32 %v6473_v8  ;;  %v6224_v7 = vadd.f32 %v13473_v58, %v6075_v33  ;;  %v8892_v42 = vld [vmem:[%s13681_s0 + $0x1a8] sm:$0xff] }
 0x69f   :  { %v8786_v57 = vpop.eup %8785  ;;  %6785 = vst.msk [vmem:[%s13688_s6 + $0x168] sm:$0xff] %vm1170_vm6, %v6721_v11  ;;  %v6720_v48 = vadd.f32 %v8885_v18, %v6656_v52  ;;  %v6658_v20 = vmul.f32 %v8784_v45, %v14099_v43  ;;  %8805 = vpow2.f32 %v7263_v40  ;;  %v7265_v12 = vmul.f32 -1.442695, %v6225_v6  ;;  %v14104_v40 = vld [vmem:[#allocation58_spill] sm:$0xff]  ;;  %v14105_v33 = vld [vmem:[#allocation59_spill] sm:$0xff] }
 0x6a0   :  { %v8788_v16 = vpop.eup %8787  ;;  %v6723_v10 = vadd.f32 %v8886_v17, %v6659_v53  ;;  %v6472_v38 = vadd.f32 1.0, %v8786_v57  ;;  %8807 = vpow2.f32 %v7262_v49  ;;  %v7264_v25 = vmul.f32 -1.442695, %v6224_v7  ;;  %v8263_v41 = vpop.f32.mrb[62].mxu1  ;;  %v14106_v53 = vld [vmem:[#allocation60_spill] sm:$0xff]  ;;  %v8893_v18 = vld [vmem:[%s13681_s0 + $0x1a0] sm:$0xff] }
 0x6a1   :  { %v8790_v60 = vpop.eup %8789  ;;  %6784 = vst.msk [vmem:[%s13688_s6 + $0x160] sm:$0xff] %vm1170_vm6, %v6720_v48  ;;  %v6722_v13 = vadd.f32 %v8887_v50, %v6658_v20  ;;  %v6475_v51 = vadd.f32 1.0, %v8788_v16  ;;  %8809 = vpow2.f32 %v7265_v12  ;;  %v6227_v27 = vadd.f32 %v13473_v58, %v8263_v41  ;;  %v6085_v22 = vpop.f32.mrb[63].mxu1  ;;  %v8894_v12 = vld [vmem:[%s13681_s0 + $0x1b8] sm:$0xff] }
 0x6a2   :  { %v8792_v63 = vpop.eup %8791  ;;  %6787 = vst.msk [vmem:[%s13688_s6 + $0x178] sm:$0xff] %vm1170_vm6, %v6723_v10  ;;  %v6661_v24 = vmul.f32 %v8790_v60, %v14100_v4  ;;  %8811 = vrcp.f32 %v6472_v38  ;;  %v6226_v2 = vadd.f32 %v13473_v58, %v6085_v22  ;;  %v14107_v38 = vld [vmem:[#allocation61_spill] sm:$0xff]  ;;  %v14108_v60 = vld [vmem:[#allocation62_spill] sm:$0xff] }
 0x6a3   :  { %v8794_v56 = vpop.eup %8793  ;;  %6786 = vst.msk [vmem:[%s13688_s6 + $0x170] sm:$0xff] %vm1170_vm6, %v6722_v13  ;;  %v6660_v62 = vmul.f32 %v8792_v63, %v14101_v55  ;;  %8813 = vrcp.f32 %v6475_v51  ;;  %v7267_v15 = vmul.f32 -1.442695, %v6227_v27  ;;  %v8895_v13 = vld [vmem:[%s13681_s0 + $0x1b0] sm:$0xff]  ;;  %v8896_v63 = vld [vmem:[%s13681_s0 + $0x1c8] sm:$0xff] }
 0x6a4   :  { %v8796_v31 = vpop.eup %8795  ;;  %v6725_v35 = vadd.f32 %v8888_v9, %v6661_v24  ;;  %v6474_v5 = vadd.f32 1.0, %v8794_v56  ;;  %8815 = vpow2.f32 %v7264_v25  ;;  %v7266_v37 = vmul.f32 -1.442695, %v6226_v2  ;;  %v14109_v24 = vld [vmem:[#allocation63_spill] sm:$0xff] }
 0x6a5   :  { %v8798_v58 = vpop.eup %8797  ;;  %v6724_v59 = vadd.f32 %v8889_v1, %v6660_v62  ;;  %v6477_v39 = vadd.f32 1.0, %v8796_v31  ;;  %8817 = vpow2.f32 %v7267_v15  ;;  %v8897_v62 = vld [vmem:[%s13681_s0 + $0x1c0] sm:$0xff]  ;;  %v14110_v31 = vld [vmem:[#allocation64_spill] sm:$0xff] }
 0x6a6   :  { %v8800_v3 = vpop.eup %8799  ;;  %6789 = vst.msk [vmem:[%s13688_s6 + $0x188] sm:$0xff] %vm1170_vm6, %v6725_v35  ;;  %v6663_v30 = vmul.f32 %v8798_v58, %v14102_v14  ;;  %8819 = vrcp.f32 %v6474_v5  ;;  %v14111_v5 = vld [vmem:[#allocation65_spill] sm:$0xff] }
 0x6a7   :  { %v8802_v23 = vpop.eup %8801  ;;  %6788 = vst.msk [vmem:[%s13688_s6 + $0x180] sm:$0xff] %vm1170_vm6, %v6724_v59  ;;  %v6662_v46 = vmul.f32 %v8800_v3, %v14103_v0  ;;  %8821 = vrcp.f32 %v6477_v39  ;;  %v8898_v58 = vld [vmem:[%s13681_s0 + $0x1d8] sm:$0xff]  ;;  %v14112_v59 = vld [vmem:[#allocation66_spill] sm:$0xff]  ;;  %v8899_v3 = vld [vmem:[%s13681_s0 + $0x1d0] sm:$0xff] }
 0x6a8   :  { %v8804_v29 = vpop.eup %8803  ;;  %v6727_v36 = vadd.f32 %v8890_v34, %v6663_v30  ;;  %v6476_v32 = vadd.f32 1.0, %v8802_v23  ;;  %8823 = vpow2.f32 %v7266_v37  ;;  %v8900_v23 = vld [vmem:[%s13681_s0 + $0x1e8] sm:$0xff] }
 0x6a9   :  { %v8806_v61 = vpop.eup %8805  ;;  %v6726_v26 = vadd.f32 %v8891_v21, %v6662_v46  ;;  %v6665_v54 = vmul.f32 %v8804_v29, %v14104_v40  ;;  %v14113_v29 = vld [vmem:[#allocation67_spill] sm:$0xff]  ;;  %v8902_v40 = vld [vmem:[%s13681_s0 + $0x1f8] sm:$0xff] }
 0x6aa   :  { %v8808_v8 = vpop.eup %8807  ;;  %6791 = vst.msk [vmem:[%s13688_s6 + $0x198] sm:$0xff] %vm1170_vm6, %v6727_v36  ;;  %8825 = vrcp.f32 %v6476_v32  ;;  %v6479_v49 = vadd.f32 1.0, %v8806_v61  ;;  %v14114_v36 = vld [vmem:[#allocation68_spill] sm:$0xff]  ;;  %v8901_v61 = vld [vmem:[%s13681_s0 + $0x1e0] sm:$0xff] }
 0x6ab   :  { %v8810_v28 = vpop.eup %8809  ;;  %6790 = vst.msk [vmem:[%s13688_s6 + $0x190] sm:$0xff] %vm1170_vm6, %v6726_v26  ;;  %v6729_v47 = vadd.f32 %v8892_v42, %v6665_v54  ;;  %v6478_v11 = vadd.f32 1.0, %v8808_v8  ;;  %v14115_v8 = vld [vmem:[#allocation69_spill] sm:$0xff] }
 0x6ac   :  { %v8812_v19 = vpop.eup %8811  ;;  %8827 = vrcp.f32 %v6479_v49  ;;  %v6481_v52 = vadd.f32 1.0, %v8810_v28  ;;  %v8903_v28 = vld [vmem:[%s13681_s0 + $0x1f0] sm:$0xff] }
 0x6ad   :  { %v8814_v6 = vpop.eup %8813  ;;  %6793 = vst.msk [vmem:[%s13688_s6 + $0x1a8] sm:$0xff] %vm1170_vm6, %v6729_v47  ;;  %v6664_v45 = vmul.f32 %v8812_v19, %v14105_v33  ;;  %8829 = vrcp.f32 %v6478_v11 }
 0x6ae   :  { %v8816_v44 = vpop.eup %8815  ;;  %v6667_v7 = vmul.f32 %v8814_v6, %v14106_v53  ;;  %8831 = vrcp.f32 %v6481_v52 }
 0x6af   :  { %v8818_v57 = vpop.eup %8817  ;;  %v6728_v48 = vadd.f32 %v8893_v18, %v6664_v45  ;;  %v6480_v43 = vadd.f32 1.0, %v8816_v44 }
 0x6b0   :  { %v8820_v20 = vpop.eup %8819  ;;  %v6731_v16 = vadd.f32 %v8894_v12, %v6667_v7  ;;  %v6483_v17 = vadd.f32 1.0, %v8818_v57 }
 0x6b1   :  { %v8822_v10 = vpop.eup %8821  ;;  %6792 = vst.msk [vmem:[%s13688_s6 + $0x1a0] sm:$0xff] %vm1170_vm6, %v6728_v48  ;;  %v6666_v25 = vmul.f32 %v8820_v20, %v14107_v38  ;;  %8833 = vrcp.f32 %v6480_v43 }
 0x6b2   :  { %v8824_v41 = vpop.eup %8823  ;;  %6795 = vst.msk [vmem:[%s13688_s6 + $0x1b8] sm:$0xff] %vm1170_vm6, %v6731_v16  ;;  %v6669_v50 = vmul.f32 %v8822_v10, %v14108_v60  ;;  %8835 = vrcp.f32 %v6483_v17 }
 0x6b3   :  { %v6730_v51 = vadd.f32 %v8895_v13, %v6666_v25  ;;  %v6482_v27 = vadd.f32 1.0, %v8824_v41 }
 0x6b4   :  { %v8826_v22 = vpop.eup %8825  ;;  %v6733_v4 = vadd.f32 %v8896_v63, %v6669_v50 }
 0x6b5   :  { %6794 = vst.msk [vmem:[%s13688_s6 + $0x1b0] sm:$0xff] %vm1170_vm6, %v6730_v51  ;;  %v6668_v2 = vmul.f32 %v8826_v22, %v14109_v24  ;;  %8837 = vrcp.f32 %v6482_v27 }
 0x6b6   :  { %v8828_v56 = vpop.eup %8827  ;;  %6797 = vst.msk [vmem:[%s13688_s6 + $0x1c8] sm:$0xff] %vm1170_vm6, %v6733_v4 }
 0x6b7   :  { %v8830_v55 = vpop.eup %8829  ;;  %v6732_v15 = vadd.f32 %v8897_v62, %v6668_v2  ;;  %v6671_v9 = vmul.f32 %v8828_v56, %v14110_v31 }
 0x6b8   :  { %v8832_v35 = vpop.eup %8831  ;;  %v6670_v37 = vmul.f32 %v8830_v55, %v14111_v5 }
 0x6b9   :  { %6796 = vst.msk [vmem:[%s13688_s6 + $0x1c0] sm:$0xff] %vm1170_vm6, %v6732_v15  ;;  %v6735_v1 = vadd.f32 %v8898_v58, %v6671_v9  ;;  %v6673_v39 = vmul.f32 %v8832_v35, %v14112_v59 }
 0x6ba   :  { %v6734_v14 = vadd.f32 %v8899_v3, %v6670_v37 }
 0x6bb   :  { %v8834_v30 = vpop.eup %8833  ;;  %6799 = vst.msk [vmem:[%s13688_s6 + $0x1d8] sm:$0xff] %vm1170_vm6, %v6735_v1  ;;  %v6737_v0 = vadd.f32 %v8900_v23, %v6673_v39 }
 0x6bc   :  { %v8836_v46 = vpop.eup %8835  ;;  %6798 = vst.msk [vmem:[%s13688_s6 + $0x1d0] sm:$0xff] %vm1170_vm6, %v6734_v14  ;;  %v6672_v34 = vmul.f32 %v8834_v30, %v14113_v29 }
 0x6bd   :  { %6801 = vst.msk [vmem:[%s13688_s6 + $0x1e8] sm:$0xff] %vm1170_vm6, %v6737_v0  ;;  %v6675_v32 = vmul.f32 %v8836_v46, %v14114_v36 }
 0x6be   :  { %v6736_v21 = vadd.f32 %v8901_v61, %v6672_v34 }
 0x6bf   :  { %v8838_v26 = vpop.eup %8837  ;;  %v6739_v54 = vadd.f32 %v8902_v40, %v6675_v32 }
 0x6c0   :  { %6800 = vst.msk [vmem:[%s13688_s6 + $0x1e0] sm:$0xff] %vm1170_vm6, %v6736_v21  ;;  %v6674_v49 = vmul.f32 %v8838_v26, %v14115_v8 }
 0x6c1   :  { %6803 = vst.msk [vmem:[%s13688_s6 + $0x1f8] sm:$0xff] %vm1170_vm6, %v6739_v54 }
 0x6c2   :  { %v6738_v42 = vadd.f32 %v8903_v28, %v6674_v49 }
 0x6c4   :  { %6802 = vst.msk [vmem:[%s13688_s6 + $0x1f0] sm:$0xff] %vm1170_vm6, %v6738_v42 }

</bundles_post_ra>
